<compile_context>
chip_gen: v7x
topology: tpu7x:2x2x1
jax: 0.10.0
libtpu: 0.0.40
codegen_flags: <defaults>
</compile_context>

<pallas_src>
import functools

import numpy as np

import jax
import jax.numpy as jnp
from jax.experimental import pallas as pl
from jax.experimental.pallas import tpu as pltpu

EPS = 1e-6
MU_INIT = 1.0  # correlated_mean_beta init


def _band_weight(cap_dim, n_off_diag):
    """Exactly what the torch __init__ builds: triu(1, -k) * its transpose."""
    wt = np.triu(np.ones((cap_dim, cap_dim), np.float32), -n_off_diag)
    return wt * wt.T  # 1 where |i - j| <= n_off_diag else 0


@functools.lru_cache(maxsize=None)
def _vmem_budget_and_limit():
    """Generation-aware VMEM sizing.

    Physical VMEM: ~128 MiB on v4/v5e/v5p/v6e, 64 MiB per TensorCore on v7x
    (also the conservative default for unknown parts), 16 MiB on v2/v3.
    Returns (tile-picker working-set budget, vmem_limit_bytes to request).
    """
    try:
        kind = jax.devices()[0].device_kind.lower()
    except Exception:
        kind = ""
    if ("v2" in kind) or ("v3" in kind):
        phys = 16 << 20
    elif any(s in kind for s in ("v4", "v5", "v6")):
        phys = 128 << 20
    else:  # v7x and unknown parts: be conservative
        phys = 64 << 20
    limit = (phys // 4) * 3          # scoped-VMEM limit requested from Mosaic
    budget = (limit // 3) * 2        # conservative target for tile picking
    return budget, limit


@functools.lru_cache(maxsize=None)
def _xlu_sublane_roll_mode():
    """Probe pltpu.roll (XLU vrot) on a rank-4 sublane rotate.

    Returns +1 if it lowers and matches jnp.roll's shift convention, -1 if it
    lowers with the mirrored convention, 0 if it does not lower for this shape
    (the kernel then falls back to jnp.roll's slice+concat, which is still
    correct, just slower).
    """
    shape = (2, 3, 8, 128)
    shift = 3
    try:
        x = jnp.arange(int(np.prod(shape)), dtype=jnp.float32).reshape(shape)

        def kern(x_ref, o_ref):
            o_ref[...] = pltpu.roll(x_ref[...], shift, axis=2)

        out = pl.pallas_call(
            kern, out_shape=jax.ShapeDtypeStruct(shape, jnp.float32))(x)
        out = np.asarray(jax.block_until_ready(out))
        xn = np.asarray(x)
        if np.array_equal(out, np.roll(xn, shift, axis=2)):
            return 1
        if np.array_equal(out, np.roll(xn, -shift, axis=2)):
            return -1
        return 0
    except Exception:
        return 0


def _pick_tiles(n_caps, n_t, cap_dim, p_pad, n_off_diag, in_bytes, budget):
    """Jointly pick (cap_tile, p_tile): largest block whose estimated working
    set fits `budget`.  Per-element estimate:
      - z/u/out pipelined: 3 arrays x 2 buffers in the native dtype,
      - f32 in-kernel temporaries: u^2, the rolling window of 2*n_off_diag+1
        shifted copies, plus row/v/std/cast slack (~4 blocks).
    """
    per_elem = 6 * in_bytes + (2 * n_off_diag + 1 + 4) * 4

    def block_bytes(ct, pt):
        return n_t * ct * cap_dim * pt * per_elem

    p_tiles = [x for x in range(p_pad, 0, -128) if p_pad % x == 0]   # mult of 128
    cap_tiles = [x for x in range(n_caps, 0, -1) if n_caps % x == 0]

    best = None
    for pt in p_tiles:
        for ct in cap_tiles:
            bb = block_bytes(ct, pt)
            if bb <= budget and (best is None or (bb, pt, ct) > best[0]):
                best = ((bb, pt, ct), ct, pt)
    if best is None:            # nothing fits the budget: take the smallest
        return 1, p_tiles[-1]   # block and let vmem_limit_bytes absorb it
    return best[1], best[2]


def _make_kernel(w_mat, pad_t, pad_d, eps, xlu_mode):
    """Build the kernel with the (static, non-trainable) band-conv taps baked in.

    Band conv as rolls:
      v[t, d] = sum_{a,e} W[a,e] * u2[(t + a - pad_t) % T, (d + e - pad_d) % D]
    Per kernel row `a` only the columns inside the band are non-zero, so the
    column-shifted copies of u2 are produced as a rolling window (at most
    2*n_off_diag+1 full-block temporaries live at any point).
    """
    k = w_mat.shape[0]
    rows = []
    for a in range(k):
        taps = [(e, float(w_mat[a, e])) for e in range(k)
                if float(w_mat[a, e]) != 0.0]
        rows.append(taps)
    assert any(rows), "conv weight is all zeros"
    # TODO(synk): for trainable=True the weight would be a runtime SMEM operand
    # instead of static taps (and the x1.0 multiply elision would be dropped).

    def kernel(beta_ref, z_ref, u_ref, out_ref):
        # beta_ref : (1,)            SMEM  (correlated_mean_beta)
        # z_ref    : (T, CT, D, PT)  VMEM  native dtype
        # u_ref    : (T, CT, D, PT)  VMEM  native dtype
        # out_ref  : (T, CT, D, PT)  VMEM  native dtype
        u = u_ref[...].astype(jnp.float32)   # cast in-kernel, no extra HBM pass
        u2 = u * u                           # square == pad-then-square
        t_dim = u2.shape[0]
        d_dim = u2.shape[2]
        lane_ok = (d_dim % 8 == 0) and (u2.shape[-1] % 128 == 0)

        def shifted(e):
            # circular shift along the cap_dim (sublane) axis for kernel col e
            s = (pad_d - e) % d_dim
            if s == 0:
                return u2
            if xlu_mode != 0 and lane_ok:
                ss = s if xlu_mode > 0 else d_dim - s
                return pltpu.roll(u2, ss, axis=2)   # single XLU vrot
            return jnp.roll(u2, s, axis=2)          # fallback: slice + concat

        d_shift = {}     # rolling window of column-shifted copies
        v = None
        for a in range(k):
            taps = rows[a]
            if not taps:
                continue
            for e, _ in taps:                       # open window entries
                if e not in d_shift:
                    d_shift[e] = shifted(e)
            row = None
            for e, w in taps:                       # band is 0/1 -> adds only
                term = d_shift[e] if w == 1.0 else w * d_shift[e]
                row = term if row is None else row + term
            s_t = (pad_t - a) % t_dim               # circular shift along n_t
            if s_t != 0:
                # leading-dim roll: whole-vreg slice+concat, no relayout
                row = jnp.roll(row, s_t, axis=0)
            v = row if v is None else v + row
            # close window entries no later row needs -> caps live temporaries
            future = set()
            for later in rows[a + 1:]:
                future.update(e for e, _ in later)
            for e in list(d_shift):
                if e not in future:
                    del d_shift[e]

        std = jax.lax.rsqrt(v + eps)                # EUP path, no VALU divide
        beta = beta_ref[0]
        s_val = (z_ref[...].astype(jnp.float32) + beta) * std
        out_ref[...] = s_val.astype(out_ref.dtype)

    return kernel


@functools.partial(jax.jit, static_argnames=(
    "n_caps", "cap_dim", "n_transforms", "n_off_diag", "eps",
    "xlu_mode", "vmem_budget", "vmem_limit"))
def _forward_impl(z, u, beta, *, n_caps, cap_dim, n_transforms, n_off_diag,
                  eps, xlu_mode, vmem_budget, vmem_limit):
    b, c, h, w_img = u.shape
    p = h * w_img
    t, n, d = n_transforms, n_caps, cap_dim
    assert c == t * n * d, "channel dim must equal n_t * n_caps * cap_dim"

    w_mat = _band_weight(d, n_off_diag)     # static (trainable=False)
    pad_t = (d - 1) // 2                    # circular "same" padder, low side
    pad_d = (d - 1) // 2

    # Metadata-only reshape (B, T*N*D, H, W) -> (B*T, N, D, P); the torch
    # permutes cancel because the conv treats the capsule axis as pure batch.
    # Inputs stay in their native dtype; casting happens inside the kernel.
    u4 = u.reshape(b * t, n, d, p)
    z4 = z.reshape(b * t, n, d, p)
    beta_s = beta.reshape(-1).astype(jnp.float32)

    # Lane-dense P: pad to a multiple of 128 only if needed (unmasked vst).
    p_pad = p if p % 128 == 0 else ((p + 127) // 128) * 128
    if p_pad != p:
        pad_w = ((0, 0), (0, 0), (0, 0), (0, p_pad - p))
        u4 = jnp.pad(u4, pad_w)
        z4 = jnp.pad(z4, pad_w)

    in_bytes = max(jnp.dtype(z.dtype).itemsize, jnp.dtype(u.dtype).itemsize)
    cap_tile, p_tile = _pick_tiles(n, t, d, p_pad, n_off_diag, in_bytes,
                                   vmem_budget)
    # Guarantee >= 2 grid steps so v7x's two TensorCores both get work.
    if b * (n // cap_tile) * (p_pad // p_tile) < 2:
        if p_tile % 256 == 0:
            p_tile //= 2
        elif cap_tile % 2 == 0:
            cap_tile //= 2

    kernel = _make_kernel(w_mat, pad_t, pad_d, float(eps), xlu_mode)
    block = (t, cap_tile, d, p_tile)        # last two dims (D, P_tile) lane-dense
    idx = lambda bi, ci, pi: (bi, ci, 0, pi)

    out4 = pl.pallas_call(
        kernel,
        out_shape=jax.ShapeDtypeStruct((b * t, n, d, p_pad), z.dtype),
        grid=(b, n // cap_tile, p_pad // p_tile),
        in_specs=[
            pl.BlockSpec(memory_space=pltpu.MemorySpace.SMEM),  # beta scalar
            pl.BlockSpec(block, idx),                           # z
            pl.BlockSpec(block, idx),                           # u
        ],
        out_specs=pl.BlockSpec(block, idx),
        compiler_params=pltpu.CompilerParams(
            dimension_semantics=("parallel", "parallel", "parallel"),
            vmem_limit_bytes=vmem_limit),
    )(beta_s, z4, u4)

    if p_pad != p:
        out4 = out4[..., :p]
    return out4.reshape(z.shape)


def chi_squared_capsules_from_gaussian_1d(z, u, beta, *, n_caps, cap_dim,
                                          n_transforms, n_off_diag=1, eps=EPS):
    """z, u: (B, n_t*n_caps*cap_dim, H, W); beta: (1,) -> s with z's shape."""
    xlu_mode = _xlu_sublane_roll_mode()          # probed once, cached
    vmem_budget, vmem_limit = _vmem_budget_and_limit()
    return _forward_impl(z, u, beta, n_caps=n_caps, cap_dim=cap_dim,
                         n_transforms=n_transforms, n_off_diag=n_off_diag,
                         eps=eps, xlu_mode=xlu_mode,
                         vmem_budget=vmem_budget, vmem_limit=vmem_limit)


def _reference(z, u, beta, *, n_caps, cap_dim, n_transforms, n_off_diag, eps):
    """Pure-JAX mirror of the torch forward (incl. the permutes), written with
    explicit pad+slice taps (no conv op) so the check is precision-robust."""
    b, c, h, w_img = u.shape
    p = h * w_img
    t, n, d = n_transforms, n_caps, cap_dim
    w_mat = _band_weight(d, n_off_diag)
    pad_lo = (d - 1) // 2
    pad_hi = d - 1 - pad_lo

    u_caps = u.reshape(b, t, n, d, p)
    u_caps = jnp.transpose(u_caps, (0, 2, 1, 3, 4))        # (B, N, T, D, P)
    u2 = u_caps.astype(jnp.float32) ** 2.0
    u_pad = jnp.pad(u2, ((0, 0), (0, 0), (pad_lo, pad_hi),
                         (pad_lo, pad_hi), (0, 0)), mode="wrap")
    v = jnp.zeros_like(u2)
    for a in range(d):
        for e in range(d):
            wv = float(w_mat[a, e])
            if wv != 0.0:
                v = v + wv * u_pad[:, :, a:a + t, e:e + d, :]
    v = jnp.transpose(v, (0, 2, 1, 3, 4)).reshape(z.shape)  # back to z layout
    std = 1.0 / jnp.sqrt(v + eps)
    return (z.astype(jnp.float32) + beta[0]) * std


if __name__ == "__main__":
    key = jax.random.PRNGKey(0)
    kz, ku = jax.random.split(key)

    # Small shapes consistent with the module: capsules rolling over transforms.
    batch, n_caps, cap_dim, n_transforms, n_off_diag = 2, 4, 8, 8, 1
    h = w_img = 16
    channels = n_transforms * n_caps * cap_dim             # 256

    z = jax.random.normal(kz, (batch, channels, h, w_img), dtype=jnp.float32)
    u = jax.random.normal(ku, (batch, channels, h, w_img), dtype=jnp.float32)
    beta = jnp.ones((1,), jnp.float32) * MU_INIT           # correlated_mean_beta

    out = chi_squared_capsules_from_gaussian_1d(
        z, u, beta, n_caps=n_caps, cap_dim=cap_dim,
        n_transforms=n_transforms, n_off_diag=n_off_diag, eps=EPS)
    out = jax.block_until_ready(out)

    ref = _reference(z, u, beta, n_caps=n_caps, cap_dim=cap_dim,
                     n_transforms=n_transforms, n_off_diag=n_off_diag, eps=EPS)
    assert out.shape == z.shape and out.dtype == z.dtype
    max_err = float(jnp.max(jnp.abs(out.astype(jnp.float32) - ref)))
    assert max_err < 1e-3, f"max_err={max_err}"

    print("KERNEL_OK")
</pallas_src>

<mosaic_0001>
module attributes {stable_mosaic.version = 11 : i64} {
  func.func @kern(%arg0: memref<2x3x8x128xf32, #tpu.memory_space<vmem>>, %arg1: memref<2x3x8x128xf32, #tpu.memory_space<vmem>>) attributes {dimension_semantics = [], scalar_prefetch = 0 : i64, scratch_operands = 0 : i64, tpu.core_type = #tpu.core_type<tc>} {
    %c0 = arith.constant 0 : index
    %c0_0 = arith.constant 0 : index
    %c0_1 = arith.constant 0 : index
    %c0_2 = arith.constant 0 : index
    %0 = vector.load %arg0[%c0, %c0_0, %c0_1, %c0_2] : memref<2x3x8x128xf32, #tpu.memory_space<vmem>>, vector<2x3x8x128xf32>
    %c3_i32 = arith.constant 3 : i32
    %1 = tpu.dynamic_rotate %0 by %c3_i32 dim 2 : vector<2x3x8x128xf32>, i32 -> vector<2x3x8x128xf32>
    %c0_3 = arith.constant 0 : index
    %c0_4 = arith.constant 0 : index
    %c0_5 = arith.constant 0 : index
    %c0_6 = arith.constant 0 : index
    %2 = vector.load %arg1[%c0_3, %c0_4, %c0_5, %c0_6] : memref<2x3x8x128xf32, #tpu.memory_space<vmem>>, vector<2x3x8x128xf32>
    tpu.vector_store %arg1[%c0_3, %c0_4, %c0_5, %c0_6], %1 {strides = array<i32>} : memref<2x3x8x128xf32, #tpu.memory_space<vmem>>, vector<2x3x8x128xf32>,
    return
  }
}

module attributes {stable_mosaic.version = 11 : i64} {
  func.func @kernel(%arg0: i32, %arg1: i32, %arg2: i32, %arg3: memref<1xf32, #tpu.memory_space<smem>>, %arg4: memref<8x4x8x256xf32, #tpu.memory_space<vmem>>, %arg5: memref<8x4x8x256xf32, #tpu.memory_space<vmem>>, %arg6: memref<8x4x8x256xf32, #tpu.memory_space<vmem>>) attributes {dimension_semantics = [#tpu.dimension_semantics<parallel>, #tpu.dimension_semantics<parallel>, #tpu.dimension_semantics<parallel>], iteration_bounds = array<i64: 2, 1, 1>, scalar_prefetch = 0 : i64, scratch_operands = 0 : i64, tpu.core_type = #tpu.core_type<tc>, window_params = [{transform_indices = @transform_0, window_bounds = array<i64: 1>}, {transform_indices = @transform_1, window_bounds = array<i64: 8, 4, 8, 256>}, {transform_indices = @transform_2, window_bounds = array<i64: 8, 4, 8, 256>}, {transform_indices = @transform_3, window_bounds = array<i64: 8, 4, 8, 256>}]} {
    %c0 = arith.constant 0 : index
    %c0_0 = arith.constant 0 : index
    %c0_1 = arith.constant 0 : index
    %c0_2 = arith.constant 0 : index
    %0 = vector.load %arg5[%c0, %c0_0, %c0_1, %c0_2] : memref<8x4x8x256xf32, #tpu.memory_space<vmem>>, vector<8x4x8x256xf32>
    %1 = arith.mulf %0, %0 : vector<8x4x8x256xf32>
    %2 = vector.extract_strided_slice %1 {offsets = [0, 0, 5, 0], sizes = [8, 4, 3, 256], strides = [1, 1, 1, 1]} : vector<8x4x8x256xf32> to vector<8x4x3x256xf32>
    %3 = vector.extract_strided_slice %1 {offsets = [0, 0, 0, 0], sizes = [8, 4, 5, 256], strides = [1, 1, 1, 1]} : vector<8x4x8x256xf32> to vector<8x4x5x256xf32>
    %4 = tpu.concatenate %2, %3 in 2 : vector<8x4x3x256xf32>, vector<8x4x5x256xf32> -> vector<8x4x8x256xf32>
    %5 = vector.extract_strided_slice %1 {offsets = [0, 0, 6, 0], sizes = [8, 4, 2, 256], strides = [1, 1, 1, 1]} : vector<8x4x8x256xf32> to vector<8x4x2x256xf32>
    %6 = vector.extract_strided_slice %1 {offsets = [0, 0, 0, 0], sizes = [8, 4, 6, 256], strides = [1, 1, 1, 1]} : vector<8x4x8x256xf32> to vector<8x4x6x256xf32>
    %7 = tpu.concatenate %5, %6 in 2 : vector<8x4x2x256xf32>, vector<8x4x6x256xf32> -> vector<8x4x8x256xf32>
    %8 = arith.addf %4, %7 : vector<8x4x8x256xf32>
    %9 = vector.extract_strided_slice %8 {offsets = [5, 0, 0, 0], sizes = [3, 4, 8, 256], strides = [1, 1, 1, 1]} : vector<8x4x8x256xf32> to vector<3x4x8x256xf32>
    %10 = vector.extract_strided_slice %8 {offsets = [0, 0, 0, 0], sizes = [5, 4, 8, 256], strides = [1, 1, 1, 1]} : vector<8x4x8x256xf32> to vector<5x4x8x256xf32>
    %11 = tpu.concatenate %9, %10 in 0 : vector<3x4x8x256xf32>, vector<5x4x8x256xf32> -> vector<8x4x8x256xf32>
    %12 = vector.extract_strided_slice %1 {offsets = [0, 0, 7, 0], sizes = [8, 4, 1, 256], strides = [1, 1, 1, 1]} : vector<8x4x8x256xf32> to vector<8x4x1x256xf32>
    %13 = vector.extract_strided_slice %1 {offsets = [0, 0, 0, 0], sizes = [8, 4, 7, 256], strides = [1, 1, 1, 1]} : vector<8x4x8x256xf32> to vector<8x4x7x256xf32>
    %14 = tpu.concatenate %12, %13 in 2 : vector<8x4x1x256xf32>, vector<8x4x7x256xf32> -> vector<8x4x8x256xf32>
    %15 = arith.addf %4, %7 : vector<8x4x8x256xf32>
    %16 = arith.addf %15, %14 : vector<8x4x8x256xf32>
    %17 = vector.extract_strided_slice %16 {offsets = [6, 0, 0, 0], sizes = [2, 4, 8, 256], strides = [1, 1, 1, 1]} : vector<8x4x8x256xf32> to vector<2x4x8x256xf32>
    %18 = vector.extract_strided_slice %16 {offsets = [0, 0, 0, 0], sizes = [6, 4, 8, 256], strides = [1, 1, 1, 1]} : vector<8x4x8x256xf32> to vector<6x4x8x256xf32>
    %19 = tpu.concatenate %17, %18 in 0 : vector<2x4x8x256xf32>, vector<6x4x8x256xf32> -> vector<8x4x8x256xf32>
    %20 = arith.addf %11, %19 : vector<8x4x8x256xf32>
    %21 = arith.addf %7, %14 : vector<8x4x8x256xf32>
    %22 = arith.addf %21, %1 : vector<8x4x8x256xf32>
    %23 = vector.extract_strided_slice %22 {offsets = [7, 0, 0, 0], sizes = [1, 4, 8, 256], strides = [1, 1, 1, 1]} : vector<8x4x8x256xf32> to vector<1x4x8x256xf32>
    %24 = vector.extract_strided_slice %22 {offsets = [0, 0, 0, 0], sizes = [7, 4, 8, 256], strides = [1, 1, 1, 1]} : vector<8x4x8x256xf32> to vector<7x4x8x256xf32>
    %25 = tpu.concatenate %23, %24 in 0 : vector<1x4x8x256xf32>, vector<7x4x8x256xf32> -> vector<8x4x8x256xf32>
    %26 = arith.addf %20, %25 : vector<8x4x8x256xf32>
    %27 = vector.extract_strided_slice %1 {offsets = [0, 0, 1, 0], sizes = [8, 4, 7, 256], strides = [1, 1, 1, 1]} : vector<8x4x8x256xf32> to vector<8x4x7x256xf32>
    %28 = vector.extract_strided_slice %1 {offsets = [0, 0, 0, 0], sizes = [8, 4, 1, 256], strides = [1, 1, 1, 1]} : vector<8x4x8x256xf32> to vector<8x4x1x256xf32>
    %29 = tpu.concatenate %27, %28 in 2 : vector<8x4x7x256xf32>, vector<8x4x1x256xf32> -> vector<8x4x8x256xf32>
    %30 = arith.addf %14, %1 : vector<8x4x8x256xf32>
    %31 = arith.addf %30, %29 : vector<8x4x8x256xf32>
    %32 = arith.addf %26, %31 : vector<8x4x8x256xf32>
    %33 = vector.extract_strided_slice %1 {offsets = [0, 0, 2, 0], sizes = [8, 4, 6, 256], strides = [1, 1, 1, 1]} : vector<8x4x8x256xf32> to vector<8x4x6x256xf32>
    %34 = vector.extract_strided_slice %1 {offsets = [0, 0, 0, 0], sizes = [8, 4, 2, 256], strides = [1, 1, 1, 1]} : vector<8x4x8x256xf32> to vector<8x4x2x256xf32>
    %35 = tpu.concatenate %33, %34 in 2 : vector<8x4x6x256xf32>, vector<8x4x2x256xf32> -> vector<8x4x8x256xf32>
    %36 = arith.addf %1, %29 : vector<8x4x8x256xf32>
    %37 = arith.addf %36, %35 : vector<8x4x8x256xf32>
    %38 = vector.extract_strided_slice %37 {offsets = [1, 0, 0, 0], sizes = [7, 4, 8, 256], strides = [1, 1, 1, 1]} : vector<8x4x8x256xf32> to vector<7x4x8x256xf32>
    %39 = vector.extract_strided_slice %37 {offsets = [0, 0, 0, 0], sizes = [1, 4, 8, 256], strides = [1, 1, 1, 1]} : vector<8x4x8x256xf32> to vector<1x4x8x256xf32>
    %40 = tpu.concatenate %38, %39 in 0 : vector<7x4x8x256xf32>, vector<1x4x8x256xf32> -> vector<8x4x8x256xf32>
    %41 = arith.addf %32, %40 : vector<8x4x8x256xf32>
    %42 = vector.extract_strided_slice %1 {offsets = [0, 0, 3, 0], sizes = [8, 4, 5, 256], strides = [1, 1, 1, 1]} : vector<8x4x8x256xf32> to vector<8x4x5x256xf32>
    %43 = vector.extract_strided_slice %1 {offsets = [0, 0, 0, 0], sizes = [8, 4, 3, 256], strides = [1, 1, 1, 1]} : vector<8x4x8x256xf32> to vector<8x4x3x256xf32>
    %44 = tpu.concatenate %42, %43 in 2 : vector<8x4x5x256xf32>, vector<8x4x3x256xf32> -> vector<8x4x8x256xf32>
    %45 = arith.addf %29, %35 : vector<8x4x8x256xf32>
    %46 = arith.addf %45, %44 : vector<8x4x8x256xf32>
    %47 = vector.extract_strided_slice %46 {offsets = [2, 0, 0, 0], sizes = [6, 4, 8, 256], strides = [1, 1, 1, 1]} : vector<8x4x8x256xf32> to vector<6x4x8x256xf32>
    %48 = vector.extract_strided_slice %46 {offsets = [0, 0, 0, 0], sizes = [2, 4, 8, 256], strides = [1, 1, 1, 1]} : vector<8x4x8x256xf32> to vector<2x4x8x256xf32>
    %49 = tpu.concatenate %47, %48 in 0 : vector<6x4x8x256xf32>, vector<2x4x8x256xf32> -> vector<8x4x8x256xf32>
    %50 = arith.addf %41, %49 : vector<8x4x8x256xf32>
    %51 = vector.extract_strided_slice %1 {offsets = [0, 0, 4, 0], sizes = [8, 4, 4, 256], strides = [1, 1, 1, 1]} : vector<8x4x8x256xf32> to vector<8x4x4x256xf32>
    %52 = vector.extract_strided_slice %1 {offsets = [0, 0, 0, 0], sizes = [8, 4, 4, 256], strides = [1, 1, 1, 1]} : vector<8x4x8x256xf32> to vector<8x4x4x256xf32>
    %53 = tpu.concatenate %51, %52 in 2 : vector<8x4x4x256xf32>, vector<8x4x4x256xf32> -> vector<8x4x8x256xf32>
    %54 = arith.addf %35, %44 : vector<8x4x8x256xf32>
    %55 = arith.addf %54, %53 : vector<8x4x8x256xf32>
    %56 = vector.extract_strided_slice %55 {offsets = [3, 0, 0, 0], sizes = [5, 4, 8, 256], strides = [1, 1, 1, 1]} : vector<8x4x8x256xf32> to vector<5x4x8x256xf32>
    %57 = vector.extract_strided_slice %55 {offsets = [0, 0, 0, 0], sizes = [3, 4, 8, 256], strides = [1, 1, 1, 1]} : vector<8x4x8x256xf32> to vector<3x4x8x256xf32>
    %58 = tpu.concatenate %56, %57 in 0 : vector<5x4x8x256xf32>, vector<3x4x8x256xf32> -> vector<8x4x8x256xf32>
    %59 = arith.addf %50, %58 : vector<8x4x8x256xf32>
    %60 = arith.addf %44, %53 : vector<8x4x8x256xf32>
    %61 = vector.extract_strided_slice %60 {offsets = [4, 0, 0, 0], sizes = [4, 4, 8, 256], strides = [1, 1, 1, 1]} : vector<8x4x8x256xf32> to vector<4x4x8x256xf32>
    %62 = vector.extract_strided_slice %60 {offsets = [0, 0, 0, 0], sizes = [4, 4, 8, 256], strides = [1, 1, 1, 1]} : vector<8x4x8x256xf32> to vector<4x4x8x256xf32>
    %63 = tpu.concatenate %61, %62 in 0 : vector<4x4x8x256xf32>, vector<4x4x8x256xf32> -> vector<8x4x8x256xf32>
    %64 = arith.addf %59, %63 : vector<8x4x8x256xf32>
    %cst = arith.constant 9.99999997E-7 : f32
    %65 = vector.broadcast %cst : f32 to vector<8x4x8x256xf32>
    %66 = arith.addf %64, %65 : vector<8x4x8x256xf32>
    %67 = math.rsqrt %66 : vector<8x4x8x256xf32>
    %c0_3 = arith.constant 0 : index
    %68 = memref.load %arg3[%c0_3] : memref<1xf32, #tpu.memory_space<smem>>
    %c0_4 = arith.constant 0 : index
    %c0_5 = arith.constant 0 : index
    %c0_6 = arith.constant 0 : index
    %c0_7 = arith.constant 0 : index
    %69 = vector.load %arg4[%c0_4, %c0_5, %c0_6, %c0_7] : memref<8x4x8x256xf32, #tpu.memory_space<vmem>>, vector<8x4x8x256xf32>
    %70 = vector.broadcast %68 : f32 to vector<8x4x8x256xf32>
    %71 = arith.addf %69, %70 : vector<8x4x8x256xf32>
    %72 = arith.mulf %71, %67 : vector<8x4x8x256xf32>
    %c0_8 = arith.constant 0 : index
    %c0_9 = arith.constant 0 : index
    %c0_10 = arith.constant 0 : index
    %c0_11 = arith.constant 0 : index
    %73 = vector.load %arg6[%c0_8, %c0_9, %c0_10, %c0_11] : memref<8x4x8x256xf32, #tpu.memory_space<vmem>>, vector<8x4x8x256xf32>
    tpu.vector_store %arg6[%c0_8, %c0_9, %c0_10, %c0_11], %72 {strides = array<i32>} : memref<8x4x8x256xf32, #tpu.memory_space<vmem>>, vector<8x4x8x256xf32>,
    return
  }
  func.func @transform_0(%arg0: i32, %arg1: i32, %arg2: i32) -> i32 {
    %c0_i32 = arith.constant 0 : i32
    %c0_i32_0 = arith.constant 0 : i32
    return %c0_i32 : i32
  }
  func.func @transform_1(%arg0: i32, %arg1: i32, %arg2: i32) -> (i32, i32, i32, i32) {
    %c0_i32 = arith.constant 0 : i32
    %c0_i32_0 = arith.constant 0 : i32
    return %arg0, %arg1, %c0_i32, %arg2 : i32, i32, i32, i32
  }
  func.func @transform_2(%arg0: i32, %arg1: i32, %arg2: i32) -> (i32, i32, i32, i32) {
    %c0_i32 = arith.constant 0 : i32
    %c0_i32_0 = arith.constant 0 : i32
    return %arg0, %arg1, %c0_i32, %arg2 : i32, i32, i32, i32
  }
  func.func @transform_3(%arg0: i32, %arg1: i32, %arg2: i32) -> (i32, i32, i32, i32) {
    %c0_i32 = arith.constant 0 : i32
    %c0_i32_0 = arith.constant 0 : i32
    return %arg0, %arg1, %c0_i32, %arg2 : i32, i32, i32, i32
  }
}

</mosaic_0001>

<bundles_post_ra>
// kernel: tpu_custom_call.1
= control target key start
LH: loop header
LB: loop body
LE: loop exit
PB: predicated region body
PF: predicated region fallthrough
CT: control target
= control target key end

     0   :  { %6 = vsyncpa [#allocation3], 0  ;;  %s154_s0 = inlined_call_operand.hbm [shape: f32[2,3,8,128], index: 0, kind: input, shape index: {}]   ;;  %s155_s1 = inlined_call_operand.hbm [shape: f32[2,3,8,128], index: 1, kind: output, shape index: {}]  }
   0x1   :  { %7 = vsyncpa [#allocation4], 0  ;;  %s110_s6 = smov [#allocation2]   ;;  %s62_s10 = scalar_lea.hbm %s154_s0, 768 }
   0x2   :  { %s13_s7 = sshll.u32 %s110_s6, 4  ;;  %p63_p0 = scmp.ne.s32.totalorder %s154_s0, %s62_s10  ;;  %s14_s7 = int_to_ptr.vmem [resolvable:$true] %s13_s7 }
   0x3   :  { %p66_p1 = scmp.lt.u32.totalorder %s62_s10, %s154_s0 }
   0x5   :  { %p68_p2 = pnand %p66_p1, %p63_p0 }
   0x7   :  { %71 = shalt.err (!%p68_p2)
}
   0x8   :  { %s72_s15 = scalar_lea.vmem %s14_s7, 768  ;;  %p77_p4 = scmp.lt.s32.totalorder %s14_s7, %s14_s7 }
   0x9   :  { %p73_p3 = scmp.ne.s32.totalorder %s14_s7, %s72_s15  ;;  %p78_p5 = scmp.lt.s32.totalorder %s72_s15, %s72_s15 }
   0xb   :  { %p79_p6 = por %p78_p5, %p77_p4 }
   0xd   :  { %p80_p7 = pnand %p79_p6, %p73_p3 }
   0xf   :  { %83 = shalt.err (!%p80_p7)
}
  0x10   :  { %s111_s16 = smov 128   ;;  %s112_s17 = smov 8  }
  0x11   :  { %19 = dma.hbm_to_vmem [thread:$0]  %s154_s0, 768, %s14_s7, [#allocation3], %s111_s16, %s111_s16, %s112_s17  }
  0x12   :  { %106 = dma.done.wait [#allocation3], 768  }
  0x13   :  { %107 = vsyncadd [#allocation3], 4294966528  ;;  %s113_s20 = smov [#allocation5]   ;;  %v23_v0 = vld [vmem:[#allocation2] sm:$0xff]  ;;  %v24_v1 = vld [vmem:[#allocation2 + $0x8] sm:$0xff] }
  0x14   :  { %s46_s21 = sshll.u32 %s113_s20, 4  ;;  %v25_v2 = vld [vmem:[#allocation2 + $0x10] sm:$0xff]  ;;  %v29_v3 = vrot.slane %v23_v0, 5  ;;  %v30_v4 = vrot.slane %v24_v1, 5  ;;  %v26_v6 = vld [vmem:[#allocation2 + $0x18] sm:$0xff]  ;;  %v27_v7 = vld [vmem:[#allocation2 + $0x20] sm:$0xff]  ;;  %s47_s21 = int_to_ptr.vmem [resolvable:$true] %s46_s21 }
  0x15   :  { %v31_v5 = vrot.slane %v25_v2, 5  ;;  %v28_v8 = vld [vmem:[#allocation2 + $0x28] sm:$0xff]  ;;  %v32_v9 = vrot.slane %v26_v6, 5  ;;  %v33_v10 = vrot.slane %v27_v7, 5  ;;  %s84_s0 = scalar_lea.vmem %s47_s21, 768  ;;  %p89_p9 = scmp.lt.s32.totalorder %s47_s21, %s47_s21 }
  0x16   :  { %v34_v11 = vrot.slane %v28_v8, 5  ;;  %35 = vst [vmem:[#allocation5] sm:$0xff] %v29_v3  ;;  %36 = vst [vmem:[#allocation5 + $0x8] sm:$0xff] %v30_v4  ;;  %p85_p8 = scmp.ne.s32.totalorder %s47_s21, %s84_s0  ;;  %p90_p10 = scmp.lt.s32.totalorder %s84_s0, %s84_s0 }
  0x17   :  { %37 = vst [vmem:[#allocation5 + $0x10] sm:$0xff] %v31_v5  ;;  %38 = vst [vmem:[#allocation5 + $0x18] sm:$0xff] %v32_v9 }
  0x18   :  { %39 = vst [vmem:[#allocation5 + $0x20] sm:$0xff] %v33_v10  ;;  %40 = vst [vmem:[#allocation5 + $0x28] sm:$0xff] %v34_v11  ;;  %p91_p11 = por %p90_p10, %p89_p9 }
  0x1a   :  { %p92_p12 = pnand %p91_p11, %p85_p8 }
  0x1c   :  { %95 = shalt.err (!%p92_p12)
}
  0x1d   :  { %s96_s24 = scalar_lea.hbm %s155_s1, 768 }
  0x1e   :  { %p97_p13 = scmp.ne.s32.totalorder %s155_s1, %s96_s24  ;;  %p100_p0 = scmp.lt.u32.totalorder %s96_s24, %s155_s1 }
  0x20   :  { %p102_p1 = pnand %p100_p0, %p97_p13 }
  0x22   :  { %105 = shalt.err (!%p102_p1)
}
  0x23   :  { %52 = dma.vmem_to_hbm [thread:$0]  %s47_s21, 768, %s155_s1, [#allocation4], %s111_s16, %s111_s16, %s112_s17  }
  0x24   :  { %108 = dma.done.wait [#allocation4], 768  }
  0x25   :  { %109 = vsyncadd [#allocation4], 4294966528 }
  0x26   :  { %56 = vsyncpa [#allocation3], 1 }
  0x27   :  { %57 = vsyncpa [#allocation4], 1 }

// kernel: _forward_impl.1
= control target key start
LH: loop header
LB: loop body
LE: loop exit
PB: predicated region body
PF: predicated region fallthrough
CT: control target
= control target key end

     0   :  { %s3887_s14 = smov 0   ;;  %s3889_s15 = smov 0   ;;  %s7077_s0 = inlined_call_operand.<no memory space> [shape: f32[1], index: 0, kind: input, shape index: {}]   ;;  %s7078_s1 = inlined_call_operand.vmem [shape: f32[16,4,8,256], index: 1, kind: input, shape index: {}]   ;;  %s7079_s2 = inlined_call_operand.vmem [shape: f32[16,4,8,256], index: 2, kind: input, shape index: {}]   ;;  %s7080_s3 = inlined_call_operand.vmem [shape: f32[16,4,8,256], index: 3, kind: output, shape index: {}]  }
   0x1   :  { %8 = sst [smem:[#allocation2]] %s7077_s0  ;;  %s3891_s16 = smov 0  }
   0x2 LB: > { %s33_s0 = sadd.s32 1, %s3858_s15  ;;  %p3673_p0 = scmp.ge.s32.totalorder %s3862_s16, 1  ;;  %s3862_s16 = sphi %s3891_s16, %s14_s16   ;;  %s3858_s15 = sphi %s3889_s15, %s9131_s15   ;;  %s3854_s14 = sphi %s3887_s14, %s9130_s14  }
   0x3   : > { %p35_p1 = scmp.ge.s32.totalorder %s33_s0, 2  ;;  %p205_p2 = scmp.lt.s32.totalorder %s3862_s16, 3 }
   0x5   : > { %s9133_s0 = smov (%p35_p1, %s33_s0), 0  ;;  %p206_p3 = pnand %p3673_p0, %p205_p2 }
   0x7   : > { %209 = sbr.rel (%p206_p3) target bundleno = 594 (0x252), region = 32 }
   0xe   : > { %s3674_s17 = sshll.u32 %s3854_s14, 3  ;;  %s3269_s18 = sld [smem:[#allocation2]] }
   0xf   : > { %p267_p4 = scmp.lt.s32.totalorder %s3674_s17, 15 }
  0x11   : > { %s9135_s17 = smov (!%p267_p4, %s3674_s17), 15 }
  0x12   : > { %s3905_s19 = sshll.u32 %s9135_s17, 6 }
  0x13   : > { %s3911_s22 = scalar_lea.vmem %s7079_s2, %s3905_s19  ;;  %s3956_s25 = scalar_lea.vmem %s7078_s1, %s3905_s19 }
  0x14   : > { %v318_v0 = vld [vmem:[%s3911_s22] sm:$0xff]  ;;  %v3926_v10 = vstv %s3269_s18  ;;  %v319_v41 = vld [vmem:[%s3911_s22 + $0x8] sm:$0xff]  ;;  %s4225_s28 = scalar_lea.vmem %s7080_s3, %s3905_s19 }
  0x15   : > { %v326_v1 = vld [vmem:[%s3911_s22 + $0x40] sm:$0xff]  ;;  %v3920_v7 = vmul.f32 %v318_v0, %v318_v0  ;;  %v327_v46 = vld [vmem:[%s3911_s22 + $0x48] sm:$0xff]  ;;  %v4027_v59 = vmul.f32 %v319_v41, %v319_v41 }
  0x16   : > { %v334_v2 = vld [vmem:[%s3911_s22 + $0x80] sm:$0xff]  ;;  %v3922_v8 = vmul.f32 %v326_v1, %v326_v1  ;;  %v335_v47 = vld [vmem:[%s3911_s22 + $0x88] sm:$0xff]  ;;  %v4032_v62 = vmul.f32 %v327_v46, %v327_v46 }
  0x17   : > { %v342_v3 = vld [vmem:[%s3911_s22 + $0xc0] sm:$0xff]  ;;  %7884 = vst [vmem:[#allocation3_spill] sm:$0xff] %v3920_v7  ;;  %v3928_v11 = vmul.f32 %v334_v2, %v334_v2  ;;  %v3938_v16 = vrot.slane %v3920_v7, 7  ;;  %v3941_v17 = vrot.slane %v3920_v7, 1  ;;  %v359_v48 = vld [vmem:[%s3911_s22 + $0x148] sm:$0xff]  ;;  %7904 = vst [vmem:[#allocation23_spill] sm:$0xff] %v4027_v59  ;;  %v4037_v1 = vmul.f32 %v335_v47, %v335_v47 }
  0x18   : > { %v358_v4 = vld [vmem:[%s3911_s22 + $0x140] sm:$0xff]  ;;  %7885 = vst [vmem:[#allocation4_spill] sm:$0xff] %v3922_v8  ;;  %v3930_v12 = vmul.f32 %v342_v3, %v342_v3  ;;  %v3944_v18 = vrot.slane %v3922_v8, 1  ;;  %v3973_v29 = vrot.slane %v3922_v8, 2  ;;  %v343_v53 = vld [vmem:[%s3911_s22 + $0xc8] sm:$0xff]  ;;  %7905 = vst [vmem:[#allocation24_spill] sm:$0xff] %v4032_v62  ;;  %v4034_v63 = vmul.f32 %v359_v48, %v359_v48 }
  0x19   : > { %v366_v5 = vld [vmem:[%s3911_s22 + $0x180] sm:$0xff]  ;;  %v3924_v9 = vmul.f32 %v358_v4, %v358_v4  ;;  %7887 = vst [vmem:[#allocation6_spill] sm:$0xff] %v3928_v11  ;;  %7891 = vst [vmem:[#allocation10_spill] sm:$0xff] %v3938_v16  ;;  %v3964_v26 = vrot.slane %v3928_v11, 1  ;;  %v1666_v27 = vadd.f32 %v3938_v16, %v3920_v7  ;;  %v3976_v30 = vrot.slane %v3928_v11, 2  ;;  %v367_v54 = vld [vmem:[%s3911_s22 + $0x188] sm:$0xff] }
  0x1a   : > { %v374_v6 = vld [vmem:[%s3911_s22 + $0x1c0] sm:$0xff]  ;;  %7888 = vst [vmem:[#allocation7_spill] sm:$0xff] %v3930_v12  ;;  %v3932_v13 = vmul.f32 %v366_v5, %v366_v5  ;;  %7892 = vst [vmem:[#allocation11_spill] sm:$0xff] %v3941_v17  ;;  %v2059_v31 = vadd.f32 %v3944_v18, %v3922_v8  ;;  %v3984_v33 = vrot.slane %v3930_v12, 2  ;;  %v3987_v34 = vrot.slane %v3928_v11, 3  ;;  %v375_v55 = vld [vmem:[%s3911_s22 + $0x1c8] sm:$0xff] }
  0x1b   : > { %7886 = vst [vmem:[#allocation5_spill] sm:$0xff] %v3924_v9  ;;  %v3934_v14 = vmul.f32 %v374_v6, %v374_v6  ;;  %v550_v15 = vrot.slane %v3924_v9, 5  ;;  %7893 = vst [vmem:[#allocation12_spill] sm:$0xff] %v3944_v18  ;;  %v7085_v20 = vrot.slane %v3924_v9, 6  ;;  %v350_v23 = vld [vmem:[%s3911_s22 + $0x100] sm:$0xff]  ;;  %v3990_v35 = vrot.slane %v3930_v12, 3 }
  0x1c   : > { %7889 = vst [vmem:[#allocation8_spill] sm:$0xff] %v3932_v13  ;;  %v558_v19 = vrot.slane %v3932_v13, 5  ;;  %v7083_v21 = vrot.slane %v3932_v13, 6  ;;  %v3950_v22 = vrot.slane %v3932_v13, 7  ;;  %7896 = vst [vmem:[#allocation15_spill] sm:$0xff] %v3964_v26  ;;  %v3992_v36 = vmul.f32 %v350_v23, %v350_v23  ;;  %v3270_v40 = vld [vmem:[%s3956_s25] sm:$0xff] }
  0x1d   : > { %7890 = vst [vmem:[#allocation9_spill] sm:$0xff] %v3934_v14  ;;  %v7088_v24 = vrot.slane %v3934_v14, 6  ;;  %v3961_v25 = vrot.slane %v3934_v14, 7  ;;  %7897 = vst [vmem:[#allocation16_spill] sm:$0xff] %v3973_v29  ;;  %v3996_v37 = vadd.f32 %v7085_v20, %v550_v15  ;;  %v2452_v39 = vadd.f32 %v3976_v30, %v3964_v26  ;;  %v351_v0 = vld [vmem:[%s3911_s22 + $0x108] sm:$0xff] }
  0x1e   : > { %7894 = vst [vmem:[#allocation13_spill] sm:$0xff] %v3950_v22  ;;  %v3970_v28 = vadd.f32 %v7083_v21, %v558_v19  ;;  %7898 = vst [vmem:[#allocation17_spill] sm:$0xff] %v3976_v30  ;;  %v1730_v43 = vadd.f32 %v1666_v27, %v3941_v17  ;;  %v7081_v44 = vrot.slane %v3930_v12, 4  ;;  %v2845_v45 = vadd.f32 %v3990_v35, %v3984_v33 }
  0x1f   : > { %7895 = vst [vmem:[#allocation14_spill] sm:$0xff] %v3961_v25  ;;  %v1337_v32 = vadd.f32 %v3961_v25, %v7088_v24  ;;  %7899 = vst [vmem:[#allocation18_spill] sm:$0xff] %v3984_v33  ;;  %v2123_v50 = vadd.f32 %v2059_v31, %v3973_v29  ;;  %v4015_v51 = vrot.slane %v3992_v36, 3  ;;  %v7086_v52 = vrot.slane %v3992_v36, 4  ;;  %v368_v24 = vld [vmem:[%s3911_s22 + $0x190] sm:$0xff] }
  0x20   : > { %7900 = vst [vmem:[#allocation19_spill] sm:$0xff] %v3987_v34  ;;  %7901 = vst [vmem:[#allocation20_spill] sm:$0xff] %v3990_v35  ;;  %v1201_v38 = vadd.f32 %v3950_v22, %v3970_v28  ;;  %v2516_v56 = vadd.f32 %v2452_v39, %v3987_v34  ;;  %v2909_v57 = vadd.f32 %v2845_v45, %v7081_v44  ;;  %v551_v6 = vrot.slane %v4034_v63, 5 }
  0x21   : > { %7902 = vst [vmem:[#allocation21_spill] sm:$0xff] %v3992_v36  ;;  %7903 = vst [vmem:[#allocation22_spill] sm:$0xff] %v3996_v37  ;;  %v1401_v42 = vadd.f32 %v1337_v32, %v3934_v14  ;;  %v4025_v58 = vadd.f32 %v3926_v10, %v3270_v40  ;;  %v3045_v61 = vadd.f32 %v7086_v52, %v4015_v51  ;;  %v7084_v15 = vrot.slane %v4034_v63, 6 }
  0x22   : > { %v1217_v49 = vadd.f32 %v1201_v38, %v3996_v37  ;;  %7906 = vst [vmem:[#allocation25_spill] sm:$0xff] %v4034_v63  ;;  %7907 = vst [vmem:[#allocation26_spill] sm:$0xff] %v4037_v1  ;;  %v4039_v2 = vmul.f32 %v343_v53, %v343_v53  ;;  %v4041_v3 = vmul.f32 %v367_v54, %v367_v54  ;;  %v4048_v19 = vrot.slane %v4027_v59, 7  ;;  %v376_v37 = vld [vmem:[%s3911_s22 + $0x1d0] sm:$0xff] }
  0x23   : > { %v4043_v4 = vmul.f32 %v375_v55, %v375_v55  ;;  %v4056_v32 = vrot.slane %v4032_v62, 1  ;;  %v4058_v39 = vmul.f32 %v351_v0, %v351_v0  ;;  %v4074_v46 = vrot.slane %v4037_v1, 2 }
  0x24   : > { %v1409_v60 = vadd.f32 %v1401_v42, %v1217_v49  ;;  %7908 = vst [vmem:[#allocation27_spill] sm:$0xff] %v4039_v2  ;;  %7909 = vst [vmem:[#allocation28_spill] sm:$0xff] %v4041_v3  ;;  %v559_v23 = vrot.slane %v4041_v3, 5  ;;  %v7082_v27 = vrot.slane %v4041_v3, 6  ;;  %v4053_v31 = vrot.slane %v4041_v3, 7 }
  0x25   : > { %7910 = vst [vmem:[#allocation29_spill] sm:$0xff] %v4043_v4  ;;  %7912 = vst [vmem:[#allocation31_spill] sm:$0xff] %v4056_v32  ;;  %v7087_v40 = vrot.slane %v4043_v4, 6  ;;  %v4062_v41 = vrot.slane %v4043_v4, 7  ;;  %v1667_v45 = vadd.f32 %v4048_v19, %v4027_v59  ;;  %v4078_v48 = vadd.f32 %v7084_v15, %v551_v6 }
  0x26   : > { %v1794_v5 = vadd.f32 %v1730_v43, %v1409_v60  ;;  %7911 = vst [vmem:[#allocation30_spill] sm:$0xff] %v4053_v31  ;;  %7913 = vst [vmem:[#allocation32_spill] sm:$0xff] %v4058_v39  ;;  %v4066_v42 = vadd.f32 %v7082_v27, %v559_v23  ;;  %v4069_v43 = vrot.slane %v4027_v59, 1  ;;  %v4089_v54 = vrot.slane %v4032_v62, 2  ;;  %v3271_v23 = vld [vmem:[%s3956_s25 + $0x8] sm:$0xff] }
  0x27   : > { %7914 = vst [vmem:[#allocation33_spill] sm:$0xff] %v4062_v41  ;;  %7916 = vst [vmem:[#allocation35_spill] sm:$0xff] %v4074_v46  ;;  %v1338_v49 = vadd.f32 %v4062_v41, %v7087_v40  ;;  %v2060_v55 = vadd.f32 %v4056_v32, %v4032_v62  ;;  %v4101_v6 = vrot.slane %v4037_v1, 3  ;;  %v4112_v15 = vrot.slane %v4058_v39, 3  ;;  %v360_v40 = vld [vmem:[%s3911_s22 + $0x150] sm:$0xff] }
  0x28   : > { %v2179_v38 = vadd.f32 %v2123_v50, %v1794_v5  ;;  %7915 = vst [vmem:[#allocation34_spill] sm:$0xff] %v4069_v43  ;;  %7917 = vst [vmem:[#allocation36_spill] sm:$0xff] %v4078_v48  ;;  %v4084_v50 = vrot.slane %v4037_v1, 1  ;;  %v1202_v53 = vadd.f32 %v4053_v31, %v4066_v42  ;;  %v4098_v5 = vrot.slane %v4039_v2, 2 }
  0x29   : > { %7919 = vst [vmem:[#allocation38_spill] sm:$0xff] %v4089_v54  ;;  %v1402_v0 = vadd.f32 %v1338_v49, %v4043_v4  ;;  %7922 = vst [vmem:[#allocation41_spill] sm:$0xff] %v4101_v6  ;;  %v1731_v27 = vadd.f32 %v1667_v45, %v4069_v43  ;;  %v328_v49 = vld [vmem:[%s3911_s22 + $0x50] sm:$0xff]  ;;  %v7101_v20 = vrot.slane %v4058_v39, 4  ;;  %v2124_v45 = vadd.f32 %v2060_v55, %v4089_v54 }
  0x2a   : > { %v2564_v47 = vadd.f32 %v2516_v56, %v2179_v38  ;;  %7918 = vst [vmem:[#allocation37_spill] sm:$0xff] %v4084_v50  ;;  %v4094_v56 = vrot.slane %v4039_v2, 3  ;;  %7921 = vst [vmem:[#allocation40_spill] sm:$0xff] %v4098_v5  ;;  %v320_v38 = vld [vmem:[%s3911_s22 + $0x10] sm:$0xff]  ;;  %v1218_v44 = vadd.f32 %v1202_v53, %v4078_v48  ;;  %v4121_v48 = vadd.f32 %v3926_v10, %v3271_v23 }
  0x2b   : > { %7923 = vst [vmem:[#allocation42_spill] sm:$0xff] %v4112_v15  ;;  %v3046_v43 = vadd.f32 %v7101_v20, %v4112_v15  ;;  %v4131_v31 = vmul.f32 %v328_v49, %v328_v49  ;;  %v4137_v23 = vmul.f32 %v368_v24, %v368_v24  ;;  %v352_v20 = vld [vmem:[%s3911_s22 + $0x110] sm:$0xff] }
  0x2c   : > { %7920 = vst [vmem:[#allocation39_spill] sm:$0xff] %v4094_v56  ;;  %v2949_v60 = vadd.f32 %v2909_v57, %v2564_v47  ;;  %v2453_v57 = vadd.f32 %v4074_v46, %v4084_v50  ;;  %v2846_v52 = vadd.f32 %v4094_v56, %v4098_v5  ;;  %v1410_v53 = vadd.f32 %v1402_v0, %v1218_v44  ;;  %v336_v47 = vld [vmem:[%s3911_s22 + $0x90] sm:$0xff] }
  0x2d   : > { %7925 = vst [vmem:[#allocation44_spill] sm:$0xff] %v4131_v31  ;;  %v7926_v44 = vrot.slane %v4039_v2, 4  ;;  %v4135_v0 = vmul.f32 %v360_v40, %v360_v40  ;;  %7928 = vst [vmem:[#allocation46_spill] sm:$0xff] %v4137_v23  ;;  %v7938_v40 = vrot.slane %v4137_v23, 6 }
  0x2e   : > { %v3077_v21 = vadd.f32 %v3045_v61, %v2949_v60  ;;  %v4125_v61 = vmul.f32 %v320_v38, %v320_v38  ;;  %v2517_v34 = vadd.f32 %v2453_v57, %v4101_v6  ;;  %v1795_v29 = vadd.f32 %v1731_v27, %v1410_v53  ;;  %v344_v38 = vld [vmem:[%s3911_s22 + $0xd0] sm:$0xff] }
  0x2f   : > { %v2910_v55 = vadd.f32 %v2846_v52, %v7926_v44  ;;  %7927 = vst [vmem:[#allocation45_spill] sm:$0xff] %v4135_v0  ;;  %v4142_v57 = vmul.f32 %v376_v37, %v376_v37  ;;  %v552_v27 = vrot.slane %v4135_v0, 5  ;;  %v560_v53 = vrot.slane %v4137_v23, 5 }
  0x30   : > { %7924 = vst [vmem:[#allocation43_spill] sm:$0xff] %v4125_v61  ;;  %v3141_v60 = vadd.f32 1e-06, %v3077_v21  ;;  %v4140_v21 = vmul.f32 %v336_v47, %v336_v47  ;;  %v4145_v6 = vrot.slane %v4125_v61, 7  ;;  %v2180_v49 = vadd.f32 %v2124_v45, %v1795_v29 }
  0x31   : > { %7930 = vst [vmem:[#allocation48_spill] sm:$0xff] %v4142_v57  ;;  %v7108_v52 = vrot.slane %v4135_v0, 6  ;;  %v4156_v37 = vrot.slane %v4142_v57, 7  ;;  %v4158_v44 = vmul.f32 %v344_v38, %v344_v38  ;;  %v4161_v29 = vrot.slane %v4125_v61, 1 }
  0x32   : > { %3712 = vrsqrt.f32 %v3141_v60  ;;  %7929 = vst [vmem:[#allocation47_spill] sm:$0xff] %v4140_v21  ;;  %7931 = vst [vmem:[#allocation49_spill] sm:$0xff] %v4145_v6  ;;  %v4153_v60 = vrot.slane %v4137_v23, 7  ;;  %v2565_v47 = vadd.f32 %v2517_v34, %v2180_v49  ;;  %v4164_v45 = vrot.slane %v4131_v31, 1 }
  0x33   : > { %7933 = vst [vmem:[#allocation51_spill] sm:$0xff] %v4156_v37  ;;  %7934 = vst [vmem:[#allocation52_spill] sm:$0xff] %v4158_v44  ;;  %v4169_v24 = vadd.f32 %v7108_v52, %v552_v27  ;;  %v4173_v54 = vadd.f32 %v7938_v40, %v560_v53  ;;  %v7940_v34 = vrot.slane %v4142_v57, 6  ;;  %v1668_v49 = vadd.f32 %v4145_v6, %v4125_v61  ;;  %v369_v6 = vld [vmem:[%s3911_s22 + $0x198] sm:$0xff] }
  0x34   : > { %7932 = vst [vmem:[#allocation50_spill] sm:$0xff] %v4153_v60  ;;  %7935 = vst [vmem:[#allocation53_spill] sm:$0xff] %v4161_v29  ;;  %v2950_v17 = vadd.f32 %v2910_v55, %v2565_v47  ;;  %v4181_v22 = vrot.slane %v4140_v21, 1  ;;  %v4184_v27 = vrot.slane %v4131_v31, 2  ;;  %v4187_v52 = vrot.slane %v4140_v21, 2 }
  0x35   : > { %7936 = vst [vmem:[#allocation54_spill] sm:$0xff] %v4164_v45  ;;  %7937 = vst [vmem:[#allocation55_spill] sm:$0xff] %v4169_v24  ;;  %v1339_v38 = vadd.f32 %v4156_v37, %v7940_v34  ;;  %v1203_v53 = vadd.f32 %v4153_v60, %v4173_v54  ;;  %v2061_v34 = vadd.f32 %v4164_v45, %v4131_v31  ;;  %v4195_v55 = vrot.slane %v4140_v21, 3  ;;  %v321_v60 = vld [vmem:[%s3911_s22 + $0x18] sm:$0xff] }
  0x36   : > { %7939 = vst [vmem:[#allocation56_spill] sm:$0xff] %v4173_v54  ;;  %7941 = vst [vmem:[#allocation57_spill] sm:$0xff] %v4181_v22  ;;  %v3078_v47 = vadd.f32 %v3046_v43, %v2950_v17  ;;  %v4197_v23 = vmul.f32 %v352_v20, %v352_v20  ;;  %v4200_v3 = vrot.slane %v4158_v44, 2  ;;  %v4203_v13 = vrot.slane %v4158_v44, 3  ;;  %v329_v20 = vld [vmem:[%s3911_s22 + $0x58] sm:$0xff] }
  0x37   : > { %7942 = vst [vmem:[#allocation58_spill] sm:$0xff] %v4184_v27  ;;  %7943 = vst [vmem:[#allocation59_spill] sm:$0xff] %v4187_v52  ;;  %v1403_v40 = vadd.f32 %v1339_v38, %v4142_v57  ;;  %v1219_v38 = vadd.f32 %v1203_v53, %v4169_v24  ;;  %v1732_v0 = vadd.f32 %v1668_v49, %v4161_v29  ;;  %v337_v43 = vld [vmem:[%s3911_s22 + $0x98] sm:$0xff] }
  0x38   : > { %7944 = vst [vmem:[#allocation60_spill] sm:$0xff] %v4195_v55  ;;  %7945 = vst [vmem:[#allocation61_spill] sm:$0xff] %v4197_v23  ;;  %v2454_v45 = vadd.f32 %v4187_v52, %v4181_v22  ;;  %v3142_v54 = vadd.f32 1e-06, %v3078_v47  ;;  %v4214_v37 = vrot.slane %v4197_v23, 3  ;;  %v2847_v53 = vadd.f32 %v4203_v13, %v4200_v3  ;;  %v345_v49 = vld [vmem:[%s3911_s22 + $0xd8] sm:$0xff] }
  0x39   : > { %7946 = vst [vmem:[#allocation62_spill] sm:$0xff] %v4200_v3  ;;  %7947 = vst [vmem:[#allocation63_spill] sm:$0xff] %v4203_v13  ;;  %v361_v24 = vld [vmem:[%s3911_s22 + $0x158] sm:$0xff]  ;;  %v1411_v17 = vadd.f32 %v1403_v40, %v1219_v38  ;;  %v2125_v47 = vadd.f32 %v2061_v34, %v4184_v27  ;;  %v4232_v31 = vmul.f32 %v321_v60, %v321_v60  ;;  %v7950_v3 = vrot.slane %v4197_v23, 4  ;;  %v370_v23 = vld [vmem:[%s3911_s22 + $0x1a0] sm:$0xff] }
  0x3a   : > { %7948 = vst [vmem:[#allocation64_spill] sm:$0xff] %v4214_v37  ;;  %v2518_v52 = vadd.f32 %v2454_v45, %v4195_v55  ;;  %v353_v22 = vld [vmem:[%s3911_s22 + $0x118] sm:$0xff]  ;;  %3714 = vrsqrt.f32 %v3142_v54  ;;  %v4238_v15 = vmul.f32 %v329_v20, %v329_v20  ;;  %v7952_v40 = vrot.slane %v4158_v44, 4  ;;  %v378_v44 = vld [vmem:[%s3911_s22 + $0x1e0] sm:$0xff] }
  0x3b   : > { %v377_v21 = vld [vmem:[%s3911_s22 + $0x1d8] sm:$0xff]  ;;  %7949 = vst [vmem:[#allocation65_spill] sm:$0xff] %v4232_v31  ;;  %v3047_v61 = vadd.f32 %v7950_v3, %v4214_v37  ;;  %v1796_v56 = vadd.f32 %v1732_v0, %v1411_v17  ;;  %v4242_v38 = vmul.f32 %v337_v43, %v337_v43  ;;  %v4244_v45 = vmul.f32 %v361_v24, %v361_v24  ;;  %v354_v37 = vld [vmem:[%s3911_s22 + $0x120] sm:$0xff] }
  0x3c   : > { %v3713_v29 = vpop.eup %3712  ;;  %7951 = vst [vmem:[#allocation66_spill] sm:$0xff] %v4238_v15  ;;  %v2911_v34 = vadd.f32 %v2847_v53, %v7952_v40  ;;  %v4247_v60 = vmul.f32 %v345_v49, %v345_v49  ;;  %v4249_v55 = vmul.f32 %v353_v22, %v353_v22  ;;  %v4253_v54 = vmul.f32 %v377_v21, %v377_v21 }
  0x3d   : > { %v3399_v13 = vmul.f32 %v3713_v29, %v4025_v58  ;;  %7953 = vst [vmem:[#allocation67_spill] sm:$0xff] %v4242_v38  ;;  %7954 = vst [vmem:[#allocation68_spill] sm:$0xff] %v4244_v45  ;;  %v4251_v58 = vmul.f32 %v369_v6, %v369_v6  ;;  %v2181_v3 = vadd.f32 %v2125_v47, %v1796_v56  ;;  %v553_v29 = vrot.slane %v4244_v45, 5 }
  0x3e   : > { %7955 = vst [vmem:[#allocation69_spill] sm:$0xff] %v4247_v60  ;;  %7956 = vst [vmem:[#allocation70_spill] sm:$0xff] %v4249_v55  ;;  %v7152_v0 = vrot.slane %v4244_v45, 6  ;;  %v4258_v17 = vrot.slane %v4232_v31, 7  ;;  %v4266_v22 = vrot.slane %v4238_v15, 1  ;;  %v7153_v56 = vrot.slane %v4253_v54, 6 }
  0x3f   : > { %3463 = vst [vmem:[%s4225_s28] sm:$0xff] %v3399_v13  ;;  %7957 = vst [vmem:[#allocation71_spill] sm:$0xff] %v4251_v58  ;;  %v561_v24 = vrot.slane %v4251_v58, 5  ;;  %v7151_v13 = vrot.slane %v4251_v58, 6  ;;  %v4263_v20 = vrot.slane %v4251_v58, 7  ;;  %v2566_v6 = vadd.f32 %v2518_v52, %v2181_v3 }
  0x40   : > { %7958 = vst [vmem:[#allocation72_spill] sm:$0xff] %v4253_v54  ;;  %7959 = vst [vmem:[#allocation73_spill] sm:$0xff] %v4258_v17  ;;  %v4270_v21 = vrot.slane %v4253_v54, 7  ;;  %v4273_v43 = vrot.slane %v4232_v31, 1  ;;  %v4277_v53 = vadd.f32 %v7152_v0, %v553_v29  ;;  %v1669_v52 = vadd.f32 %v4258_v17, %v4232_v31  ;;  %v362_v31 = vld [vmem:[%s3911_s22 + $0x160] sm:$0xff] }
  0x41   : > { %7960 = vst [vmem:[#allocation74_spill] sm:$0xff] %v4263_v20  ;;  %7961 = vst [vmem:[#allocation75_spill] sm:$0xff] %v4266_v22  ;;  %v4281_v49 = vadd.f32 %v7151_v13, %v561_v24  ;;  %v4286_v47 = vrot.slane %v4242_v38, 2  ;;  %v2951_v40 = vadd.f32 %v2911_v34, %v2566_v6  ;;  %v4292_v27 = vrot.slane %v4242_v38, 1 }
  0x42   : > { %7962 = vst [vmem:[#allocation76_spill] sm:$0xff] %v4270_v21  ;;  %7963 = vst [vmem:[#allocation77_spill] sm:$0xff] %v4273_v43  ;;  %v1340_v3 = vadd.f32 %v4270_v21, %v7153_v56  ;;  %v4295_v29 = vrot.slane %v4238_v15, 2  ;;  %v2062_v13 = vadd.f32 %v4266_v22, %v4238_v15  ;;  %v4302_v34 = vrot.slane %v4242_v38, 3  ;;  %v3272_v56 = vld [vmem:[%s3956_s25 + $0x10] sm:$0xff]  ;;  %v346_v15 = vld [vmem:[%s3911_s22 + $0xe0] sm:$0xff] }
  0x43   : > { %7964 = vst [vmem:[#allocation78_spill] sm:$0xff] %v4277_v53  ;;  %7965 = vst [vmem:[#allocation79_spill] sm:$0xff] %v4281_v49  ;;  %v1204_v24 = vadd.f32 %v4263_v20, %v4281_v49  ;;  %v4305_v6 = vrot.slane %v4247_v60, 3  ;;  %v3079_v0 = vadd.f32 %v3047_v61, %v2951_v40  ;;  %v1733_v45 = vadd.f32 %v1669_v52, %v4273_v43  ;;  %v330_v52 = vld [vmem:[%s3911_s22 + $0x60] sm:$0xff] }
  0x44   : > { %7966 = vst [vmem:[#allocation80_spill] sm:$0xff] %v4286_v47  ;;  %7967 = vst [vmem:[#allocation81_spill] sm:$0xff] %v4292_v27  ;;  %v1404_v58 = vadd.f32 %v1340_v3, %v4253_v54  ;;  %v4311_v20 = vrot.slane %v4247_v60, 2  ;;  %v3715_v49 = vpop.eup %3714  ;;  %v4315_v38 = vrot.slane %v4249_v55, 3  ;;  %v2455_v61 = vadd.f32 %v4286_v47, %v4292_v27  ;;  %v322_v3 = vld [vmem:[%s3911_s22 + $0x20] sm:$0xff] }
  0x45   : > { %7968 = vst [vmem:[#allocation82_spill] sm:$0xff] %v4295_v29  ;;  %7969 = vst [vmem:[#allocation83_spill] sm:$0xff] %v4302_v34  ;;  %v1220_v22 = vadd.f32 %v1204_v24, %v4277_v53  ;;  %v3400_v43 = vmul.f32 %v3715_v49, %v4121_v48  ;;  %v3143_v21 = vadd.f32 1e-06, %v3079_v0  ;;  %v7190_v17 = vrot.slane %v4249_v55, 4  ;;  %v338_v53 = vld [vmem:[%s3911_s22 + $0xa0] sm:$0xff] }
  0x46   : > { %7970 = vst [vmem:[#allocation84_spill] sm:$0xff] %v4305_v6  ;;  %7971 = vst [vmem:[#allocation85_spill] sm:$0xff] %v4311_v20  ;;  %v2848_v24 = vadd.f32 %v4305_v6, %v4311_v20  ;;  %v3337_v47 = vadd.f32 %v3926_v10, %v3272_v56  ;;  %v2126_v40 = vadd.f32 %v2062_v13, %v4295_v29  ;;  %v7973_v48 = vrot.slane %v4247_v60, 4  ;;  %v355_v55 = vld [vmem:[%s3911_s22 + $0x128] sm:$0xff] }
  0x47   : > { %7972 = vst [vmem:[#allocation86_spill] sm:$0xff] %v4315_v38  ;;  %v1412_v27 = vadd.f32 %v1404_v58, %v1220_v22  ;;  %v2519_v54 = vadd.f32 %v2455_v61, %v4302_v34  ;;  %3464 = vst [vmem:[%s4225_s28 + $0x8] sm:$0xff] %v3400_v43  ;;  %3716 = vrsqrt.f32 %v3143_v21  ;;  %v3048_v49 = vadd.f32 %v7190_v17, %v4315_v38  ;;  %v371_v20 = vld [vmem:[%s3911_s22 + $0x1a8] sm:$0xff] }
  0x48   : > { %v2912_v0 = vadd.f32 %v2848_v24, %v7973_v48  ;;  %v4341_v6 = vmul.f32 %v322_v3, %v322_v3  ;;  %v4343_v58 = vmul.f32 %v330_v52, %v330_v52  ;;  %v4345_v13 = vmul.f32 %v338_v53, %v338_v53  ;;  %v379_v60 = vld [vmem:[%s3911_s22 + $0x1e8] sm:$0xff] }
  0x49   : > { %v1797_v56 = vadd.f32 %v1733_v45, %v1412_v27  ;;  %v4347_v22 = vmul.f32 %v362_v31, %v362_v31  ;;  %v4349_v61 = vmul.f32 %v346_v15, %v346_v15  ;;  %v4351_v43 = vmul.f32 %v354_v37, %v354_v37 }
  0x4a   : > { %7974 = vst [vmem:[#allocation87_spill] sm:$0xff] %v4341_v6  ;;  %7975 = vst [vmem:[#allocation88_spill] sm:$0xff] %v4343_v58  ;;  %v4353_v21 = vmul.f32 %v370_v23, %v370_v23  ;;  %v4355_v24 = vmul.f32 %v378_v44, %v378_v44  ;;  %v4360_v27 = vrot.slane %v4341_v6, 7  ;;  %v4368_v23 = vrot.slane %v4343_v58, 1 }
  0x4b   : > { %7976 = vst [vmem:[#allocation89_spill] sm:$0xff] %v4345_v13  ;;  %7977 = vst [vmem:[#allocation90_spill] sm:$0xff] %v4347_v22  ;;  %v2182_v48 = vadd.f32 %v2126_v40, %v1797_v56  ;;  %v554_v17 = vrot.slane %v4347_v22, 5  ;;  %v7198_v3 = vrot.slane %v4347_v22, 6  ;;  %v4375_v40 = vrot.slane %v4341_v6, 1 }
  0x4c   : > { %7978 = vst [vmem:[#allocation91_spill] sm:$0xff] %v4349_v61  ;;  %7979 = vst [vmem:[#allocation92_spill] sm:$0xff] %v4351_v43  ;;  %v562_v45 = vrot.slane %v4353_v21, 5  ;;  %v7197_v31 = vrot.slane %v4353_v21, 6  ;;  %v4365_v15 = vrot.slane %v4353_v21, 7  ;;  %v4372_v53 = vrot.slane %v4355_v24, 7 }
  0x4d   : > { %7980 = vst [vmem:[#allocation93_spill] sm:$0xff] %v4353_v21  ;;  %7981 = vst [vmem:[#allocation94_spill] sm:$0xff] %v4355_v24  ;;  %v2567_v37 = vadd.f32 %v2519_v54, %v2182_v48  ;;  %v4379_v52 = vadd.f32 %v7198_v3, %v554_v17  ;;  %v1670_v54 = vadd.f32 %v4360_v27, %v4341_v6  ;;  %v4388_v48 = vrot.slane %v4345_v13, 2  ;;  %v3273_v3 = vld [vmem:[%s3956_s25 + $0x18] sm:$0xff]  ;;  %v363_v6 = vld [vmem:[%s3911_s22 + $0x168] sm:$0xff] }
  0x4e   : > { %7982 = vst [vmem:[#allocation95_spill] sm:$0xff] %v4360_v27  ;;  %7983 = vst [vmem:[#allocation96_spill] sm:$0xff] %v4365_v15  ;;  %v4383_v56 = vadd.f32 %v7197_v31, %v562_v45  ;;  %v7990_v34 = vrot.slane %v4355_v24, 6  ;;  %v4394_v38 = vrot.slane %v4345_v13, 1  ;;  %v4397_v17 = vrot.slane %v4343_v58, 2 }
  0x4f   : > { %7984 = vst [vmem:[#allocation97_spill] sm:$0xff] %v4368_v23  ;;  %7985 = vst [vmem:[#allocation98_spill] sm:$0xff] %v4372_v53  ;;  %v2952_v44 = vadd.f32 %v2912_v0, %v2567_v37  ;;  %v2063_v31 = vadd.f32 %v4368_v23, %v4343_v58  ;;  %v4404_v0 = vrot.slane %v4345_v13, 3  ;;  %v4407_v37 = vrot.slane %v4349_v61, 3  ;;  %v347_v58 = vld [vmem:[%s3911_s22 + $0xe8] sm:$0xff] }
  0x50   : > { %7986 = vst [vmem:[#allocation99_spill] sm:$0xff] %v4375_v40  ;;  %7987 = vst [vmem:[#allocation100_spill] sm:$0xff] %v4379_v52  ;;  %v1341_v29 = vadd.f32 %v4372_v53, %v7990_v34  ;;  %v1205_v45 = vadd.f32 %v4365_v15, %v4383_v56  ;;  %v1734_v22 = vadd.f32 %v1670_v54, %v4375_v40  ;;  %v4413_v15 = vrot.slane %v4349_v61, 2  ;;  %v331_v54 = vld [vmem:[%s3911_s22 + $0x68] sm:$0xff] }
  0x51   : > { %7988 = vst [vmem:[#allocation101_spill] sm:$0xff] %v4383_v56  ;;  %7989 = vst [vmem:[#allocation102_spill] sm:$0xff] %v4388_v48  ;;  %v3080_v34 = vadd.f32 %v3048_v49, %v2952_v44  ;;  %v3717_v56 = vpop.eup %3716  ;;  %v4417_v53 = vrot.slane %v4351_v43, 3  ;;  %v2456_v49 = vadd.f32 %v4388_v48, %v4394_v38  ;;  %v7235_v27 = vrot.slane %v4351_v43, 4  ;;  %v372_v43 = vld [vmem:[%s3911_s22 + $0x1b0] sm:$0xff] }
  0x52   : > { %7991 = vst [vmem:[#allocation103_spill] sm:$0xff] %v4394_v38  ;;  %7992 = vst [vmem:[#allocation104_spill] sm:$0xff] %v4397_v17  ;;  %v1405_v21 = vadd.f32 %v1341_v29, %v4355_v24  ;;  %v1221_v23 = vadd.f32 %v1205_v45, %v4379_v52  ;;  %v323_v29 = vld [vmem:[%s3911_s22 + $0x28] sm:$0xff]  ;;  %v3401_v40 = vmul.f32 %v3717_v56, %v3337_v47  ;;  %v7997_v47 = vrot.slane %v4349_v61, 4  ;;  %v380_v61 = vld [vmem:[%s3911_s22 + $0x1f0] sm:$0xff] }
  0x53   : > { %7993 = vst [vmem:[#allocation105_spill] sm:$0xff] %v4404_v0  ;;  %7994 = vst [vmem:[#allocation106_spill] sm:$0xff] %v4407_v37  ;;  %v3144_v13 = vadd.f32 1e-06, %v3080_v34  ;;  %v2849_v45 = vadd.f32 %v4407_v37, %v4413_v15  ;;  %v339_v52 = vld [vmem:[%s3911_s22 + $0xa8] sm:$0xff]  ;;  %v3338_v24 = vadd.f32 %v3926_v10, %v3273_v3  ;;  %v2127_v38 = vadd.f32 %v2063_v31, %v4397_v17 }
  0x54   : > { %7995 = vst [vmem:[#allocation107_spill] sm:$0xff] %v4413_v15  ;;  %7996 = vst [vmem:[#allocation108_spill] sm:$0xff] %v4417_v53  ;;  %v1413_v48 = vadd.f32 %v1405_v21, %v1221_v23  ;;  %v2520_v44 = vadd.f32 %v2456_v49, %v4404_v0  ;;  %v3049_v34 = vadd.f32 %v7235_v27, %v4417_v53  ;;  %v356_v15 = vld [vmem:[%s3911_s22 + $0x130] sm:$0xff] }
  0x55   : > { %3465 = vst [vmem:[%s4225_s28 + $0x10] sm:$0xff] %v3401_v40  ;;  %3718 = vrsqrt.f32 %v3144_v13  ;;  %v2913_v56 = vadd.f32 %v2849_v45, %v7997_v47  ;;  %v4442_v37 = vmul.f32 %v323_v29, %v323_v29  ;;  %v4444_v21 = vmul.f32 %v331_v54, %v331_v54 }
  0x56   : > { %v1798_v3 = vadd.f32 %v1734_v22, %v1413_v48  ;;  %v4446_v31 = vmul.f32 %v339_v52, %v339_v52  ;;  %v4448_v23 = vmul.f32 %v363_v6, %v363_v6  ;;  %v4450_v49 = vmul.f32 %v347_v58, %v347_v58 }
  0x57   : > { %7998 = vst [vmem:[#allocation109_spill] sm:$0xff] %v4442_v37  ;;  %7999 = vst [vmem:[#allocation110_spill] sm:$0xff] %v4444_v21  ;;  %v4452_v40 = vmul.f32 %v355_v55, %v355_v55  ;;  %v4454_v13 = vmul.f32 %v371_v20, %v371_v20  ;;  %v4456_v45 = vmul.f32 %v379_v60, %v379_v60  ;;  %v4461_v22 = vrot.slane %v4442_v37, 7 }
  0x58   : > { %8000 = vst [vmem:[#allocation111_spill] sm:$0xff] %v4446_v31  ;;  %8001 = vst [vmem:[#allocation112_spill] sm:$0xff] %v4448_v23  ;;  %v2183_v47 = vadd.f32 %v2127_v38, %v1798_v3  ;;  %v555_v27 = vrot.slane %v4448_v23, 5  ;;  %v7243_v29 = vrot.slane %v4448_v23, 6  ;;  %v4469_v55 = vrot.slane %v4444_v21, 1 }
  0x59   : > { %8002 = vst [vmem:[#allocation113_spill] sm:$0xff] %v4450_v49  ;;  %8003 = vst [vmem:[#allocation114_spill] sm:$0xff] %v4452_v40  ;;  %v563_v52 = vrot.slane %v4454_v13, 5  ;;  %v7242_v6 = vrot.slane %v4454_v13, 6  ;;  %v4466_v58 = vrot.slane %v4454_v13, 7  ;;  %v4473_v20 = vrot.slane %v4456_v45, 7 }
  0x5a   : > { %8004 = vst [vmem:[#allocation115_spill] sm:$0xff] %v4454_v13  ;;  %8005 = vst [vmem:[#allocation116_spill] sm:$0xff] %v4456_v45  ;;  %v2568_v60 = vadd.f32 %v2520_v44, %v2183_v47  ;;  %v4476_v48 = vrot.slane %v4442_v37, 1  ;;  %v4480_v54 = vadd.f32 %v7243_v29, %v555_v27  ;;  %v1671_v44 = vadd.f32 %v4461_v22, %v4442_v37  ;;  %v3274_v29 = vld [vmem:[%s3956_s25 + $0x20] sm:$0xff]  ;;  %v364_v37 = vld [vmem:[%s3911_s22 + $0x170] sm:$0xff] }
  0x5b   : > { %8006 = vst [vmem:[#allocation117_spill] sm:$0xff] %v4461_v22  ;;  %8007 = vst [vmem:[#allocation118_spill] sm:$0xff] %v4466_v58  ;;  %v4484_v3 = vadd.f32 %v7242_v6, %v563_v52  ;;  %v4489_v47 = vrot.slane %v4446_v31, 2  ;;  %v8014_v0 = vrot.slane %v4456_v45, 6  ;;  %v4495_v53 = vrot.slane %v4446_v31, 1 }
  0x5c   : > { %8008 = vst [vmem:[#allocation119_spill] sm:$0xff] %v4469_v55  ;;  %8009 = vst [vmem:[#allocation120_spill] sm:$0xff] %v4473_v20  ;;  %v2953_v38 = vadd.f32 %v2913_v56, %v2568_v60  ;;  %v4498_v27 = vrot.slane %v4444_v21, 2  ;;  %v2064_v6 = vadd.f32 %v4469_v55, %v4444_v21  ;;  %v4505_v56 = vrot.slane %v4446_v31, 3  ;;  %v348_v21 = vld [vmem:[%s3911_s22 + $0xf0] sm:$0xff] }
  0x5d   : > { %8010 = vst [vmem:[#allocation121_spill] sm:$0xff] %v4476_v48  ;;  %8011 = vst [vmem:[#allocation122_spill] sm:$0xff] %v4480_v54  ;;  %v1342_v17 = vadd.f32 %v4473_v20, %v8014_v0  ;;  %v1206_v52 = vadd.f32 %v4466_v58, %v4484_v3  ;;  %v4508_v60 = vrot.slane %v4450_v49, 3  ;;  %v1735_v23 = vadd.f32 %v1671_v44, %v4476_v48  ;;  %v332_v44 = vld [vmem:[%s3911_s22 + $0x70] sm:$0xff] }
  0x5e   : > { %8012 = vst [vmem:[#allocation123_spill] sm:$0xff] %v4484_v3  ;;  %8013 = vst [vmem:[#allocation124_spill] sm:$0xff] %v4489_v47  ;;  %v3081_v0 = vadd.f32 %v3049_v34, %v2953_v38  ;;  %v4514_v58 = vrot.slane %v4450_v49, 2  ;;  %v4518_v31 = vrot.slane %v4452_v40, 3  ;;  %v2457_v34 = vadd.f32 %v4489_v47, %v4495_v53 }
  0x5f   : > { %8015 = vst [vmem:[#allocation125_spill] sm:$0xff] %v4495_v53  ;;  %8016 = vst [vmem:[#allocation126_spill] sm:$0xff] %v4498_v27  ;;  %v1406_v13 = vadd.f32 %v1342_v17, %v4456_v45  ;;  %v3719_v3 = vpop.eup %3718  ;;  %v1222_v55 = vadd.f32 %v1206_v52, %v4480_v54  ;;  %v324_v17 = vld [vmem:[%s3911_s22 + $0x30] sm:$0xff]  ;;  %v7280_v22 = vrot.slane %v4452_v40, 4  ;;  %v3339_v45 = vadd.f32 %v3926_v10, %v3274_v29 }
  0x60   : > { %8017 = vst [vmem:[#allocation127_spill] sm:$0xff] %v4505_v56  ;;  %8018 = vst [vmem:[#allocation128_spill] sm:$0xff] %v4508_v60  ;;  %v3402_v48 = vmul.f32 %v3719_v3, %v3338_v24  ;;  %v3145_v20 = vadd.f32 1e-06, %v3081_v0  ;;  %v2850_v52 = vadd.f32 %v4508_v60, %v4514_v58  ;;  %v340_v54 = vld [vmem:[%s3911_s22 + $0xb0] sm:$0xff]  ;;  %v2128_v53 = vadd.f32 %v2064_v6, %v4498_v27 }
  0x61   : > { %8019 = vst [vmem:[#allocation129_spill] sm:$0xff] %v4514_v58  ;;  %8020 = vst [vmem:[#allocation130_spill] sm:$0xff] %v4518_v31  ;;  %v1414_v47 = vadd.f32 %v1406_v13, %v1222_v55  ;;  %v2521_v38 = vadd.f32 %v2457_v34, %v4505_v56  ;;  %v8021_v24 = vrot.slane %v4450_v49, 4  ;;  %v3050_v0 = vadd.f32 %v7280_v22, %v4518_v31  ;;  %v373_v58 = vld [vmem:[%s3911_s22 + $0x1b8] sm:$0xff] }
  0x62   : > { %3466 = vst [vmem:[%s4225_s28 + $0x18] sm:$0xff] %v3402_v48  ;;  %3720 = vrsqrt.f32 %v3145_v20  ;;  %v4543_v60 = vmul.f32 %v324_v17, %v324_v17  ;;  %v4545_v13 = vmul.f32 %v332_v44, %v332_v44  ;;  %v4547_v6 = vmul.f32 %v340_v54, %v340_v54 }
  0x63   : > { %v2914_v3 = vadd.f32 %v2850_v52, %v8021_v24  ;;  %v1799_v29 = vadd.f32 %v1735_v23, %v1414_v47  ;;  %v4549_v55 = vmul.f32 %v364_v37, %v364_v37  ;;  %v4551_v34 = vmul.f32 %v348_v21, %v348_v21 }
  0x64   : > { %8022 = vst [vmem:[#allocation131_spill] sm:$0xff] %v4543_v60  ;;  %8023 = vst [vmem:[#allocation132_spill] sm:$0xff] %v4545_v13  ;;  %v4553_v48 = vmul.f32 %v356_v15, %v356_v15  ;;  %v4555_v20 = vmul.f32 %v372_v43, %v372_v43  ;;  %v4557_v52 = vmul.f32 %v380_v61, %v380_v61  ;;  %v4562_v23 = vrot.slane %v4543_v60, 7 }
  0x65   : > { %8024 = vst [vmem:[#allocation133_spill] sm:$0xff] %v4547_v6  ;;  %8025 = vst [vmem:[#allocation134_spill] sm:$0xff] %v4549_v55  ;;  %v2184_v24 = vadd.f32 %v2128_v53, %v1799_v29  ;;  %v556_v22 = vrot.slane %v4549_v55, 5  ;;  %v7288_v17 = vrot.slane %v4549_v55, 6  ;;  %v4570_v43 = vrot.slane %v4545_v13, 1 }
  0x66   : > { %8026 = vst [vmem:[#allocation135_spill] sm:$0xff] %v4551_v34  ;;  %8027 = vst [vmem:[#allocation136_spill] sm:$0xff] %v4553_v48  ;;  %v564_v54 = vrot.slane %v4555_v20, 5  ;;  %v7287_v37 = vrot.slane %v4555_v20, 6  ;;  %v4567_v21 = vrot.slane %v4555_v20, 7  ;;  %v4574_v53 = vrot.slane %v4557_v52, 7 }
  0x67   : > { %8028 = vst [vmem:[#allocation137_spill] sm:$0xff] %v4555_v20  ;;  %8029 = vst [vmem:[#allocation138_spill] sm:$0xff] %v4557_v52  ;;  %v2569_v61 = vadd.f32 %v2521_v38, %v2184_v24  ;;  %v4577_v47 = vrot.slane %v4543_v60, 1  ;;  %v4581_v44 = vadd.f32 %v7288_v17, %v556_v22  ;;  %v1672_v38 = vadd.f32 %v4562_v23, %v4543_v60  ;;  %v3275_v17 = vld [vmem:[%s3956_s25 + $0x28] sm:$0xff] }
  0x68   : > { %8030 = vst [vmem:[#allocation139_spill] sm:$0xff] %v4562_v23  ;;  %8031 = vst [vmem:[#allocation140_spill] sm:$0xff] %v4567_v21  ;;  %v4585_v29 = vadd.f32 %v7287_v37, %v564_v54  ;;  %v4590_v24 = vrot.slane %v4547_v6, 2  ;;  %v8038_v56 = vrot.slane %v4557_v52, 6  ;;  %v4596_v31 = vrot.slane %v4547_v6, 1 }
  0x69   : > { %8032 = vst [vmem:[#allocation141_spill] sm:$0xff] %v4570_v43  ;;  %8033 = vst [vmem:[#allocation142_spill] sm:$0xff] %v4574_v53  ;;  %v2954_v15 = vadd.f32 %v2914_v3, %v2569_v61  ;;  %v4599_v22 = vrot.slane %v4545_v13, 2  ;;  %v4604_v37 = vrot.slane %v4551_v34, 2  ;;  %v2065_v3 = vadd.f32 %v4570_v43, %v4545_v13  ;;  %v365_v13 = vld [vmem:[%s3911_s22 + $0x178] sm:$0xff] }
  0x6a   : > { %8034 = vst [vmem:[#allocation143_spill] sm:$0xff] %v4577_v47  ;;  %8035 = vst [vmem:[#allocation144_spill] sm:$0xff] %v4581_v44  ;;  %v1343_v27 = vadd.f32 %v4574_v53, %v8038_v56  ;;  %v1207_v54 = vadd.f32 %v4567_v21, %v4585_v29  ;;  %v4609_v61 = vrot.slane %v4551_v34, 3  ;;  %v1736_v55 = vadd.f32 %v1672_v38, %v4577_v47 }
  0x6b   : > { %8036 = vst [vmem:[#allocation145_spill] sm:$0xff] %v4585_v29  ;;  %8037 = vst [vmem:[#allocation146_spill] sm:$0xff] %v4590_v24  ;;  %v3082_v56 = vadd.f32 %v3050_v0, %v2954_v15  ;;  %v4615_v21 = vrot.slane %v4547_v6, 3  ;;  %v4619_v43 = vrot.slane %v4553_v48, 3  ;;  %v2458_v0 = vadd.f32 %v4590_v24, %v4596_v31  ;;  %v3276_v15 = vld [vmem:[%s3956_s25 + $0x30] sm:$0xff] }
  0x6c   : > { %8039 = vst [vmem:[#allocation147_spill] sm:$0xff] %v4596_v31  ;;  %8040 = vst [vmem:[#allocation148_spill] sm:$0xff] %v4599_v22  ;;  %v1407_v20 = vadd.f32 %v1343_v27, %v4557_v52  ;;  %v3721_v29 = vpop.eup %3720  ;;  %v1223_v53 = vadd.f32 %v1207_v54, %v4581_v44  ;;  %v7323_v6 = vrot.slane %v4553_v48, 4  ;;  %v2851_v23 = vadd.f32 %v4609_v61, %v4604_v37  ;;  %v325_v54 = vld [vmem:[%s3911_s22 + $0x38] sm:$0xff] }
  0x6d   : > { %8041 = vst [vmem:[#allocation149_spill] sm:$0xff] %v4604_v37  ;;  %8042 = vst [vmem:[#allocation150_spill] sm:$0xff] %v4609_v61  ;;  %v3403_v38 = vmul.f32 %v3721_v29, %v3339_v45  ;;  %v3146_v47 = vadd.f32 1e-06, %v3082_v56  ;;  %v333_v44 = vld [vmem:[%s3911_s22 + $0x78] sm:$0xff]  ;;  %v3340_v60 = vadd.f32 %v3926_v10, %v3275_v17  ;;  %v2129_v24 = vadd.f32 %v2065_v3, %v4599_v22 }
  0x6e   : > { %8043 = vst [vmem:[#allocation151_spill] sm:$0xff] %v4615_v21  ;;  %8044 = vst [vmem:[#allocation152_spill] sm:$0xff] %v4619_v43  ;;  %v1415_v52 = vadd.f32 %v1407_v20, %v1223_v53  ;;  %v341_v31 = vld [vmem:[%s3911_s22 + $0xb8] sm:$0xff]  ;;  %v2522_v45 = vadd.f32 %v2458_v0, %v4615_v21  ;;  %v3051_v29 = vadd.f32 %v7323_v6, %v4619_v43  ;;  %v8048_v3 = vrot.slane %v4551_v34, 4 }
  0x6f   : > { %v381_v27 = vld [vmem:[%s3911_s22 + $0x1f8] sm:$0xff]  ;;  %3467 = vst [vmem:[%s4225_s28 + $0x20] sm:$0xff] %v3403_v38  ;;  %3722 = vrsqrt.f32 %v3146_v47  ;;  %v4642_v56 = vadd.f32 %v3926_v10, %v3276_v15  ;;  %v4644_v17 = vmul.f32 %v325_v54, %v325_v54  ;;  %v4646_v20 = vmul.f32 %v333_v44, %v333_v44 }
  0x70   : > { %v1800_v61 = vadd.f32 %v1736_v55, %v1415_v52  ;;  %v4648_v53 = vmul.f32 %v365_v13, %v365_v13  ;;  %v2915_v38 = vadd.f32 %v2851_v23, %v8048_v3  ;;  %v349_v47 = vld [vmem:[%s3911_s22 + $0xf8] sm:$0xff]  ;;  %v4653_v0 = vmul.f32 %v341_v31, %v341_v31 }
  0x71   : > { %8045 = vst [vmem:[#allocation153_spill] sm:$0xff] %v4644_v17  ;;  %8046 = vst [vmem:[#allocation154_spill] sm:$0xff] %v4646_v20  ;;  %v4655_v21 = vmul.f32 %v373_v58, %v373_v58  ;;  %v4657_v6 = vmul.f32 %v381_v27, %v381_v27  ;;  %v4661_v52 = vrot.slane %v4644_v17, 7  ;;  %v4664_v13 = vrot.slane %v4646_v20, 1  ;;  %v357_v3 = vld [vmem:[%s3911_s22 + $0x138] sm:$0xff] }
  0x72   : > { %8047 = vst [vmem:[#allocation155_spill] sm:$0xff] %v4648_v53  ;;  %8049 = vst [vmem:[#allocation156_spill] sm:$0xff] %v4653_v0  ;;  %v2185_v15 = vadd.f32 %v2129_v24, %v1800_v61  ;;  %v557_v55 = vrot.slane %v4648_v53, 5  ;;  %v4672_v54 = vmul.f32 %v349_v47, %v349_v47  ;;  %v4684_v23 = vrot.slane %v4644_v17, 1 }
  0x73   : > { %8050 = vst [vmem:[#allocation157_spill] sm:$0xff] %v4655_v21  ;;  %8051 = vst [vmem:[#allocation158_spill] sm:$0xff] %v4657_v6  ;;  %v565_v44 = vrot.slane %v4655_v21, 5  ;;  %v7330_v31 = vrot.slane %v4655_v21, 6  ;;  %v4670_v58 = vrot.slane %v4655_v21, 7  ;;  %v7337_v24 = vrot.slane %v4657_v6, 6 }
  0x74   : > { %8052 = vst [vmem:[#allocation159_spill] sm:$0xff] %v4661_v52  ;;  %8053 = vst [vmem:[#allocation160_spill] sm:$0xff] %v4664_v13  ;;  %v2570_v27 = vadd.f32 %v2522_v45, %v2185_v15  ;;  %v4676_v61 = vrot.slane %v4657_v6, 7  ;;  %v1673_v43 = vadd.f32 %v4661_v52, %v4644_v17  ;;  %v4689_v45 = vrot.slane %v4653_v0, 2 }
  0x75   : > { %8054 = vst [vmem:[#allocation161_spill] sm:$0xff] %v4670_v58  ;;  %8055 = vst [vmem:[#allocation162_spill] sm:$0xff] %v4672_v54  ;;  %v4681_v22 = vadd.f32 %v7330_v31, %v565_v44  ;;  %v4695_v37 = vrot.slane %v4646_v20, 2  ;;  %v2066_v44 = vadd.f32 %v4664_v13, %v4646_v20  ;;  %v8061_v31 = vrot.slane %v4648_v53, 6 }
  0x76   : > { %8056 = vst [vmem:[#allocation163_spill] sm:$0xff] %v4676_v61  ;;  %8058 = vst [vmem:[#allocation165_spill] sm:$0xff] %v4684_v23  ;;  %v2955_v47 = vadd.f32 %v2915_v38, %v2570_v27  ;;  %v1344_v15 = vadd.f32 %v4676_v61, %v7337_v24  ;;  %v4706_v17 = vrot.slane %v4653_v0, 1  ;;  %v4709_v38 = vrot.slane %v4672_v54, 3 }
  0x77   : > { %8057 = vst [vmem:[#allocation164_spill] sm:$0xff] %v4681_v22  ;;  %8059 = vst [vmem:[#allocation166_spill] sm:$0xff] %v4689_v45  ;;  %v4701_v21 = vadd.f32 %v8061_v31, %v557_v55  ;;  %v1208_v52 = vadd.f32 %v4670_v58, %v4681_v22  ;;  %v4711_v24 = vmul.f32 %v357_v3, %v357_v3  ;;  %v4715_v53 = vrot.slane %v4672_v54, 2 }
  0x78   : > { %8060 = vst [vmem:[#allocation167_spill] sm:$0xff] %v4695_v37  ;;  %8063 = vst [vmem:[#allocation169_spill] sm:$0xff] %v4706_v17  ;;  %v3083_v27 = vadd.f32 %v3051_v29, %v2955_v47  ;;  %v1408_v61 = vadd.f32 %v1344_v15, %v4657_v6  ;;  %v1737_v58 = vadd.f32 %v1673_v43, %v4684_v23  ;;  %v4720_v13 = vrot.slane %v4653_v0, 3  ;;  %v3277_v43 = vld [vmem:[%s3956_s25 + $0x38] sm:$0xff] }
  0x79   : > { %8062 = vst [vmem:[#allocation168_spill] sm:$0xff] %v4701_v21  ;;  %8064 = vst [vmem:[#allocation170_spill] sm:$0xff] %v4709_v38  ;;  %v3723_v55 = vpop.eup %3722  ;;  %v1224_v31 = vadd.f32 %v1208_v52, %v4701_v21  ;;  %v2459_v29 = vadd.f32 %v4689_v45, %v4706_v17  ;;  %v2130_v22 = vadd.f32 %v2066_v44, %v4695_v37  ;;  %v4726_v15 = vrot.slane %v4711_v24, 3 }
  0x7a   : > { %8065 = vst [vmem:[#allocation171_spill] sm:$0xff] %v4711_v24  ;;  %8066 = vst [vmem:[#allocation172_spill] sm:$0xff] %v4720_v13  ;;  %v3404_v47 = vmul.f32 %v3723_v55, %v3340_v60  ;;  %v3147_v3 = vadd.f32 1e-06, %v3083_v27  ;;  %v2852_v52 = vadd.f32 %v4709_v38, %v4715_v53  ;;  %v566_v21 = vrot.slane %v3934_v14, 5 }
  0x7b   : > { %v1416_v20 = vadd.f32 %v1408_v61, %v1224_v31  ;;  %v7356_v60 = vrot.slane %v3920_v7, 6  ;;  %v4737_v44 = vrot.slane %v3922_v8, 7  ;;  %v2523_v61 = vadd.f32 %v2459_v29, %v4720_v13 }
  0x7c   : > { %3468 = vst [vmem:[%s4225_s28 + $0x28] sm:$0xff] %v3404_v47  ;;  %3724 = vrsqrt.f32 %v3147_v3  ;;  %v8068_v55 = vrot.slane %v3934_v14, 6  ;;  %v4745_v6 = vrot.slane %v3930_v12, 1  ;;  %v4748_v47 = vadd.f32 %v3926_v10, %v3277_v43 }
  0x7d   : > { %8067 = vst [vmem:[#allocation173_spill] sm:$0xff] %v4737_v44  ;;  %v1801_v27 = vadd.f32 %v1737_v58, %v1416_v20  ;;  %v1281_v3 = vadd.f32 %v3938_v16, %v7356_v60  ;;  %v1674_v23 = vadd.f32 %v4737_v44, %v3922_v8  ;;  %v2067_v20 = vadd.f32 %v3964_v26, %v3928_v11 }
  0x7e   : > { %v4742_v31 = vadd.f32 %v8068_v55, %v566_v21  ;;  %8070 = vst [vmem:[#allocation175_spill] sm:$0xff] %v4745_v6  ;;  %v8071_v21 = vrot.slane %v4672_v54, 4  ;;  %v2460_v43 = vadd.f32 %v3984_v33, %v4745_v6  ;;  %v8072_v13 = vrot.slane %v4711_v24, 4 }
  0x7f   : > { %v2186_v58 = vadd.f32 %v2130_v22, %v1801_v27  ;;  %v1345_v37 = vadd.f32 %v1281_v3, %v3920_v7  ;;  %v4768_v14 = vrot.slane %v3992_v36, 2  ;;  %v4771_v22 = vrot.slane %v3924_v9, 3 }
  0x80   : > { %8069 = vst [vmem:[#allocation174_spill] sm:$0xff] %v4742_v31  ;;  %v2916_v29 = vadd.f32 %v2852_v52, %v8071_v21  ;;  %v1209_v55 = vadd.f32 %v3961_v25, %v4742_v31  ;;  %v3052_v60 = vadd.f32 %v8072_v13, %v4726_v15  ;;  %v1738_v21 = vadd.f32 %v1674_v23, %v3944_v18  ;;  %v3278_v23 = vld [vmem:[%s3956_s25 + $0x40] sm:$0xff] }
  0x81   : > { %8073 = vst [vmem:[#allocation176_spill] sm:$0xff] %v4768_v14  ;;  %8074 = vst [vmem:[#allocation177_spill] sm:$0xff] %v4771_v22  ;;  %v2571_v52 = vadd.f32 %v2523_v61, %v2186_v58  ;;  %v7368_v25 = vrot.slane %v3924_v9, 4  ;;  %v2131_v33 = vadd.f32 %v2067_v20, %v3976_v30  ;;  %v2853_v13 = vadd.f32 %v4015_v51, %v4768_v14 }
  0x82   : > { %v1225_v27 = vadd.f32 %v1209_v55, %v3970_v28  ;;  %v567_v3 = vrot.slane %v4043_v4, 5  ;;  %v7369_v26 = vrot.slane %v4027_v59, 6  ;;  %v2524_v6 = vadd.f32 %v2460_v43, %v3990_v35 }
  0x83   : > { %v2956_v31 = vadd.f32 %v2916_v29, %v2571_v52  ;;  %v4783_v61 = vrot.slane %v4032_v62, 7  ;;  %v3053_v28 = vadd.f32 %v7368_v25, %v4771_v22  ;;  %v8076_v20 = vrot.slane %v4043_v4, 6 }
  0x84   : > { %v1417_v16 = vadd.f32 %v1345_v37, %v1225_v27  ;;  %v1282_v55 = vadd.f32 %v4048_v19, %v7369_v26  ;;  %v4797_v37 = vrot.slane %v4039_v2, 1  ;;  %v2068_v27 = vadd.f32 %v4084_v50, %v4037_v1 }
  0x85   : > { %8075 = vst [vmem:[#allocation178_spill] sm:$0xff] %v4783_v61  ;;  %v4791_v58 = vadd.f32 %v8076_v20, %v567_v3  ;;  %v3084_v29 = vadd.f32 %v3052_v60, %v2956_v31  ;;  %v1675_v52 = vadd.f32 %v4783_v61, %v4032_v62  ;;  %v8079_v3 = vrot.slane %v3992_v36, 4 }
  0x86   : > { %8078 = vst [vmem:[#allocation180_spill] sm:$0xff] %v4797_v37  ;;  %v1802_v43 = vadd.f32 %v1738_v21, %v1417_v16  ;;  %v3725_v25 = vpop.eup %3724  ;;  %v1346_v35 = vadd.f32 %v1282_v55, %v4027_v59  ;;  %v2461_v16 = vadd.f32 %v4098_v5, %v4797_v37  ;;  %v4812_v30 = vadd.f32 %v3926_v10, %v3278_v23  ;;  %v8092_v5 = vld [vmem:[#allocation51_spill] sm:$0xff] }
  0x87   : > { %8077 = vst [vmem:[#allocation179_spill] sm:$0xff] %v4791_v58  ;;  %v2917_v20 = vadd.f32 %v2853_v13, %v8079_v3  ;;  %v1210_v26 = vadd.f32 %v4062_v41, %v4791_v58  ;;  %v3405_v60 = vmul.f32 %v3725_v25, %v4642_v56  ;;  %v3148_v31 = vadd.f32 1e-06, %v3084_v29  ;;  %v3279_v56 = vld [vmem:[%s3956_s25 + $0x48] sm:$0xff]  ;;  %v8082_v29 = vld [vmem:[#allocation39_spill] sm:$0xff] }
  0x88   : > { %v2187_v21 = vadd.f32 %v2131_v33, %v1802_v43  ;;  %v1739_v13 = vadd.f32 %v1675_v52, %v4056_v32  ;;  %v4817_v3 = vrot.slane %v4058_v39, 2  ;;  %v4820_v41 = vrot.slane %v4034_v63, 3  ;;  %v8084_v52 = vld [vmem:[#allocation43_spill] sm:$0xff] }
  0x89   : > { %v1226_v18 = vadd.f32 %v1210_v26, %v4066_v42  ;;  %3469 = vst [vmem:[%s4225_s28 + $0x30] sm:$0xff] %v3405_v60  ;;  %3726 = vrsqrt.f32 %v3148_v31  ;;  %v2132_v25 = vadd.f32 %v2068_v27, %v4074_v46  ;;  %v568_v33 = vrot.slane %v4142_v57, 5  ;;  %v8083_v26 = vld [vmem:[#allocation42_spill] sm:$0xff]  ;;  %v8091_v46 = vld [vmem:[#allocation57_spill] sm:$0xff] }
  0x8a   : > { %8080 = vst [vmem:[#allocation181_spill] sm:$0xff] %v4817_v3  ;;  %8081 = vst [vmem:[#allocation182_spill] sm:$0xff] %v4820_v41  ;;  %v2572_v55 = vadd.f32 %v2524_v6, %v2187_v21  ;;  %v2525_v43 = vadd.f32 %v2461_v16, %v8082_v29  ;;  %v2854_v42 = vadd.f32 %v8083_v26, %v4817_v3  ;;  %v7383_v32 = vrot.slane %v8084_v52, 6  ;;  %v8087_v6 = vld [vmem:[#allocation44_spill] sm:$0xff]  ;;  %v8090_v29 = vld [vmem:[#allocation47_spill] sm:$0xff] }
  0x8b   : > { %v1418_v23 = vadd.f32 %v1346_v35, %v1226_v18  ;;  %v8085_v60 = vrot.slane %v4142_v57, 6  ;;  %v4836_v27 = vrot.slane %v8087_v6, 7  ;;  %v4839_v18 = vadd.f32 %v3926_v10, %v3279_v56  ;;  %v8089_v35 = vld [vmem:[#allocation49_spill] sm:$0xff] }
  0x8c   : > { %v2957_v4 = vadd.f32 %v2917_v20, %v2572_v55  ;;  %v1283_v16 = vadd.f32 %v8089_v35, %v7383_v32  ;;  %v2069_v20 = vadd.f32 %v8091_v46, %v8090_v29  ;;  %v8095_v56 = vrot.slane %v4058_v39, 4  ;;  %v8096_v32 = vld [vmem:[#allocation61_spill] sm:$0xff]  ;;  %v8099_v29 = vld [vmem:[#allocation54_spill] sm:$0xff] }
  0x8d   : > { %v4833_v31 = vadd.f32 %v8085_v60, %v568_v33  ;;  %8088 = vst [vmem:[#allocation184_spill] sm:$0xff] %v4836_v27  ;;  %v1803_v21 = vadd.f32 %v1739_v13, %v1418_v23  ;;  %v8093_v33 = vld [vmem:[#allocation52_spill] sm:$0xff]  ;;  %v1676_v13 = vadd.f32 %v4836_v27, %v8087_v6  ;;  %v4857_v35 = vrot.slane %v8096_v32, 2  ;;  %v8102_v27 = vld [vmem:[#allocation59_spill] sm:$0xff] }
  0x8e   : > { %v3085_v55 = vadd.f32 %v3053_v28, %v2957_v4  ;;  %v4849_v60 = vrot.slane %v8093_v33, 1  ;;  %v2918_v26 = vadd.f32 %v2854_v42, %v8095_v56  ;;  %v1347_v3 = vadd.f32 %v1283_v16, %v8084_v52  ;;  %v8098_v4 = vld [vmem:[#allocation56_spill] sm:$0xff]  ;;  %v8103_v56 = vld [vmem:[#allocation45_spill] sm:$0xff]  ;;  %v8110_v52 = vld [vmem:[#allocation63_spill] sm:$0xff] }
  0x8f   : > { %8086 = vst [vmem:[#allocation183_spill] sm:$0xff] %v4833_v31  ;;  %v1211_v57 = vadd.f32 %v8092_v5, %v4833_v31  ;;  %v2188_v23 = vadd.f32 %v2132_v25, %v1803_v21  ;;  %8097 = vst [vmem:[#allocation186_spill] sm:$0xff] %v4857_v35  ;;  %v1740_v5 = vadd.f32 %v1676_v13, %v8099_v29  ;;  %v8100_v31 = vld [vmem:[#allocation62_spill] sm:$0xff]  ;;  %v8101_v25 = vrot.slane %v4034_v63, 4 }
  0x90   : > { %8094 = vst [vmem:[#allocation185_spill] sm:$0xff] %v4849_v60  ;;  %v3149_v46 = vadd.f32 1e-06, %v3085_v55  ;;  %v2462_v33 = vadd.f32 %v8100_v31, %v4849_v60  ;;  %v2133_v42 = vadd.f32 %v2069_v20, %v8102_v27  ;;  %v4868_v16 = vrot.slane %v8103_v56, 3  ;;  %v8105_v55 = vld [vmem:[#allocation64_spill] sm:$0xff]  ;;  %v8108_v60 = vld [vmem:[#allocation66_spill] sm:$0xff] }
  0x91   : > { %v1227_v28 = vadd.f32 %v1211_v57, %v8098_v4  ;;  %v2573_v50 = vadd.f32 %v2525_v43, %v2188_v23  ;;  %v3054_v21 = vadd.f32 %v8101_v25, %v4820_v41  ;;  %v2855_v57 = vadd.f32 %v8105_v55, %v4857_v35  ;;  %v8106_v4 = vld [vmem:[#allocation72_spill] sm:$0xff]  ;;  %v8107_v23 = vld [vmem:[#allocation65_spill] sm:$0xff] }
  0x92   : > { %8104 = vst [vmem:[#allocation56_spill] sm:$0xff] %v4868_v16  ;;  %3728 = vrsqrt.f32 %v3149_v46  ;;  %v569_v13 = vrot.slane %v8106_v4, 5  ;;  %v7400_v31 = vrot.slane %v8107_v23, 6  ;;  %v4876_v25 = vrot.slane %v8108_v60, 7  ;;  %v8113_v55 = vld [vmem:[#allocation69_spill] sm:$0xff] }
  0x93   : > { %v1419_v6 = vadd.f32 %v1347_v3, %v1227_v28  ;;  %v2958_v29 = vadd.f32 %v2918_v26, %v2573_v50  ;;  %v3727_v20 = vpop.eup %3726  ;;  %v2526_v46 = vadd.f32 %v2462_v33, %v8110_v52  ;;  %v8111_v3 = vrot.slane %v8106_v4, 6  ;;  %v8115_v43 = vld [vmem:[#allocation73_spill] sm:$0xff]  ;;  %v8118_v4 = vld [vmem:[#allocation67_spill] sm:$0xff] }
  0x94   : > { %8109 = vst [vmem:[#allocation187_spill] sm:$0xff] %v4876_v25  ;;  %v4884_v35 = vrot.slane %v8113_v55, 1  ;;  %v3406_v50 = vmul.f32 %v3727_v20, %v4748_v47  ;;  %v1284_v41 = vadd.f32 %v8115_v43, %v7400_v31  ;;  %v1677_v58 = vadd.f32 %v4876_v25, %v8108_v60  ;;  %v3280_v52 = vld [vmem:[%s3956_s25 + $0x50] sm:$0xff]  ;;  %v8123_v43 = vld [vmem:[#allocation75_spill] sm:$0xff] }
  0x95   : > { %v1804_v27 = vadd.f32 %v1740_v5, %v1419_v6  ;;  %v4881_v28 = vadd.f32 %v8111_v3, %v569_v13  ;;  %v3086_v26 = vadd.f32 %v3054_v21, %v2958_v29  ;;  %v8116_v6 = vrot.slane %v8096_v32, 4  ;;  %v8117_v13 = vld [vmem:[#allocation76_spill] sm:$0xff]  ;;  %v8119_v55 = vld [vmem:[#allocation81_spill] sm:$0xff] }
  0x96   : > { %8114 = vst [vmem:[#allocation189_spill] sm:$0xff] %v4884_v35  ;;  %v2070_v63 = vadd.f32 %v8119_v55, %v8118_v4  ;;  %3470 = vst [vmem:[%s4225_s28 + $0x38] sm:$0xff] %v3406_v50  ;;  %v8120_v29 = vrot.slane %v8103_v56, 4  ;;  %v1348_v20 = vadd.f32 %v1284_v41, %v8107_v23  ;;  %v1741_v25 = vadd.f32 %v1677_v58, %v8123_v43  ;;  %v8131_v58 = vld [vmem:[#allocation84_spill] sm:$0xff]  ;;  %v8141_v56 = vld [vmem:[#allocation103_spill] sm:$0xff] }
  0x97   : > { %8112 = vst [vmem:[#allocation188_spill] sm:$0xff] %v4881_v28  ;;  %v2189_v5 = vadd.f32 %v2133_v42, %v1804_v27  ;;  %v2919_v33 = vadd.f32 %v2855_v57, %v8116_v6  ;;  %v1212_v3 = vadd.f32 %v8117_v13, %v4881_v28  ;;  %v3150_v47 = vadd.f32 1e-06, %v3086_v26  ;;  %v8121_v27 = vld [vmem:[#allocation85_spill] sm:$0xff]  ;;  %v8122_v57 = vld [vmem:[#allocation79_spill] sm:$0xff]  ;;  %v8124_v13 = vld [vmem:[#allocation70_spill] sm:$0xff] }
  0x98   : > { %v3055_v21 = vadd.f32 %v8120_v29, %v4868_v16  ;;  %v2463_v42 = vadd.f32 %v8121_v27, %v4884_v35  ;;  %v4909_v28 = vrot.slane %v8124_v13, 2  ;;  %v4912_v50 = vadd.f32 %v3926_v10, %v3280_v52  ;;  %v8126_v26 = vld [vmem:[#allocation80_spill] sm:$0xff]  ;;  %v8139_v27 = vld [vmem:[#allocation95_spill] sm:$0xff] }
  0x99   : > { %v2574_v31 = vadd.f32 %v2526_v46, %v2189_v5  ;;  %v1228_v6 = vadd.f32 %v1212_v3, %v8122_v57  ;;  %3730 = vrsqrt.f32 %v3150_v47  ;;  %v2134_v55 = vadd.f32 %v2070_v63, %v8126_v26  ;;  %v8127_v29 = vld [vmem:[#allocation68_spill] sm:$0xff]  ;;  %v8129_v46 = vld [vmem:[#allocation86_spill] sm:$0xff]  ;;  %v8132_v47 = vld [vmem:[#allocation87_spill] sm:$0xff] }
  0x9a   : > { %8125 = vst [vmem:[#allocation79_spill] sm:$0xff] %v4909_v28  ;;  %v4916_v4 = vrot.slane %v8127_v29, 3  ;;  %v2856_v5 = vadd.f32 %v8129_v46, %v4909_v28  ;;  %v8130_v3 = vld [vmem:[#allocation94_spill] sm:$0xff]  ;;  %v2527_v43 = vadd.f32 %v2463_v42, %v8131_v58  ;;  %v7414_v52 = vrot.slane %v8132_v47, 6  ;;  %v8133_v35 = vld [vmem:[#allocation88_spill] sm:$0xff]  ;;  %v8140_v28 = vld [vmem:[#allocation89_spill] sm:$0xff] }
  0x9b   : > { %v2959_v41 = vadd.f32 %v2919_v33, %v2574_v31  ;;  %v1420_v60 = vadd.f32 %v1348_v20, %v1228_v6  ;;  %v570_v57 = vrot.slane %v8130_v3, 5  ;;  %v4925_v23 = vrot.slane %v8133_v35, 7  ;;  %v8137_v20 = vld [vmem:[#allocation91_spill] sm:$0xff] }
  0x9c   : > { %8128 = vst [vmem:[#allocation190_spill] sm:$0xff] %v4916_v4  ;;  %v3729_v63 = vpop.eup %3728  ;;  %v8135_v31 = vrot.slane %v8130_v3, 6  ;;  %v4932_v6 = vrot.slane %v8137_v20, 1  ;;  %v1285_v58 = vadd.f32 %v8139_v27, %v7414_v52  ;;  %v8145_v27 = vld [vmem:[#allocation92_spill] sm:$0xff] }
  0x9d   : > { %8134 = vst [vmem:[#allocation191_spill] sm:$0xff] %v4925_v23  ;;  %v3087_v26 = vadd.f32 %v3055_v21, %v2959_v41  ;;  %v1805_v16 = vadd.f32 %v1741_v25, %v1420_v60  ;;  %v3407_v42 = vmul.f32 %v3729_v63, %v4812_v30  ;;  %v1678_v46 = vadd.f32 %v4925_v23, %v8133_v35  ;;  %v8154_v35 = vld [vmem:[#allocation116_spill] sm:$0xff] }
  0x9e   : > { %v4929_v33 = vadd.f32 %v8135_v31, %v570_v57  ;;  %8138 = vst [vmem:[#allocation193_spill] sm:$0xff] %v4932_v6  ;;  %v2071_v21 = vadd.f32 %v8141_v56, %v8140_v28  ;;  %v8142_v41 = vrot.slane %v8124_v13, 4  ;;  %v8143_v31 = vld [vmem:[#allocation98_spill] sm:$0xff]  ;;  %v8144_v30 = vrot.slane %v8127_v29, 4  ;;  %v8147_v56 = vld [vmem:[#allocation107_spill] sm:$0xff] }
  0x9f   : > { %v3151_v60 = vadd.f32 1e-06, %v3087_v26  ;;  %v2190_v25 = vadd.f32 %v2134_v55, %v1805_v16  ;;  %3471 = vst [vmem:[%s4225_s28 + $0x40] sm:$0xff] %v3407_v42  ;;  %v1349_v52 = vadd.f32 %v1285_v58, %v8132_v47  ;;  %v4952_v20 = vrot.slane %v8145_v27, 2  ;;  %v8148_v55 = vld [vmem:[#allocation101_spill] sm:$0xff]  ;;  %v8153_v58 = vld [vmem:[#allocation108_spill] sm:$0xff] }
  0xa0   : > { %8136 = vst [vmem:[#allocation192_spill] sm:$0xff] %v4929_v33  ;;  %v2920_v57 = vadd.f32 %v2856_v5, %v8142_v41  ;;  %v1213_v3 = vadd.f32 %v8143_v31, %v4929_v33  ;;  %v3056_v63 = vadd.f32 %v8144_v30, %v4916_v4  ;;  %v2464_v26 = vadd.f32 %v8147_v56, %v4932_v6  ;;  %v8149_v41 = vld [vmem:[#allocation97_spill] sm:$0xff]  ;;  %v8150_v31 = vld [vmem:[#allocation102_spill] sm:$0xff] }
  0xa1   : > { %8146 = vst [vmem:[#allocation194_spill] sm:$0xff] %v4952_v20  ;;  %3732 = vrsqrt.f32 %v3151_v60  ;;  %v2575_v16 = vadd.f32 %v2527_v43, %v2190_v25  ;;  %v1742_v23 = vadd.f32 %v1678_v46, %v8149_v41  ;;  %v2135_v42 = vadd.f32 %v2071_v21, %v8150_v31  ;;  %v8151_v33 = vld [vmem:[#allocation90_spill] sm:$0xff]  ;;  %v8155_v43 = vld [vmem:[#allocation109_spill] sm:$0xff] }
  0xa2   : > { %v1229_v5 = vadd.f32 %v1213_v3, %v8148_v55  ;;  %v4960_v28 = vrot.slane %v8151_v33, 3  ;;  %v2857_v30 = vadd.f32 %v8153_v58, %v4952_v20  ;;  %v571_v47 = vrot.slane %v8154_v35, 5  ;;  %v8156_v46 = vld [vmem:[#allocation106_spill] sm:$0xff]  ;;  %v8162_v60 = vld [vmem:[#allocation117_spill] sm:$0xff] }
  0xa3   : > { %v2960_v4 = vadd.f32 %v2920_v57, %v2575_v16  ;;  %v7428_v3 = vrot.slane %v8155_v43, 6  ;;  %v3731_v25 = vpop.eup %3730  ;;  %v2528_v55 = vadd.f32 %v2464_v26, %v8156_v46  ;;  %v8157_v21 = vrot.slane %v8145_v27, 4  ;;  %v8160_v58 = vld [vmem:[#allocation110_spill] sm:$0xff]  ;;  %v8163_v26 = vld [vmem:[#allocation120_spill] sm:$0xff] }
  0xa4   : > { %8152 = vst [vmem:[#allocation101_spill] sm:$0xff] %v4960_v28  ;;  %v1421_v29 = vadd.f32 %v1349_v52, %v1229_v5  ;;  %v8158_v41 = vrot.slane %v8154_v35, 6  ;;  %v4975_v20 = vrot.slane %v8160_v58, 7  ;;  %v3408_v52 = vmul.f32 %v3731_v25, %v4839_v18  ;;  %v3281_v16 = vld [vmem:[%s3956_s25 + $0x58] sm:$0xff]  ;;  %v8168_v25 = vld [vmem:[#allocation123_spill] sm:$0xff] }
  0xa5   : > { %v2921_v31 = vadd.f32 %v2857_v30, %v8157_v21  ;;  %v3088_v57 = vadd.f32 %v3056_v63, %v2960_v4  ;;  %v1286_v6 = vadd.f32 %v8162_v60, %v7428_v3  ;;  %v4985_v30 = vrot.slane %v4450_v49, 1  ;;  %v8166_v21 = vld [vmem:[#allocation125_spill] sm:$0xff] }
  0xa6   : > { %v4972_v56 = vadd.f32 %v8158_v41, %v571_v47  ;;  %8161 = vst [vmem:[#allocation196_spill] sm:$0xff] %v4975_v20  ;;  %v1806_v5 = vadd.f32 %v1742_v23, %v1421_v29  ;;  %v1679_v47 = vadd.f32 %v4975_v20, %v8160_v58  ;;  %v8165_v41 = vld [vmem:[#allocation111_spill] sm:$0xff]  ;;  %3472 = vst [vmem:[%s4225_s28 + $0x48] sm:$0xff] %v3408_v52  ;;  %v4994_v29 = vrot.slane %v4452_v40, 2  ;;  %v8170_v49 = vld [vmem:[#allocation129_spill] sm:$0xff] }
  0xa7   : > { %8164 = vst [vmem:[#allocation197_spill] sm:$0xff] %v4985_v30  ;;  %v2072_v35 = vadd.f32 %v8166_v21, %v8165_v41  ;;  %v3152_v18 = vadd.f32 1e-06, %v3088_v57  ;;  %v1350_v23 = vadd.f32 %v1286_v6, %v8155_v43  ;;  %v3346_v63 = vadd.f32 %v3926_v10, %v3281_v16  ;;  %v8172_v6 = vld [vmem:[#allocation130_spill] sm:$0xff]  ;;  %v8173_v21 = vld [vmem:[#allocation124_spill] sm:$0xff] }
  0xa8   : > { %8159 = vst [vmem:[#allocation195_spill] sm:$0xff] %v4972_v56  ;;  %v1214_v46 = vadd.f32 %v8163_v26, %v4972_v56  ;;  %v2191_v4 = vadd.f32 %v2135_v42, %v1806_v5  ;;  %8167 = vst [vmem:[#allocation198_spill] sm:$0xff] %v4994_v29  ;;  %v8169_v26 = vld [vmem:[#allocation119_spill] sm:$0xff]  ;;  %v2465_v60 = vadd.f32 %v8170_v49, %v4985_v30  ;;  %v8171_v52 = vrot.slane %v8151_v33, 4  ;;  %v8174_v16 = vld [vmem:[#allocation112_spill] sm:$0xff] }
  0xa9   : > { %v1743_v56 = vadd.f32 %v1679_v47, %v8169_v26  ;;  %3734 = vrsqrt.f32 %v3152_v18  ;;  %v2858_v57 = vadd.f32 %v8172_v6, %v4994_v29  ;;  %v2136_v41 = vadd.f32 %v2072_v35, %v8173_v21  ;;  %v8176_v47 = vld [vmem:[#allocation138_spill] sm:$0xff]  ;;  %v8181_v21 = vld [vmem:[#allocation132_spill] sm:$0xff] }
  0xaa   : > { %v1230_v3 = vadd.f32 %v1214_v46, %v8168_v25  ;;  %v2576_v20 = vadd.f32 %v2528_v55, %v2191_v4  ;;  %v3057_v42 = vadd.f32 %v8171_v52, %v4960_v28  ;;  %v5008_v46 = vrot.slane %v8174_v16, 3  ;;  %v8177_v55 = vld [vmem:[#allocation128_spill] sm:$0xff]  ;;  %v8178_v52 = vld [vmem:[#allocation131_spill] sm:$0xff] }
  0xab   : > { %v572_v25 = vrot.slane %v8176_v47, 5  ;;  %v3733_v26 = vpop.eup %3732  ;;  %v2529_v4 = vadd.f32 %v2465_v60, %v8177_v55  ;;  %v7440_v30 = vrot.slane %v8178_v52, 6  ;;  %v8179_v35 = vrot.slane %v8176_v47, 6  ;;  %v8190_v55 = vld [vmem:[#allocation149_spill] sm:$0xff] }
  0xac   : > { %v1422_v5 = vadd.f32 %v1350_v23, %v1230_v3  ;;  %8175 = vst [vmem:[#allocation123_spill] sm:$0xff] %v5008_v46  ;;  %v2961_v18 = vadd.f32 %v2921_v31, %v2576_v20  ;;  %v3409_v6 = vmul.f32 %v3733_v26, %v4912_v50  ;;  %v5020_v29 = vrot.slane %v8181_v21, 7  ;;  %v8184_v31 = vld [vmem:[#allocation139_spill] sm:$0xff]  ;;  %v8186_v26 = vld [vmem:[#allocation142_spill] sm:$0xff] }
  0xad   : > { %v5017_v23 = vadd.f32 %v8179_v35, %v572_v25  ;;  %v8183_v43 = vrot.slane %v4452_v40, 4  ;;  %v1287_v60 = vadd.f32 %v8184_v31, %v7440_v30  ;;  %v5028_v49 = vrot.slane %v4551_v34, 1  ;;  %v8193_v34 = vld [vmem:[#allocation141_spill] sm:$0xff] }
  0xae   : > { %v1807_v3 = vadd.f32 %v1743_v56, %v1422_v5  ;;  %8182 = vst [vmem:[#allocation200_spill] sm:$0xff] %v5020_v29  ;;  %v3089_v58 = vadd.f32 %v3057_v42, %v2961_v18  ;;  %3473 = vst [vmem:[%s4225_s28 + $0x50] sm:$0xff] %v3409_v6  ;;  %v3282_v56 = vld [vmem:[%s3956_s25 + $0x60] sm:$0xff]  ;;  %v1680_v25 = vadd.f32 %v5020_v29, %v8181_v21  ;;  %v8187_v42 = vld [vmem:[#allocation133_spill] sm:$0xff]  ;;  %v5040_v30 = vrot.slane %v4553_v48, 2 }
  0xaf   : > { %8180 = vst [vmem:[#allocation199_spill] sm:$0xff] %v5017_v23  ;;  %v2922_v20 = vadd.f32 %v2858_v57, %v8183_v43  ;;  %8185 = vst [vmem:[#allocation201_spill] sm:$0xff] %v5028_v49  ;;  %v1215_v5 = vadd.f32 %v8186_v26, %v5017_v23  ;;  %v8188_v18 = vld [vmem:[#allocation147_spill] sm:$0xff]  ;;  %v1351_v57 = vadd.f32 %v1287_v60, %v8178_v52  ;;  %v8192_v26 = vld [vmem:[#allocation145_spill] sm:$0xff] }
  0xb0   : > { %v2192_v50 = vadd.f32 %v2136_v41, %v1807_v3  ;;  %v2073_v35 = vadd.f32 %v8188_v18, %v8187_v42  ;;  %v3153_v43 = vadd.f32 1e-06, %v3089_v58  ;;  %8189 = vst [vmem:[#allocation202_spill] sm:$0xff] %v5040_v30  ;;  %v2466_v6 = vadd.f32 %v8190_v55, %v5028_v49  ;;  %v8194_v18 = vld [vmem:[#allocation134_spill] sm:$0xff]  ;;  %v8196_v29 = vld [vmem:[#allocation152_spill] sm:$0xff] }
  0xb1   : > { %v8191_v41 = vrot.slane %v8174_v16, 4  ;;  %v1231_v23 = vadd.f32 %v1215_v5, %v8192_v26  ;;  %v1744_v31 = vadd.f32 %v1680_v25, %v8193_v34  ;;  %v3347_v58 = vadd.f32 %v3926_v10, %v3282_v56  ;;  %v8198_v49 = vld [vmem:[#allocation158_spill] sm:$0xff] }
  0xb2   : > { %v2577_v47 = vadd.f32 %v2529_v4, %v2192_v50  ;;  %3736 = vrsqrt.f32 %v3153_v43  ;;  %v5051_v60 = vrot.slane %v8194_v18, 3  ;;  %v2859_v42 = vadd.f32 %v8196_v29, %v5040_v30  ;;  %v8197_v4 = vld [vmem:[#allocation146_spill] sm:$0xff]  ;;  %v8200_v43 = vld [vmem:[#allocation153_spill] sm:$0xff] }
  0xb3   : > { %v3058_v3 = vadd.f32 %v8191_v41, %v5008_v46  ;;  %v1423_v55 = vadd.f32 %v1351_v57, %v1231_v23  ;;  %v2137_v50 = vadd.f32 %v2073_v35, %v8197_v4  ;;  %v573_v41 = vrot.slane %v8198_v49, 5  ;;  %v3735_v26 = vpop.eup %3734  ;;  %v8199_v5 = vld [vmem:[#allocation150_spill] sm:$0xff] }
  0xb4   : > { %8195 = vst [vmem:[#allocation145_spill] sm:$0xff] %v5051_v60  ;;  %v2962_v21 = vadd.f32 %v2922_v20, %v2577_v47  ;;  %v2530_v25 = vadd.f32 %v2466_v6, %v8199_v5  ;;  %v7455_v34 = vrot.slane %v8200_v43, 6  ;;  %v8201_v52 = vld [vmem:[#allocation154_spill] sm:$0xff]  ;;  %v3410_v29 = vmul.f32 %v3735_v26, %v3346_v63  ;;  %v8206_v6 = vld [vmem:[#allocation159_spill] sm:$0xff]  ;;  %v3283_v63 = vld [vmem:[%s3956_s25 + $0x68] sm:$0xff] }
  0xb5   : > { %v5061_v46 = vrot.slane %v8201_v52, 7  ;;  %v1808_v23 = vadd.f32 %v1744_v31, %v1423_v55  ;;  %v8203_v20 = vrot.slane %v8198_v49, 6  ;;  %v8205_v57 = vrot.slane %v4553_v48, 4  ;;  %v3284_v31 = vld [vmem:[%s3956_s25 + $0x70] sm:$0xff] }
  0xb6   : > { %v3090_v47 = vadd.f32 %v3058_v3, %v2962_v21  ;;  %v1288_v5 = vadd.f32 %v8206_v6, %v7455_v34  ;;  %v5073_v56 = vrot.slane %v4672_v54, 1  ;;  %3474 = vst [vmem:[%s4225_s28 + $0x58] sm:$0xff] %v3410_v29  ;;  %v8208_v3 = vld [vmem:[#allocation163_spill] sm:$0xff]  ;;  %v8209_v26 = vrot.slane %v8194_v18, 4 }
  0xb7   : > { %8202 = vst [vmem:[#allocation203_spill] sm:$0xff] %v5061_v46  ;;  %v5065_v35 = vadd.f32 %v8203_v20, %v573_v41  ;;  %v2923_v4 = vadd.f32 %v2859_v42, %v8205_v57  ;;  %v1681_v30 = vadd.f32 %v5061_v46, %v8201_v52  ;;  %v2193_v55 = vadd.f32 %v2137_v50, %v1808_v23 }
  0xb8   : > { %8207 = vst [vmem:[#allocation205_spill] sm:$0xff] %v5073_v56  ;;  %v3154_v21 = vadd.f32 1e-06, %v3090_v47  ;;  %v2074_v42 = vadd.f32 %v4706_v17, %v4653_v0  ;;  %v3059_v20 = vadd.f32 %v8209_v26, %v5051_v60  ;;  %v1352_v57 = vadd.f32 %v1288_v5, %v8200_v43  ;;  %v8210_v47 = vld [vmem:[#allocation164_spill] sm:$0xff]  ;;  %v8212_v5 = vld [vmem:[#allocation155_spill] sm:$0xff] }
  0xb9   : > { %8204 = vst [vmem:[#allocation204_spill] sm:$0xff] %v5065_v35  ;;  %v1216_v41 = vadd.f32 %v8208_v3, %v5065_v35  ;;  %v5089_v34 = vrot.slane %v4711_v24, 2  ;;  %v2467_v29 = vadd.f32 %v4715_v53, %v5073_v56  ;;  %v2578_v50 = vadd.f32 %v2530_v25, %v2193_v55  ;;  %v8211_v3 = vld [vmem:[#allocation160_spill] sm:$0xff] }
  0xba   : > { %3738 = vrsqrt.f32 %v3154_v21  ;;  %v1745_v49 = vadd.f32 %v1681_v30, %v8211_v3  ;;  %v3348_v17 = vadd.f32 %v3926_v10, %v3283_v63  ;;  %v5097_v35 = vadd.f32 %v3926_v10, %v3284_v31 }
  0xbb   : > { %v1232_v23 = vadd.f32 %v1216_v41, %v8210_v47  ;;  %v2138_v26 = vadd.f32 %v2074_v42, %v4689_v45  ;;  %v5101_v54 = vrot.slane %v8212_v5, 3  ;;  %v2963_v6 = vadd.f32 %v2923_v4, %v2578_v50 }
  0xbc   : > { %v2860_v25 = vadd.f32 %v4726_v15, %v5089_v34  ;;  %v510_v21 = vrot.slane %v3920_v7, 5  ;;  %v3737_v55 = vpop.eup %3736  ;;  %v2531_v30 = vadd.f32 %v2467_v29, %v4709_v38  ;;  %v7465_v31 = vrot.slane %v3922_v8, 6  ;;  %v8217_v38 = vld [vmem:[#allocation175_spill] sm:$0xff] }
  0xbd   : > { %v1424_v46 = vadd.f32 %v1352_v57, %v1232_v23  ;;  %v5110_v41 = vrot.slane %v3928_v11, 7  ;;  %v3411_v42 = vmul.f32 %v3737_v55, %v3347_v58  ;;  %v3091_v47 = vadd.f32 %v3059_v20, %v2963_v6  ;;  %v8219_v20 = vld [vmem:[#allocation10_spill] sm:$0xff] }
  0xbe   : > { %v8214_v57 = vrot.slane %v3920_v7, 6  ;;  %v1289_v23 = vadd.f32 %v4737_v44, %v7465_v31  ;;  %v5120_v29 = vrot.slane %v3992_v36, 1  ;;  %v2075_v45 = vadd.f32 %v8217_v38, %v3930_v12  ;;  %v8225_v38 = vld [vmem:[#allocation8_spill] sm:$0xff] }
  0xbf   : > { %8213 = vst [vmem:[#allocation164_spill] sm:$0xff] %v5110_v41  ;;  %v1809_v4 = vadd.f32 %v1745_v49, %v1424_v46  ;;  %v1682_v63 = vadd.f32 %v5110_v41, %v3928_v11  ;;  %3475 = vst [vmem:[%s4225_s28 + $0x60] sm:$0xff] %v3411_v42  ;;  %v3155_v58 = vadd.f32 1e-06, %v3091_v47  ;;  %v8218_v46 = vrot.slane %v4711_v24, 4  ;;  %v8222_v47 = vld [vmem:[#allocation174_spill] sm:$0xff] }
  0xc0   : > { %v5114_v50 = vadd.f32 %v8214_v57, %v510_v21  ;;  %8216 = vst [vmem:[#allocation207_spill] sm:$0xff] %v5120_v29  ;;  %v8220_v55 = vrot.slane %v8212_v5, 4  ;;  %v1353_v31 = vadd.f32 %v1289_v23, %v3922_v8  ;;  %v5136_v3 = vrot.slane %v3924_v9, 2 }
  0xc1   : > { %v2194_v49 = vadd.f32 %v2138_v26, %v1809_v4  ;;  %v2924_v6 = vadd.f32 %v2860_v25, %v8218_v46  ;;  %v2468_v42 = vadd.f32 %v4768_v14, %v5120_v29  ;;  %3740 = vrsqrt.f32 %v3155_v58  ;;  %v8223_v25 = vld [vmem:[#allocation15_spill] sm:$0xff] }
  0xc2   : > { %8215 = vst [vmem:[#allocation206_spill] sm:$0xff] %v5114_v50  ;;  %v1153_v21 = vadd.f32 %v8219_v20, %v5114_v50  ;;  %v3060_v57 = vadd.f32 %v8220_v55, %v5101_v54  ;;  %8221 = vst [vmem:[#allocation10_spill] sm:$0xff] %v5136_v3  ;;  %v1746_v46 = vadd.f32 %v1682_v63, %v8223_v25  ;;  %v8224_v20 = vld [vmem:[#allocation18_spill] sm:$0xff]  ;;  %v5144_v50 = vrot.slane %v8225_v38, 3 }
  0xc3   : > { %v2579_v26 = vadd.f32 %v2531_v30, %v2194_v49  ;;  %v2139_v7 = vadd.f32 %v2075_v45, %v8224_v20  ;;  %v2861_v23 = vadd.f32 %v4771_v22, %v5136_v3  ;;  %v511_v55 = vrot.slane %v4027_v59, 5  ;;  %v3285_v22 = vld [vmem:[%s3956_s25 + $0x78] sm:$0xff] }
  0xc4   : > { %v1233_v4 = vadd.f32 %v1153_v21, %v8222_v47  ;;  %8226 = vst [vmem:[#allocation174_spill] sm:$0xff] %v5144_v50  ;;  %v3739_v44 = vpop.eup %3738  ;;  %v7474_v49 = vrot.slane %v4032_v62, 6  ;;  %v2532_v63 = vadd.f32 %v2468_v42, %v4015_v51  ;;  %v8227_v45 = vrot.slane %v4027_v59, 6 }
  0xc5   : > { %v2964_v14 = vadd.f32 %v2924_v6, %v2579_v26  ;;  %v3412_v21 = vmul.f32 %v3739_v44, %v3348_v17  ;;  %v5157_v25 = vrot.slane %v4037_v1, 7  ;;  %v8230_v6 = vrot.slane %v3924_v9, 4 }
  0xc6   : > { %v1425_v58 = vadd.f32 %v1353_v31, %v1233_v4  ;;  %v5154_v47 = vadd.f32 %v8227_v45, %v511_v55  ;;  %v1290_v26 = vadd.f32 %v4783_v61, %v7474_v49  ;;  %v5169_v17 = vrot.slane %v4058_v39, 1 }
  0xc7   : > { %8229 = vst [vmem:[#allocation18_spill] sm:$0xff] %v5157_v25  ;;  %v3092_v20 = vadd.f32 %v3060_v57, %v2964_v14  ;;  %v2925_v31 = vadd.f32 %v2861_v23, %v8230_v6  ;;  %3476 = vst [vmem:[%s4225_s28 + $0x68] sm:$0xff] %v3412_v21  ;;  %v1683_v44 = vadd.f32 %v5157_v25, %v4037_v1  ;;  %v8235_v21 = vld [vmem:[#allocation37_spill] sm:$0xff] }
  0xc8   : > { %8228 = vst [vmem:[#allocation15_spill] sm:$0xff] %v5154_v47  ;;  %v1810_v3 = vadd.f32 %v1746_v46, %v1425_v58  ;;  %v1154_v51 = vadd.f32 %v4048_v19, %v5154_v47  ;;  %8231 = vst [vmem:[#allocation208_spill] sm:$0xff] %v5169_v17  ;;  %v2076_v14 = vadd.f32 %v4797_v37, %v4039_v2  ;;  %v8232_v46 = vld [vmem:[#allocation25_spill] sm:$0xff]  ;;  %v8234_v58 = vld [vmem:[#allocation179_spill] sm:$0xff] }
  0xc9   : > { %v3156_v57 = vadd.f32 1e-06, %v3092_v20  ;;  %v1354_v4 = vadd.f32 %v1290_v26, %v4032_v62  ;;  %v5177_v23 = vrot.slane %v8232_v46, 2  ;;  %v3350_v55 = vadd.f32 %v3926_v10, %v3285_v22  ;;  %v8236_v6 = vld [vmem:[#allocation181_spill] sm:$0xff]  ;;  %v8239_v37 = vld [vmem:[#allocation40_spill] sm:$0xff] }
  0xca   : > { %v2195_v42 = vadd.f32 %v2139_v7, %v1810_v3  ;;  %v1234_v19 = vadd.f32 %v1154_v51, %v8234_v58  ;;  %v1747_v45 = vadd.f32 %v1683_v44, %v8235_v21  ;;  %v2469_v49 = vadd.f32 %v8236_v6, %v5169_v17  ;;  %v8238_v3 = vld [vmem:[#allocation182_spill] sm:$0xff]  ;;  %v8240_v22 = vld [vmem:[#allocation28_spill] sm:$0xff]  ;;  %v8242_v44 = vld [vmem:[#allocation43_spill] sm:$0xff] }
  0xcb   : > { %8233 = vst [vmem:[#allocation209_spill] sm:$0xff] %v5177_v23  ;;  %3742 = vrsqrt.f32 %v3156_v57  ;;  %v8237_v20 = vrot.slane %v8225_v38, 4  ;;  %v2862_v26 = vadd.f32 %v8238_v3, %v5177_v23  ;;  %v2140_v47 = vadd.f32 %v2076_v14, %v8239_v37  ;;  %v3741_v21 = vpop.eup %3740  ;;  %v8255_v6 = vld [vmem:[#allocation45_spill] sm:$0xff] }
  0xcc   : > { %v2580_v30 = vadd.f32 %v2532_v63, %v2195_v42  ;;  %v1426_v59 = vadd.f32 %v1354_v4, %v1234_v19  ;;  %v5191_v51 = vrot.slane %v8240_v22, 3  ;;  %v512_v58 = vrot.slane %v8242_v44, 5  ;;  %v8243_v63 = vld [vmem:[#allocation42_spill] sm:$0xff]  ;;  %v8247_v19 = vld [vmem:[#allocation47_spill] sm:$0xff] }
  0xcd   : > { %v3061_v7 = vadd.f32 %v8237_v20, %v5144_v50  ;;  %v2533_v42 = vadd.f32 %v2469_v49, %v8243_v63  ;;  %v8244_v20 = vld [vmem:[#allocation44_spill] sm:$0xff]  ;;  %v3413_v3 = vmul.f32 %v3741_v21, %v5097_v35  ;;  %v8245_v37 = vrot.slane %v8242_v44, 6  ;;  %v8257_v44 = vld [vmem:[#allocation186_spill] sm:$0xff] }
  0xce   : > { %8241 = vst [vmem:[#allocation179_spill] sm:$0xff] %v5191_v51  ;;  %v2965_v57 = vadd.f32 %v2925_v31, %v2580_v30  ;;  %v7486_v17 = vrot.slane %v8244_v20, 6  ;;  %v1811_v4 = vadd.f32 %v1747_v45, %v1426_v59  ;;  %v5203_v23 = vrot.slane %v8247_v19, 7  ;;  %v8250_v49 = vld [vmem:[#allocation184_spill] sm:$0xff]  ;;  %v3286_v59 = vld [vmem:[%s3956_s25 + $0x80] sm:$0xff]  ;;  %v8252_v45 = vld [vmem:[#allocation49_spill] sm:$0xff] }
  0xcf   : > { %v5200_v14 = vadd.f32 %v8245_v37, %v512_v58  ;;  %v8249_v61 = vrot.slane %v8232_v46, 4  ;;  %v5211_v63 = vrot.slane %v8096_v32, 1  ;;  %3477 = vst [vmem:[%s4225_s28 + $0x70] sm:$0xff] %v3413_v3 }
  0xd0   : > { %8248 = vst [vmem:[#allocation40_spill] sm:$0xff] %v5203_v23  ;;  %v3093_v39 = vadd.f32 %v3061_v7, %v2965_v57  ;;  %v1291_v31 = vadd.f32 %v8250_v49, %v7486_v17  ;;  %v2196_v35 = vadd.f32 %v2140_v47, %v1811_v4  ;;  %v1684_v21 = vadd.f32 %v5203_v23, %v8247_v19  ;;  %v8253_v7 = vld [vmem:[#allocation52_spill] sm:$0xff]  ;;  %v8254_v57 = vld [vmem:[#allocation185_spill] sm:$0xff] }
  0xd1   : > { %8246 = vst [vmem:[#allocation37_spill] sm:$0xff] %v5200_v14  ;;  %v2926_v30 = vadd.f32 %v2862_v26, %v8249_v61  ;;  %8251 = vst [vmem:[#allocation42_spill] sm:$0xff] %v5211_v63  ;;  %v1155_v58 = vadd.f32 %v8252_v45, %v5200_v14  ;;  %v2077_v37 = vadd.f32 %v8254_v57, %v8253_v7  ;;  %v5223_v17 = vrot.slane %v8255_v6, 2  ;;  %v8259_v45 = vld [vmem:[#allocation183_spill] sm:$0xff]  ;;  %v8260_v49 = vld [vmem:[#allocation57_spill] sm:$0xff] }
  0xd2   : > { %v3157_v61 = vadd.f32 1e-06, %v3093_v39  ;;  %v1355_v26 = vadd.f32 %v1291_v31, %v8244_v20  ;;  %v2470_v3 = vadd.f32 %v8257_v44, %v5211_v63  ;;  %v2581_v32 = vadd.f32 %v2533_v42, %v2196_v35  ;;  %v8261_v57 = vld [vmem:[#allocation46_spill] sm:$0xff]  ;;  %v8263_v7 = vld [vmem:[#allocation56_spill] sm:$0xff]  ;;  %v8265_v63 = vld [vmem:[#allocation65_spill] sm:$0xff] }
  0xd3   : > { %8256 = vst [vmem:[#allocation49_spill] sm:$0xff] %v5223_v17  ;;  %v8258_v47 = vrot.slane %v8240_v22, 4  ;;  %v1235_v14 = vadd.f32 %v1155_v58, %v8259_v45  ;;  %v1748_v23 = vadd.f32 %v1684_v21, %v8260_v49  ;;  %v3351_v39 = vadd.f32 %v3926_v10, %v3286_v59  ;;  %v8264_v42 = vld [vmem:[#allocation62_spill] sm:$0xff]  ;;  %v8266_v45 = vld [vmem:[#allocation64_spill] sm:$0xff] }
  0xd4   : > { %3744 = vrsqrt.f32 %v3157_v61  ;;  %v5234_v31 = vrot.slane %v8261_v57, 3  ;;  %v2863_v19 = vadd.f32 %v8263_v7, %v5223_v17  ;;  %v2966_v20 = vadd.f32 %v2926_v30, %v2581_v32  ;;  %v8267_v21 = vld [vmem:[#allocation66_spill] sm:$0xff] }
  0xd5   : > { %v3062_v4 = vadd.f32 %v8258_v47, %v5191_v51  ;;  %v1427_v44 = vadd.f32 %v1355_v26, %v1235_v14  ;;  %v2141_v35 = vadd.f32 %v2077_v37, %v8264_v42  ;;  %v513_v47 = vrot.slane %v8265_v63, 5  ;;  %v3743_v58 = vpop.eup %3742  ;;  %v8268_v51 = vld [vmem:[#allocation67_spill] sm:$0xff] }
  0xd6   : > { %8262 = vst [vmem:[#allocation183_spill] sm:$0xff] %v5234_v31  ;;  %v2534_v49 = vadd.f32 %v2470_v3, %v8266_v45  ;;  %v7501_v61 = vrot.slane %v8267_v21, 6  ;;  %v5244_v22 = vrot.slane %v8268_v51, 7  ;;  %v3414_v7 = vmul.f32 %v3743_v58, %v3350_v55  ;;  %v8273_v3 = vld [vmem:[#allocation187_spill] sm:$0xff]  ;;  %v8276_v58 = vld [vmem:[#allocation69_spill] sm:$0xff] }
  0xd7   : > { %v3094_v32 = vadd.f32 %v3062_v4, %v2966_v20  ;;  %v1812_v14 = vadd.f32 %v1748_v23, %v1427_v44  ;;  %v8270_v30 = vrot.slane %v8265_v63, 6  ;;  %v8272_v26 = vrot.slane %v8255_v6, 4  ;;  %v3287_v23 = vld [vmem:[%s3956_s25 + $0x88] sm:$0xff]  ;;  %v3288_v20 = vld [vmem:[%s3956_s25 + $0x90] sm:$0xff] }
  0xd8   : > { %8269 = vst [vmem:[#allocation57_spill] sm:$0xff] %v5244_v22  ;;  %v1292_v45 = vadd.f32 %v8273_v3, %v7501_v61  ;;  %v5256_v59 = vrot.slane %v8124_v13, 1  ;;  %v1685_v17 = vadd.f32 %v5244_v22, %v8268_v51  ;;  %3478 = vst [vmem:[%s4225_s28 + $0x78] sm:$0xff] %v3414_v7  ;;  %v8275_v4 = vld [vmem:[#allocation73_spill] sm:$0xff]  ;;  %v8279_v13 = vld [vmem:[#allocation68_spill] sm:$0xff] }
  0xd9   : > { %v5248_v37 = vadd.f32 %v8270_v30, %v513_v47  ;;  %v2927_v42 = vadd.f32 %v2863_v19, %v8272_v26  ;;  %v3158_v55 = vadd.f32 1e-06, %v3094_v32  ;;  %v2197_v44 = vadd.f32 %v2141_v35, %v1812_v14  ;;  %v8277_v19 = vld [vmem:[#allocation189_spill] sm:$0xff]  ;;  %v8281_v7 = vld [vmem:[#allocation79_spill] sm:$0xff]  ;;  %v8282_v14 = vld [vmem:[#allocation188_spill] sm:$0xff] }
  0xda   : > { %8274 = vst [vmem:[#allocation64_spill] sm:$0xff] %v5256_v59  ;;  %v2078_v30 = vadd.f32 %v8277_v19, %v8276_v58  ;;  %v8278_v26 = vrot.slane %v8261_v57, 4  ;;  %v1356_v63 = vadd.f32 %v1292_v45, %v8267_v21  ;;  %v5272_v3 = vrot.slane %v8279_v13, 2  ;;  %v8285_v45 = vld [vmem:[#allocation71_spill] sm:$0xff] }
  0xdb   : > { %8271 = vst [vmem:[#allocation62_spill] sm:$0xff] %v5248_v37  ;;  %v1156_v47 = vadd.f32 %v8275_v4, %v5248_v37  ;;  %v2471_v32 = vadd.f32 %v8281_v7, %v5256_v59  ;;  %3746 = vrsqrt.f32 %v3158_v55  ;;  %v2582_v35 = vadd.f32 %v2534_v49, %v2197_v44  ;;  %v8283_v4 = vld [vmem:[#allocation81_spill] sm:$0xff]  ;;  %v8287_v7 = vld [vmem:[#allocation190_spill] sm:$0xff]  ;;  %v8288_v55 = vld [vmem:[#allocation87_spill] sm:$0xff] }
  0xdc   : > { %v3063_v61 = vadd.f32 %v8278_v26, %v5234_v31  ;;  %8280 = vst [vmem:[#allocation73_spill] sm:$0xff] %v5272_v3  ;;  %v1749_v37 = vadd.f32 %v1685_v17, %v8283_v4  ;;  %v3352_v19 = vadd.f32 %v3926_v10, %v3287_v23  ;;  %v5280_v58 = vadd.f32 %v3926_v10, %v3288_v20  ;;  %v8284_v26 = vld [vmem:[#allocation85_spill] sm:$0xff]  ;;  %v8289_v17 = vld [vmem:[#allocation86_spill] sm:$0xff]  ;;  %v8290_v20 = vld [vmem:[#allocation88_spill] sm:$0xff] }
  0xdd   : > { %v1236_v22 = vadd.f32 %v1156_v47, %v8282_v14  ;;  %v2142_v51 = vadd.f32 %v2078_v30, %v8284_v26  ;;  %v5284_v21 = vrot.slane %v8285_v45, 3  ;;  %v2967_v31 = vadd.f32 %v2927_v42, %v2582_v35  ;;  %v8291_v59 = vld [vmem:[#allocation89_spill] sm:$0xff]  ;;  %v8295_v35 = vld [vmem:[#allocation191_spill] sm:$0xff] }
  0xde   : > { %v2864_v49 = vadd.f32 %v8287_v7, %v5272_v3  ;;  %v514_v44 = vrot.slane %v8288_v55, 5  ;;  %v3745_v47 = vpop.eup %3744  ;;  %v2535_v14 = vadd.f32 %v2471_v32, %v8289_v17  ;;  %v7518_v4 = vrot.slane %v8290_v20, 6  ;;  %v8297_v23 = vld [vmem:[#allocation91_spill] sm:$0xff]  ;;  %v8298_v3 = vld [vmem:[#allocation193_spill] sm:$0xff] }
  0xdf   : > { %8286 = vst [vmem:[#allocation188_spill] sm:$0xff] %v5284_v21  ;;  %v1428_v57 = vadd.f32 %v1356_v63, %v1236_v22  ;;  %v5293_v30 = vrot.slane %v8291_v59, 7  ;;  %v3415_v26 = vmul.f32 %v3745_v47, %v3351_v39  ;;  %v3095_v6 = vadd.f32 %v3063_v61, %v2967_v31 }
  0xe0   : > { %v8293_v22 = vrot.slane %v8288_v55, 6  ;;  %v1293_v7 = vadd.f32 %v8295_v35, %v7518_v4  ;;  %v5303_v32 = vrot.slane %v8145_v27, 1  ;;  %v2079_v46 = vadd.f32 %v8298_v3, %v8297_v23  ;;  %v8303_v3 = vld [vmem:[#allocation194_spill] sm:$0xff]  ;;  %v8307_v35 = vld [vmem:[#allocation93_spill] sm:$0xff] }
  0xe1   : > { %8292 = vst [vmem:[#allocation81_spill] sm:$0xff] %v5293_v30  ;;  %v1813_v42 = vadd.f32 %v1749_v37, %v1428_v57  ;;  %v1686_v17 = vadd.f32 %v5293_v30, %v8291_v59  ;;  %3479 = vst [vmem:[%s4225_s28 + $0x80] sm:$0xff] %v3415_v26  ;;  %v3159_v39 = vadd.f32 1e-06, %v3095_v6  ;;  %v8299_v31 = vrot.slane %v8279_v13, 4  ;;  %v8300_v37 = vld [vmem:[#allocation95_spill] sm:$0xff] }
  0xe2   : > { %v5297_v63 = vadd.f32 %v8293_v22, %v514_v44  ;;  %8296 = vst [vmem:[#allocation86_spill] sm:$0xff] %v5303_v32  ;;  %v8301_v47 = vrot.slane %v8285_v45, 4  ;;  %v1357_v4 = vadd.f32 %v1293_v7, %v8290_v20  ;;  %v5319_v55 = vrot.slane %v8151_v33, 2 }
  0xe3   : > { %v2198_v57 = vadd.f32 %v2142_v51, %v1813_v42  ;;  %v2928_v61 = vadd.f32 %v2864_v49, %v8299_v31  ;;  %v2472_v26 = vadd.f32 %v8303_v3, %v5303_v32  ;;  %3748 = vrsqrt.f32 %v3159_v39  ;;  %v8304_v51 = vld [vmem:[#allocation192_spill] sm:$0xff]  ;;  %v8305_v49 = vld [vmem:[#allocation103_spill] sm:$0xff] }
  0xe4   : > { %8294 = vst [vmem:[#allocation85_spill] sm:$0xff] %v5297_v63  ;;  %v1157_v44 = vadd.f32 %v8300_v37, %v5297_v63  ;;  %v3064_v22 = vadd.f32 %v8301_v47, %v5284_v21  ;;  %8302 = vst [vmem:[#allocation95_spill] sm:$0xff] %v5319_v55  ;;  %v1750_v31 = vadd.f32 %v1686_v17, %v8305_v49  ;;  %v8306_v37 = vld [vmem:[#allocation107_spill] sm:$0xff]  ;;  %v5327_v27 = vrot.slane %v8307_v35, 3  ;;  %v8309_v47 = vld [vmem:[#allocation109_spill] sm:$0xff] }
  0xe5   : > { %v2583_v6 = vadd.f32 %v2535_v14, %v2198_v57  ;;  %v2143_v63 = vadd.f32 %v2079_v46, %v8306_v37  ;;  %v2865_v7 = vadd.f32 %v4960_v28, %v5319_v55  ;;  %v515_v30 = vrot.slane %v8309_v47, 5  ;;  %v3747_v23 = vpop.eup %3746  ;;  %v8310_v57 = vld [vmem:[#allocation110_spill] sm:$0xff]  ;;  %v8311_v17 = vld [vmem:[#allocation108_spill] sm:$0xff]  ;;  %v8314_v32 = vld [vmem:[#allocation111_spill] sm:$0xff] }
  0xe6   : > { %v1237_v42 = vadd.f32 %v1157_v44, %v8304_v51  ;;  %8308 = vst [vmem:[#allocation192_spill] sm:$0xff] %v5327_v27  ;;  %v7531_v44 = vrot.slane %v8310_v57, 6  ;;  %v3416_v51 = vmul.f32 %v3747_v23, %v3352_v19  ;;  %v2536_v49 = vadd.f32 %v2472_v26, %v8311_v17  ;;  %v3289_v55 = vld [vmem:[%s3956_s25 + $0x98] sm:$0xff]  ;;  %v8318_v19 = vld [vmem:[#allocation117_spill] sm:$0xff] }
  0xe7   : > { %v2968_v3 = vadd.f32 %v2928_v61, %v2583_v6  ;;  %v8312_v46 = vrot.slane %v8309_v47, 6  ;;  %v5340_v59 = vrot.slane %v8314_v32, 7  ;;  %v8316_v61 = vrot.slane %v8151_v33, 4  ;;  %v8317_v6 = vld [vmem:[#allocation196_spill] sm:$0xff]  ;;  %v8325_v47 = vld [vmem:[#allocation198_spill] sm:$0xff] }
  0xe8   : > { %v1429_v39 = vadd.f32 %v1357_v4, %v1237_v42  ;;  %v1294_v42 = vadd.f32 %v8317_v6, %v7531_v44  ;;  %3480 = vst [vmem:[%s4225_s28 + $0x88] sm:$0xff] %v3416_v51  ;;  %v3354_v51 = vadd.f32 %v3926_v10, %v3289_v55  ;;  %v8324_v44 = vld [vmem:[#allocation125_spill] sm:$0xff]  ;;  %v8329_v55 = vld [vmem:[#allocation115_spill] sm:$0xff] }
  0xe9   : > { %v5337_v37 = vadd.f32 %v8312_v46, %v515_v30  ;;  %8315 = vst [vmem:[#allocation107_spill] sm:$0xff] %v5340_v59  ;;  %v3096_v28 = vadd.f32 %v3064_v22, %v2968_v3  ;;  %v2929_v4 = vadd.f32 %v2865_v7, %v8316_v61  ;;  %v5352_v30 = vrot.slane %v4452_v40, 1  ;;  %v8320_v3 = vld [vmem:[#allocation113_spill] sm:$0xff]  ;;  %v8323_v61 = vld [vmem:[#allocation195_spill] sm:$0xff] }
  0xea   : > { %v1814_v20 = vadd.f32 %v1750_v31, %v1429_v39  ;;  %v1687_v26 = vadd.f32 %v5340_v59, %v8314_v32  ;;  %v8321_v22 = vld [vmem:[#allocation197_spill] sm:$0xff]  ;;  %v1358_v7 = vadd.f32 %v1294_v42, %v8310_v57  ;;  %v5360_v46 = vrot.slane %v8174_v16, 2 }
  0xeb   : > { %8313 = vst [vmem:[#allocation103_spill] sm:$0xff] %v5337_v37  ;;  %v1158_v23 = vadd.f32 %v8318_v19, %v5337_v37  ;;  %8319 = vst [vmem:[#allocation108_spill] sm:$0xff] %v5352_v30  ;;  %v2080_v31 = vadd.f32 %v8321_v22, %v8320_v3  ;;  %v3160_v39 = vadd.f32 1e-06, %v3096_v28  ;;  %v2473_v37 = vadd.f32 %v8325_v47, %v5352_v30  ;;  %v8328_v6 = vld [vmem:[#allocation129_spill] sm:$0xff]  ;;  %v8345_v47 = vld [vmem:[#allocation202_spill] sm:$0xff] }
  0xec   : > { %v2199_v17 = vadd.f32 %v2143_v63, %v1814_v20  ;;  %8322 = vst [vmem:[#allocation117_spill] sm:$0xff] %v5360_v46  ;;  %v1751_v14 = vadd.f32 %v1687_v26, %v8324_v44  ;;  %v8326_v28 = vrot.slane %v8307_v35, 4  ;;  %v8327_v63 = vld [vmem:[#allocation123_spill] sm:$0xff]  ;;  %v8338_v32 = vrot.slane %v8174_v16, 4 }
  0xed   : > { %v1238_v19 = vadd.f32 %v1158_v23, %v8323_v61  ;;  %3750 = vrsqrt.f32 %v3160_v39  ;;  %v2866_v42 = vadd.f32 %v8327_v63, %v5360_v46  ;;  %v2144_v59 = vadd.f32 %v2080_v31, %v8328_v6  ;;  %v8331_v44 = vld [vmem:[#allocation131_spill] sm:$0xff]  ;;  %v3749_v61 = vpop.eup %3748 }
  0xee   : > { %v2584_v40 = vadd.f32 %v2536_v49, %v2199_v17  ;;  %v3065_v20 = vadd.f32 %v8326_v28, %v5327_v27  ;;  %v5374_v23 = vrot.slane %v8329_v55, 3  ;;  %v516_v26 = vrot.slane %v8331_v44, 5  ;;  %v8332_v49 = vld [vmem:[#allocation130_spill] sm:$0xff]  ;;  %v8333_v28 = vld [vmem:[#allocation132_spill] sm:$0xff] }
  0xef   : > { %v1430_v22 = vadd.f32 %v1358_v7, %v1238_v19  ;;  %v2537_v17 = vadd.f32 %v2473_v37, %v8332_v49  ;;  %v7543_v30 = vrot.slane %v8333_v28, 6  ;;  %v3417_v63 = vmul.f32 %v3749_v61, %v5280_v58  ;;  %v8336_v19 = vld [vmem:[#allocation133_spill] sm:$0xff]  ;;  %v8339_v37 = vld [vmem:[#allocation200_spill] sm:$0xff]  ;;  %v3290_v58 = vld [vmem:[%s3956_s25 + $0xa0] sm:$0xff] }
  0xf0   : > { %8330 = vst [vmem:[#allocation195_spill] sm:$0xff] %v5374_v23  ;;  %v2969_v39 = vadd.f32 %v2929_v4, %v2584_v40  ;;  %v8334_v6 = vrot.slane %v8331_v44, 6  ;;  %v5386_v46 = vrot.slane %v8336_v19, 7  ;;  %v2930_v40 = vadd.f32 %v2866_v42, %v8338_v32 }
  0xf1   : > { %v1815_v7 = vadd.f32 %v1751_v14, %v1430_v22  ;;  %v1295_v4 = vadd.f32 %v8339_v37, %v7543_v30  ;;  %v5394_v49 = vrot.slane %v4553_v48, 1  ;;  %3481 = vst [vmem:[%s4225_s28 + $0x90] sm:$0xff] %v3417_v63  ;;  %v8341_v22 = vld [vmem:[#allocation139_spill] sm:$0xff]  ;;  %v5406_v30 = vrot.slane %v8194_v18, 2 }
  0xf2   : > { %v5383_v31 = vadd.f32 %v8334_v6, %v516_v26  ;;  %8337 = vst [vmem:[#allocation129_spill] sm:$0xff] %v5386_v46  ;;  %v3097_v3 = vadd.f32 %v3065_v20, %v2969_v39  ;;  %v1688_v61 = vadd.f32 %v5386_v46, %v8336_v19  ;;  %v8342_v20 = vld [vmem:[#allocation135_spill] sm:$0xff]  ;;  %v8343_v39 = vld [vmem:[#allocation201_spill] sm:$0xff] }
  0xf3   : > { %8340 = vst [vmem:[#allocation130_spill] sm:$0xff] %v5394_v49  ;;  %v2200_v14 = vadd.f32 %v2144_v59, %v1815_v7  ;;  %v2081_v6 = vadd.f32 %v8343_v39, %v8342_v20  ;;  %v1359_v42 = vadd.f32 %v1295_v4, %v8333_v28  ;;  %8344 = vst [vmem:[#allocation139_spill] sm:$0xff] %v5406_v30  ;;  %v8346_v59 = vrot.slane %v8329_v55, 4  ;;  %v8348_v48 = vld [vmem:[#allocation147_spill] sm:$0xff]  ;;  %v8349_v39 = vld [vmem:[#allocation137_spill] sm:$0xff] }
  0xf4   : > { %8335 = vst [vmem:[#allocation125_spill] sm:$0xff] %v5383_v31  ;;  %v1159_v26 = vadd.f32 %v8341_v22, %v5383_v31  ;;  %v3161_v32 = vadd.f32 1e-06, %v3097_v3  ;;  %v2474_v63 = vadd.f32 %v8345_v47, %v5394_v49  ;;  %v8347_v22 = vld [vmem:[#allocation199_spill] sm:$0xff]  ;;  %v1752_v37 = vadd.f32 %v1688_v61, %v8348_v48 }
  0xf5   : > { %v2585_v44 = vadd.f32 %v2537_v17, %v2200_v14  ;;  %v3066_v7 = vadd.f32 %v8346_v59, %v5374_v23  ;;  %v3355_v3 = vadd.f32 %v3926_v10, %v3290_v58  ;;  %v5417_v4 = vrot.slane %v8349_v39, 3  ;;  %v8351_v17 = vld [vmem:[#allocation149_spill] sm:$0xff] }
  0xf6   : > { %v1239_v31 = vadd.f32 %v1159_v26, %v8347_v22  ;;  %3752 = vrsqrt.f32 %v3161_v32  ;;  %v2867_v46 = vadd.f32 %v5051_v60, %v5406_v30  ;;  %v2145_v14 = vadd.f32 %v2081_v6, %v8351_v17  ;;  %v8352_v22 = vld [vmem:[#allocation152_spill] sm:$0xff] }
  0xf7   : > { %8350 = vst [vmem:[#allocation199_spill] sm:$0xff] %v5417_v4  ;;  %v2970_v20 = vadd.f32 %v2930_v40, %v2585_v44  ;;  %v517_v59 = vrot.slane %v8200_v43, 5  ;;  %v3751_v26 = vpop.eup %3750  ;;  %v2538_v48 = vadd.f32 %v2474_v63, %v8352_v22  ;;  %v7553_v61 = vrot.slane %v8201_v52, 6  ;;  %v8357_v63 = vld [vmem:[#allocation203_spill] sm:$0xff] }
  0xf8   : > { %v1431_v47 = vadd.f32 %v1359_v42, %v1239_v31  ;;  %v5427_v32 = vrot.slane %v4653_v0, 7  ;;  %v3418_v60 = vmul.f32 %v3751_v26, %v3354_v51  ;;  %v8354_v40 = vrot.slane %v8200_v43, 6  ;;  %v8360_v26 = vld [vmem:[#allocation162_spill] sm:$0xff] }
  0xf9   : > { %v3098_v44 = vadd.f32 %v3066_v7, %v2970_v20  ;;  %v8356_v42 = vrot.slane %v8194_v18, 4  ;;  %v1296_v22 = vadd.f32 %v8357_v63, %v7553_v61  ;;  %v5439_v58 = vrot.slane %v4711_v24, 1  ;;  %v3292_v20 = vld [vmem:[%s3956_s25 + $0xb0] sm:$0xff]  ;;  %v8359_v7 = vld [vmem:[#allocation159_spill] sm:$0xff] }
  0xfa   : > { %8353 = vst [vmem:[#allocation147_spill] sm:$0xff] %v5427_v32  ;;  %v1816_v31 = vadd.f32 %v1752_v37, %v1431_v47  ;;  %v5431_v6 = vadd.f32 %v8354_v40, %v517_v59  ;;  %v1689_v30 = vadd.f32 %v5427_v32, %v4653_v0  ;;  %3482 = vst [vmem:[%s4225_s28 + $0x98] sm:$0xff] %v3418_v60  ;;  %v3291_v47 = vld [vmem:[%s3956_s25 + $0xa8] sm:$0xff]  ;;  %v8361_v40 = vrot.slane %v8349_v39, 4 }
  0xfb   : > { %v2931_v17 = vadd.f32 %v2867_v46, %v8356_v42  ;;  %8358 = vst [vmem:[#allocation152_spill] sm:$0xff] %v5439_v58  ;;  %v3162_v51 = vadd.f32 1e-06, %v3098_v44  ;;  %v2082_v46 = vadd.f32 %v5073_v56, %v8360_v26  ;;  %v1360_v61 = vadd.f32 %v1296_v22, %v8201_v52  ;;  %v8362_v44 = vld [vmem:[#allocation204_spill] sm:$0xff]  ;;  %v8364_v22 = vld [vmem:[#allocation157_spill] sm:$0xff] }
  0xfc   : > { %8355 = vst [vmem:[#allocation149_spill] sm:$0xff] %v5431_v6  ;;  %v2201_v37 = vadd.f32 %v2145_v14, %v1816_v31  ;;  %v1160_v59 = vadd.f32 %v8359_v7, %v5431_v6  ;;  %v3067_v42 = vadd.f32 %v8361_v40, %v5417_v4  ;;  %v5455_v43 = vrot.slane %v8212_v5, 2  ;;  %v8363_v7 = vld [vmem:[#allocation169_spill] sm:$0xff] }
  0xfd   : > { %v2475_v60 = vadd.f32 %v5089_v34, %v5439_v58  ;;  %3754 = vrsqrt.f32 %v3162_v51  ;;  %v1753_v6 = vadd.f32 %v1689_v30, %v8363_v7  ;;  %v3356_v56 = vadd.f32 %v3926_v10, %v3291_v47 }
  0xfe   : > { %v2586_v14 = vadd.f32 %v2538_v48, %v2201_v37  ;;  %v1240_v31 = vadd.f32 %v1160_v59, %v8362_v44  ;;  %v5463_v24 = vadd.f32 %v3926_v10, %v3292_v20  ;;  %v2146_v40 = vadd.f32 %v2082_v46, %v4715_v53 }
  0xff   : > { %v5467_v63 = vrot.slane %v8364_v22, 3  ;;  %v2868_v48 = vadd.f32 %v5101_v54, %v5455_v43  ;;  %v518_v51 = vrot.slane %v3922_v8, 5  ;;  %v2539_v30 = vadd.f32 %v2475_v60, %v4726_v15 }
 0x100   : > { %v2971_v32 = vadd.f32 %v2931_v17, %v2586_v14  ;;  %v1432_v26 = vadd.f32 %v1360_v61, %v1240_v31  ;;  %v3753_v37 = vpop.eup %3752  ;;  %v7566_v47 = vrot.slane %v8364_v22, 4  ;;  %v7561_v20 = vrot.slane %v3928_v11, 6 }
 0x101   : > { %v5476_v53 = vrot.slane %v3930_v12, 7  ;;  %v3419_v59 = vmul.f32 %v3753_v37, %v3355_v3  ;;  %v8366_v61 = vrot.slane %v3922_v8, 6  ;;  %v5486_v15 = vrot.slane %v3924_v9, 1 }
 0x102   : > { %v3099_v46 = vadd.f32 %v3067_v42, %v2971_v32  ;;  %v1817_v17 = vadd.f32 %v1753_v6, %v1432_v26  ;;  %v1297_v44 = vadd.f32 %v5110_v41, %v7561_v20  ;;  %v2083_v31 = vadd.f32 %v5120_v29, %v3992_v36  ;;  %v8370_v42 = vld [vmem:[#allocation173_spill] sm:$0xff]  ;;  %v8372_v20 = vld [vmem:[#allocation10_spill] sm:$0xff] }
 0x103   : > { %8365 = vst [vmem:[#allocation159_spill] sm:$0xff] %v5476_v53  ;;  %v5480_v14 = vadd.f32 %v8366_v61, %v518_v51  ;;  %8368 = vst [vmem:[#allocation169_spill] sm:$0xff] %v5486_v15  ;;  %v1690_v60 = vadd.f32 %v5476_v53, %v3930_v12  ;;  %v8369_v6 = vrot.slane %v8212_v5, 4  ;;  %v3068_v51 = vadd.f32 %v7566_v47, %v5467_v63  ;;  %v8376_v29 = vld [vmem:[#allocation9_spill] sm:$0xff] }
 0x104   : > { %3483 = vst [vmem:[%s4225_s28 + $0xa0] sm:$0xff] %v3419_v59  ;;  %v3163_v3 = vadd.f32 1e-06, %v3099_v46  ;;  %v2202_v32 = vadd.f32 %v2146_v40, %v1817_v17  ;;  %v1361_v37 = vadd.f32 %v1297_v44, %v3928_v11  ;;  %v5502_v61 = vrot.slane %v8225_v38, 2  ;;  %v8373_v46 = vld [vmem:[#allocation206_spill] sm:$0xff] }
 0x105   : > { %8367 = vst [vmem:[#allocation204_spill] sm:$0xff] %v5480_v14  ;;  %v2932_v26 = vadd.f32 %v2868_v48, %v8369_v6  ;;  %v1161_v7 = vadd.f32 %v8370_v42, %v5480_v14  ;;  %v2476_v59 = vadd.f32 %v8372_v20, %v5486_v15  ;;  %v8374_v48 = vld [vmem:[#allocation175_spill] sm:$0xff]  ;;  %v8375_v42 = vld [vmem:[#allocation176_spill] sm:$0xff]  ;;  %v5510_v14 = vrot.slane %v8376_v29, 3 }
 0x106   : > { %8371 = vst [vmem:[#allocation173_spill] sm:$0xff] %v5502_v61  ;;  %3756 = vrsqrt.f32 %v3163_v3  ;;  %v2587_v40 = vadd.f32 %v2539_v30, %v2202_v32  ;;  %v1754_v6 = vadd.f32 %v1690_v60, %v8374_v48  ;;  %v2147_v8 = vadd.f32 %v2083_v31, %v8375_v42  ;;  %v8378_v60 = vld [vmem:[#allocation177_spill] sm:$0xff]  ;;  %v8391_v30 = vld [vmem:[#allocation180_spill] sm:$0xff] }
 0x107   : > { %v1241_v17 = vadd.f32 %v1161_v7, %v8373_v46  ;;  %8377 = vst [vmem:[#allocation206_spill] sm:$0xff] %v5510_v14  ;;  %v2869_v44 = vadd.f32 %v5144_v50, %v5502_v61  ;;  %v519_v47 = vrot.slane %v4032_v62, 5  ;;  %v3755_v41 = vpop.eup %3754  ;;  %v7573_v32 = vrot.slane %v4037_v1, 6  ;;  %v3293_v61 = vld [vmem:[%s3956_s25 + $0xb8] sm:$0xff] }
 0x108   : > { %v2972_v20 = vadd.f32 %v2932_v26, %v2587_v40  ;;  %v3420_v7 = vmul.f32 %v3755_v41, %v3356_v56  ;;  %v2540_v46 = vadd.f32 %v2476_v59, %v8378_v60  ;;  %v8379_v31 = vrot.slane %v4032_v62, 6  ;;  %v8383_v56 = vld [vmem:[#allocation178_spill] sm:$0xff]  ;;  %v8384_v59 = vld [vmem:[#allocation25_spill] sm:$0xff] }
 0x109   : > { %v1433_v3 = vadd.f32 %v1361_v37, %v1241_v17  ;;  %v5523_v42 = vrot.slane %v4039_v2, 7  ;;  %v8382_v26 = vrot.slane %v8225_v38, 4  ;;  %v1298_v40 = vadd.f32 %v5157_v25, %v7573_v32  ;;  %v8390_v32 = vld [vmem:[#allocation15_spill] sm:$0xff] }
 0x10a   : > { %v5520_v48 = vadd.f32 %v8379_v31, %v519_v47  ;;  %v3100_v50 = vadd.f32 %v3068_v51, %v2972_v20  ;;  %3484 = vst [vmem:[%s4225_s28 + $0xa8] sm:$0xff] %v3420_v7  ;;  %v5535_v47 = vrot.slane %v8384_v59, 1  ;;  %v8386_v20 = vld [vmem:[#allocation32_spill] sm:$0xff]  ;;  %v3358_v7 = vadd.f32 %v3926_v10, %v3293_v61  ;;  %v8396_v61 = vld [vmem:[#allocation29_spill] sm:$0xff] }
 0x10b   : > { %8381 = vst [vmem:[#allocation176_spill] sm:$0xff] %v5523_v42  ;;  %v1818_v15 = vadd.f32 %v1754_v6, %v1433_v3  ;;  %v2933_v37 = vadd.f32 %v2869_v44, %v8382_v26  ;;  %v1691_v17 = vadd.f32 %v5523_v42, %v4039_v2  ;;  %v8387_v51 = vld [vmem:[#allocation208_spill] sm:$0xff]  ;;  %v1362_v44 = vadd.f32 %v1298_v40, %v4037_v1  ;;  %v8395_v42 = vld [vmem:[#allocation181_spill] sm:$0xff] }
 0x10c   : > { %8380 = vst [vmem:[#allocation175_spill] sm:$0xff] %v5520_v48  ;;  %v1162_v41 = vadd.f32 %v8383_v56, %v5520_v48  ;;  %8385 = vst [vmem:[#allocation177_spill] sm:$0xff] %v5535_v47  ;;  %v2084_v6 = vadd.f32 %v8387_v51, %v8386_v20  ;;  %v3164_v3 = vadd.f32 1e-06, %v3100_v50  ;;  %v8388_v31 = vld [vmem:[#allocation28_spill] sm:$0xff]  ;;  %v8392_v48 = vld [vmem:[#allocation209_spill] sm:$0xff] }
 0x10d   : > { %v2203_v60 = vadd.f32 %v2147_v8, %v1818_v15  ;;  %v5543_v26 = vrot.slane %v8388_v31, 2  ;;  %v1755_v62 = vadd.f32 %v1691_v17, %v8391_v30  ;;  %v2477_v59 = vadd.f32 %v8392_v48, %v5535_v47  ;;  %v8394_v15 = vld [vmem:[#allocation179_spill] sm:$0xff]  ;;  %v8398_v30 = vld [vmem:[#allocation44_spill] sm:$0xff] }
 0x10e   : > { %v1242_v56 = vadd.f32 %v1162_v41, %v8390_v32  ;;  %3758 = vrsqrt.f32 %v3164_v3  ;;  %v8393_v50 = vrot.slane %v8376_v29, 4  ;;  %v2148_v20 = vadd.f32 %v2084_v6, %v8395_v42 }
 0x10f   : > { %8389 = vst [vmem:[#allocation178_spill] sm:$0xff] %v5543_v26  ;;  %v2588_v25 = vadd.f32 %v2540_v46, %v2203_v60  ;;  %v2870_v40 = vadd.f32 %v8394_v15, %v5543_v26  ;;  %v5557_v32 = vrot.slane %v8396_v61, 3  ;;  %v520_v41 = vrot.slane %v8398_v30, 5  ;;  %v8399_v46 = vld [vmem:[#allocation182_spill] sm:$0xff] }
 0x110   : > { %v3069_v8 = vadd.f32 %v8393_v50, %v5510_v14  ;;  %v1434_v51 = vadd.f32 %v1362_v44, %v1242_v56  ;;  %v3757_v17 = vpop.eup %3756  ;;  %v2541_v60 = vadd.f32 %v2477_v59, %v8399_v46  ;;  %v8400_v50 = vld [vmem:[#allocation47_spill] sm:$0xff]  ;;  %v8401_v42 = vrot.slane %v8398_v30, 6  ;;  %v8403_v56 = vld [vmem:[#allocation52_spill] sm:$0xff]  ;;  %v8407_v46 = vld [vmem:[#allocation45_spill] sm:$0xff] }
 0x111   : > { %8397 = vst [vmem:[#allocation15_spill] sm:$0xff] %v5557_v32  ;;  %v2973_v3 = vadd.f32 %v2933_v37, %v2588_v25  ;;  %v7589_v47 = vrot.slane %v8400_v50, 6  ;;  %v3421_v15 = vmul.f32 %v3757_v17, %v5463_v24  ;;  %v5569_v26 = vrot.slane %v8403_v56, 7  ;;  %v8406_v37 = vld [vmem:[#allocation40_spill] sm:$0xff]  ;;  %v8412_v30 = vld [vmem:[#allocation46_spill] sm:$0xff] }
 0x112   : > { %v1819_v44 = vadd.f32 %v1755_v62, %v1434_v51  ;;  %v5566_v6 = vadd.f32 %v8401_v42, %v520_v41  ;;  %v8405_v1 = vrot.slane %v8388_v31, 4  ;;  %v5577_v48 = vrot.slane %v8407_v46, 1  ;;  %v3294_v62 = vld [vmem:[%s3956_s25 + $0xc0] sm:$0xff]  ;;  %v8409_v51 = vld [vmem:[#allocation184_spill] sm:$0xff]  ;;  %v8414_v46 = vld [vmem:[#allocation49_spill] sm:$0xff] }
 0x113   : > { %8404 = vst [vmem:[#allocation181_spill] sm:$0xff] %v5569_v26  ;;  %v3101_v2 = vadd.f32 %v3069_v8, %v2973_v3  ;;  %v1299_v59 = vadd.f32 %v8406_v37, %v7589_v47  ;;  %3485 = vst [vmem:[%s4225_s28 + $0xb0] sm:$0xff] %v3421_v15  ;;  %v1692_v17 = vadd.f32 %v5569_v26, %v8403_v56  ;;  %v8410_v8 = vld [vmem:[#allocation61_spill] sm:$0xff]  ;;  %v8411_v3 = vld [vmem:[#allocation42_spill] sm:$0xff]  ;;  %v5589_v47 = vrot.slane %v8412_v30, 2 }
 0x114   : > { %8402 = vst [vmem:[#allocation180_spill] sm:$0xff] %v5566_v6  ;;  %v2934_v25 = vadd.f32 %v2870_v40, %v8405_v1  ;;  %8408 = vst [vmem:[#allocation182_spill] sm:$0xff] %v5577_v48  ;;  %v2204_v24 = vadd.f32 %v2148_v20, %v1819_v44  ;;  %v1163_v41 = vadd.f32 %v8409_v51, %v5566_v6  ;;  %v8415_v20 = vrot.slane %v8396_v61, 4  ;;  %v8416_v51 = vld [vmem:[#allocation37_spill] sm:$0xff] }
 0x115   : > { %v2085_v42 = vadd.f32 %v8411_v3, %v8410_v8  ;;  %v3165_v1 = vadd.f32 1e-06, %v3101_v2  ;;  %v1363_v40 = vadd.f32 %v1299_v59, %v8400_v50  ;;  %8413 = vst [vmem:[#allocation184_spill] sm:$0xff] %v5589_v47  ;;  %v2478_v15 = vadd.f32 %v8414_v46, %v5577_v48  ;;  %v8417_v26 = vld [vmem:[#allocation185_spill] sm:$0xff]  ;;  %v8418_v3 = vld [vmem:[#allocation48_spill] sm:$0xff]  ;;  %v8420_v8 = vld [vmem:[#allocation183_spill] sm:$0xff] }
 0x116   : > { %v2589_v37 = vadd.f32 %v2541_v60, %v2204_v24  ;;  %v3070_v44 = vadd.f32 %v8415_v20, %v5557_v32  ;;  %v1243_v6 = vadd.f32 %v1163_v41, %v8416_v51  ;;  %v1756_v56 = vadd.f32 %v1692_v17, %v8417_v26  ;;  %v8421_v60 = vld [vmem:[#allocation186_spill] sm:$0xff]  ;;  %v8423_v51 = vld [vmem:[#allocation56_spill] sm:$0xff]  ;;  %v8424_v17 = vld [vmem:[#allocation67_spill] sm:$0xff] }
 0x117   : > { %3760 = vrsqrt.f32 %v3165_v1  ;;  %v3359_v2 = vadd.f32 %v3926_v10, %v3294_v62  ;;  %v5600_v59 = vrot.slane %v8418_v3, 3  ;;  %v2871_v50 = vadd.f32 %v8420_v8, %v5589_v47  ;;  %v8422_v48 = vld [vmem:[#allocation66_spill] sm:$0xff]  ;;  %v8425_v32 = vld [vmem:[#allocation69_spill] sm:$0xff] }
 0x118   : > { %v2974_v31 = vadd.f32 %v2934_v25, %v2589_v37  ;;  %v1435_v46 = vadd.f32 %v1363_v40, %v1243_v6  ;;  %v2149_v24 = vadd.f32 %v2085_v42, %v8421_v60  ;;  %v521_v20 = vrot.slane %v8422_v48, 5  ;;  %v3759_v41 = vpop.eup %3758 }
 0x119   : > { %8419 = vst [vmem:[#allocation37_spill] sm:$0xff] %v5600_v59  ;;  %v2542_v26 = vadd.f32 %v2478_v15, %v8423_v51  ;;  %v7603_v1 = vrot.slane %v8424_v17, 6  ;;  %v5610_v61 = vrot.slane %v8425_v32, 7  ;;  %v3422_v8 = vmul.f32 %v3759_v41, %v3358_v7  ;;  %v8430_v15 = vld [vmem:[#allocation57_spill] sm:$0xff]  ;;  %v3295_v7 = vld [vmem:[%s3956_s25 + $0xc8] sm:$0xff]  ;;  %v8433_v41 = vld [vmem:[#allocation70_spill] sm:$0xff] }
 0x11a   : > { %v3102_v25 = vadd.f32 %v3070_v44, %v2974_v31  ;;  %v1820_v6 = vadd.f32 %v1756_v56, %v1435_v46  ;;  %v8427_v37 = vrot.slane %v8422_v48, 6  ;;  %v8429_v40 = vrot.slane %v8412_v30, 4  ;;  %v3296_v46 = vld [vmem:[%s3956_s25 + $0xd0] sm:$0xff]  ;;  %v8432_v44 = vld [vmem:[#allocation187_spill] sm:$0xff] }
 0x11b   : > { %8426 = vst [vmem:[#allocation185_spill] sm:$0xff] %v5610_v61  ;;  %v1300_v51 = vadd.f32 %v8430_v15, %v7603_v1  ;;  %v5622_v62 = vrot.slane %v8279_v13, 1  ;;  %v1693_v47 = vadd.f32 %v5610_v61, %v8425_v32  ;;  %3486 = vst [vmem:[%s4225_s28 + $0xb8] sm:$0xff] %v3422_v8  ;;  %v5638_v13 = vrot.slane %v8285_v45, 2  ;;  %v8437_v8 = vld [vmem:[#allocation73_spill] sm:$0xff] }
 0x11c   : > { %v5614_v42 = vadd.f32 %v8427_v37, %v521_v20  ;;  %v2935_v60 = vadd.f32 %v2871_v50, %v8429_v40  ;;  %v3166_v31 = vadd.f32 1e-06, %v3102_v25  ;;  %v2205_v56 = vadd.f32 %v2149_v24, %v1820_v6  ;;  %v8434_v50 = vld [vmem:[#allocation64_spill] sm:$0xff]  ;;  %v8438_v6 = vld [vmem:[#allocation62_spill] sm:$0xff] }
 0x11d   : > { %8431 = vst [vmem:[#allocation56_spill] sm:$0xff] %v5622_v62  ;;  %v2086_v37 = vadd.f32 %v8434_v50, %v8433_v41  ;;  %v8435_v40 = vrot.slane %v8418_v3, 4  ;;  %v1364_v48 = vadd.f32 %v1300_v51, %v8424_v17  ;;  %8436 = vst [vmem:[#allocation187_spill] sm:$0xff] %v5638_v13  ;;  %v2479_v25 = vadd.f32 %v8437_v8, %v5622_v62  ;;  %v8441_v51 = vld [vmem:[#allocation72_spill] sm:$0xff]  ;;  %v8446_v8 = vld [vmem:[#allocation91_spill] sm:$0xff] }
 0x11e   : > { %8428 = vst [vmem:[#allocation186_spill] sm:$0xff] %v5614_v42  ;;  %v1164_v20 = vadd.f32 %v8432_v44, %v5614_v42  ;;  %3762 = vrsqrt.f32 %v3166_v31  ;;  %v2590_v24 = vadd.f32 %v2542_v26, %v2205_v56  ;;  %v8439_v44 = vld [vmem:[#allocation189_spill] sm:$0xff]  ;;  %v3360_v50 = vadd.f32 %v3926_v10, %v3295_v7  ;;  %v8443_v31 = vld [vmem:[#allocation88_spill] sm:$0xff] }
 0x11f   : > { %v3071_v1 = vadd.f32 %v8435_v40, %v5600_v59  ;;  %v1757_v42 = vadd.f32 %v1693_v47, %v8439_v44  ;;  %v5646_v61 = vadd.f32 %v3926_v10, %v3296_v46  ;;  %v8440_v40 = vld [vmem:[#allocation79_spill] sm:$0xff]  ;;  %v5650_v32 = vrot.slane %v8441_v51, 3  ;;  %v8444_v47 = vld [vmem:[#allocation190_spill] sm:$0xff]  ;;  %v8445_v46 = vld [vmem:[#allocation89_spill] sm:$0xff] }
 0x120   : > { %v1244_v15 = vadd.f32 %v1164_v20, %v8438_v6  ;;  %v2150_v41 = vadd.f32 %v2086_v37, %v8440_v40  ;;  %v2975_v17 = vadd.f32 %v2935_v60, %v2590_v24  ;;  %v2872_v26 = vadd.f32 %v5284_v21, %v5638_v13  ;;  %v8450_v24 = vld [vmem:[#allocation81_spill] sm:$0xff]  ;;  %v8452_v7 = vld [vmem:[#allocation92_spill] sm:$0xff]  ;;  %v8453_v13 = vld [vmem:[#allocation86_spill] sm:$0xff] }
 0x121   : > { %8442 = vst [vmem:[#allocation62_spill] sm:$0xff] %v5650_v32  ;;  %v522_v56 = vrot.slane %v8443_v31, 5  ;;  %v3761_v20 = vpop.eup %3760  ;;  %v2543_v6 = vadd.f32 %v2479_v25, %v8444_v47  ;;  %v7619_v44 = vrot.slane %v8445_v46, 6  ;;  %v5659_v37 = vrot.slane %v8446_v8, 7 }
 0x122   : > { %v1436_v59 = vadd.f32 %v1364_v48, %v1244_v15  ;;  %v3423_v40 = vmul.f32 %v3761_v20, %v3359_v2  ;;  %v3103_v62 = vadd.f32 %v3071_v1, %v2975_v17  ;;  %v8448_v48 = vrot.slane %v8443_v31, 6 }
 0x123   : > { %8447 = vst [vmem:[#allocation189_spill] sm:$0xff] %v5659_v37  ;;  %v1301_v21 = vadd.f32 %v8450_v24, %v7619_v44  ;;  %v5669_v25 = vrot.slane %v8151_v33, 1  ;;  %v1694_v47 = vadd.f32 %v5659_v37, %v8446_v8  ;;  %v2087_v3 = vadd.f32 %v8453_v13, %v8452_v7  ;;  %v8458_v13 = vld [vmem:[#allocation95_spill] sm:$0xff]  ;;  %v8462_v24 = vld [vmem:[#allocation94_spill] sm:$0xff] }
 0x124   : > { %v1821_v60 = vadd.f32 %v1757_v42, %v1436_v59  ;;  %v5663_v15 = vadd.f32 %v8448_v48, %v522_v56  ;;  %3487 = vst [vmem:[%s4225_s28 + $0xc0] sm:$0xff] %v3423_v40  ;;  %v3167_v2 = vadd.f32 1e-06, %v3103_v62  ;;  %v8454_v17 = vrot.slane %v8285_v45, 4  ;;  %v8455_v42 = vld [vmem:[#allocation191_spill] sm:$0xff] }
 0x125   : > { %8451 = vst [vmem:[#allocation190_spill] sm:$0xff] %v5669_v25  ;;  %v8456_v20 = vrot.slane %v8441_v51, 4  ;;  %v1365_v44 = vadd.f32 %v1301_v21, %v8445_v46  ;;  %v5685_v31 = vrot.slane %v8307_v35, 2  ;;  %v2480_v40 = vadd.f32 %v8458_v13, %v5669_v25  ;;  %v8468_v25 = vld [vmem:[#allocation113_spill] sm:$0xff] }
 0x126   : > { %8449 = vst [vmem:[#allocation79_spill] sm:$0xff] %v5663_v15  ;;  %v2206_v59 = vadd.f32 %v2150_v41, %v1821_v60  ;;  %v2936_v1 = vadd.f32 %v2872_v26, %v8454_v17  ;;  %v1165_v56 = vadd.f32 %v8455_v42, %v5663_v15  ;;  %3764 = vrsqrt.f32 %v3167_v2  ;;  %v8459_v41 = vld [vmem:[#allocation85_spill] sm:$0xff]  ;;  %v8461_v42 = vld [vmem:[#allocation194_spill] sm:$0xff] }
 0x127   : > { %v3072_v48 = vadd.f32 %v8456_v20, %v5650_v32  ;;  %8457 = vst [vmem:[#allocation191_spill] sm:$0xff] %v5685_v31  ;;  %v8460_v26 = vld [vmem:[#allocation193_spill] sm:$0xff]  ;;  %v2151_v15 = vadd.f32 %v2087_v3, %v8461_v42  ;;  %v5693_v33 = vrot.slane %v8462_v24, 3  ;;  %v2873_v21 = vadd.f32 %v5327_v27, %v5685_v31  ;;  %v3297_v31 = vld [vmem:[%s3956_s25 + $0xd8] sm:$0xff] }
 0x128   : > { %v2591_v62 = vadd.f32 %v2543_v6, %v2206_v59  ;;  %v1245_v60 = vadd.f32 %v1165_v56, %v8459_v41  ;;  %v1758_v17 = vadd.f32 %v1694_v47, %v8460_v26  ;;  %v523_v20 = vrot.slane %v8310_v57, 5  ;;  %v3763_v37 = vpop.eup %3762  ;;  %v8464_v59 = vld [vmem:[#allocation111_spill] sm:$0xff]  ;;  %v8465_v47 = vld [vmem:[#allocation101_spill] sm:$0xff] }
 0x129   : > { %8463 = vst [vmem:[#allocation85_spill] sm:$0xff] %v5693_v33  ;;  %v7631_v56 = vrot.slane %v8464_v59, 6  ;;  %v3424_v41 = vmul.f32 %v3763_v37, %v3360_v50  ;;  %v2544_v26 = vadd.f32 %v2480_v40, %v8465_v47  ;;  %v8466_v3 = vrot.slane %v8310_v57, 6  ;;  %v8471_v50 = vld [vmem:[#allocation196_spill] sm:$0xff]  ;;  %v8478_v57 = vld [vmem:[#allocation117_spill] sm:$0xff] }
 0x12a   : > { %v2976_v13 = vadd.f32 %v2936_v1, %v2591_v62  ;;  %v1437_v2 = vadd.f32 %v1365_v44, %v1245_v60  ;;  %v5706_v7 = vrot.slane %v8468_v25, 7  ;;  %v8469_v1 = vrot.slane %v8307_v35, 4  ;;  %v8470_v62 = vld [vmem:[#allocation107_spill] sm:$0xff] }
 0x12b   : > { %v5703_v42 = vadd.f32 %v8466_v3, %v523_v20  ;;  %v1302_v60 = vadd.f32 %v8470_v62, %v7631_v56  ;;  %3488 = vst [vmem:[%s4225_s28 + $0xc8] sm:$0xff] %v3424_v41  ;;  %v5718_v40 = vrot.slane %v8174_v16, 1  ;;  %v5726_v3 = vrot.slane %v8329_v55, 2  ;;  %v8477_v56 = vld [vmem:[#allocation197_spill] sm:$0xff] }
 0x12c   : > { %v3104_v27 = vadd.f32 %v3072_v48, %v2976_v13  ;;  %v1822_v8 = vadd.f32 %v1758_v17, %v1437_v2  ;;  %v2937_v44 = vadd.f32 %v2873_v21, %v8469_v1  ;;  %v1695_v20 = vadd.f32 %v5706_v7, %v8468_v25  ;;  %v8473_v13 = vld [vmem:[#allocation114_spill] sm:$0xff]  ;;  %v8474_v48 = vld [vmem:[#allocation108_spill] sm:$0xff]  ;;  %v8476_v1 = vld [vmem:[#allocation103_spill] sm:$0xff] }
 0x12d   : > { %8467 = vst [vmem:[#allocation193_spill] sm:$0xff] %v5703_v42  ;;  %v1166_v37 = vadd.f32 %v8471_v50, %v5703_v42  ;;  %8472 = vst [vmem:[#allocation194_spill] sm:$0xff] %v5718_v40  ;;  %v2088_v17 = vadd.f32 %v8474_v48, %v8473_v13  ;;  %v1366_v21 = vadd.f32 %v1302_v60, %v8464_v59  ;;  %v8480_v48 = vld [vmem:[#allocation198_spill] sm:$0xff] }
 0x12e   : > { %v3168_v2 = vadd.f32 1e-06, %v3104_v27  ;;  %v2207_v47 = vadd.f32 %v2151_v15, %v1822_v8  ;;  %8475 = vst [vmem:[#allocation101_spill] sm:$0xff] %v5726_v3  ;;  %v3362_v41 = vadd.f32 %v3926_v10, %v3297_v31  ;;  %v1759_v6 = vadd.f32 %v1695_v20, %v8477_v56  ;;  %v8481_v31 = vld [vmem:[#allocation116_spill] sm:$0xff] }
 0x12f   : > { %v1246_v50 = vadd.f32 %v1166_v37, %v8476_v1  ;;  %v2481_v42 = vadd.f32 %v8478_v57, %v5718_v40  ;;  %v8479_v27 = vrot.slane %v8462_v24, 4  ;;  %v2874_v15 = vadd.f32 %v5374_v23, %v5726_v3 }
 0x130   : > { %3766 = vrsqrt.f32 %v3168_v2  ;;  %v2592_v16 = vadd.f32 %v2544_v26, %v2207_v47  ;;  %v2152_v62 = vadd.f32 %v2088_v17, %v8480_v48  ;;  %v5740_v37 = vrot.slane %v8481_v31, 3  ;;  %v3765_v20 = vpop.eup %3764  ;;  %v8483_v26 = vld [vmem:[#allocation123_spill] sm:$0xff] }
 0x131   : > { %v3073_v8 = vadd.f32 %v8479_v27, %v5693_v33  ;;  %v1438_v60 = vadd.f32 %v1366_v21, %v1246_v50  ;;  %v524_v56 = vrot.slane %v8333_v28, 5  ;;  %v2545_v47 = vadd.f32 %v2481_v42, %v8483_v26  ;;  %v8486_v50 = vld [vmem:[#allocation135_spill] sm:$0xff]  ;;  %v8489_v42 = vld [vmem:[#allocation129_spill] sm:$0xff] }
 0x132   : > { %8482 = vst [vmem:[#allocation196_spill] sm:$0xff] %v5740_v37  ;;  %v2977_v2 = vadd.f32 %v2937_v44, %v2592_v16  ;;  %v7640_v27 = vrot.slane %v8336_v19, 6  ;;  %v3425_v23 = vmul.f32 %v3765_v20, %v5646_v61  ;;  %v8484_v48 = vrot.slane %v8333_v28, 6  ;;  %v3298_v61 = vld [vmem:[%s3956_s25 + $0xe0] sm:$0xff] }
 0x133   : > { %v1823_v21 = vadd.f32 %v1759_v6, %v1438_v60  ;;  %v5752_v57 = vrot.slane %v8486_v50, 7  ;;  %v8488_v40 = vrot.slane %v8329_v55, 4  ;;  %v5760_v26 = vrot.slane %v8194_v18, 1  ;;  %v8491_v60 = vld [vmem:[#allocation200_spill] sm:$0xff] }
 0x134   : > { %v5749_v17 = vadd.f32 %v8484_v48, %v524_v56  ;;  %v3105_v3 = vadd.f32 %v3073_v8, %v2977_v2  ;;  %v1303_v44 = vadd.f32 %v8489_v42, %v7640_v27  ;;  %3489 = vst [vmem:[%s4225_s28 + $0xd0] sm:$0xff] %v3425_v23  ;;  %v8492_v8 = vld [vmem:[#allocation136_spill] sm:$0xff]  ;;  %v5772_v48 = vrot.slane %v8349_v39, 2  ;;  %v8494_v27 = vld [vmem:[#allocation139_spill] sm:$0xff] }
 0x135   : > { %8487 = vst [vmem:[#allocation103_spill] sm:$0xff] %v5752_v57  ;;  %v2938_v16 = vadd.f32 %v2874_v15, %v8488_v40  ;;  %8490 = vst [vmem:[#allocation197_spill] sm:$0xff] %v5760_v26  ;;  %v2208_v6 = vadd.f32 %v2152_v62, %v1823_v21  ;;  %v1696_v20 = vadd.f32 %v5752_v57, %v8486_v50  ;;  %v8495_v62 = vrot.slane %v8481_v31, 4 }
 0x136   : > { %8485 = vst [vmem:[#allocation114_spill] sm:$0xff] %v5749_v17  ;;  %v1167_v56 = vadd.f32 %v8491_v60, %v5749_v17  ;;  %v2089_v2 = vadd.f32 %v5394_v49, %v8492_v8  ;;  %v3169_v40 = vadd.f32 1e-06, %v3105_v3  ;;  %v1367_v15 = vadd.f32 %v1303_v44, %v8336_v19  ;;  %8493 = vst [vmem:[#allocation198_spill] sm:$0xff] %v5772_v48  ;;  %v8496_v60 = vld [vmem:[#allocation125_spill] sm:$0xff]  ;;  %v8498_v49 = vld [vmem:[#allocation138_spill] sm:$0xff] }
 0x137   : > { %v2482_v23 = vadd.f32 %v8494_v27, %v5760_v26  ;;  %v2593_v1 = vadd.f32 %v2545_v47, %v2208_v6  ;;  %v3074_v21 = vadd.f32 %v8495_v62, %v5740_v37  ;;  %v8497_v17 = vld [vmem:[#allocation201_spill] sm:$0xff]  ;;  %v3363_v3 = vadd.f32 %v3926_v10, %v3298_v61  ;;  %v8500_v47 = vld [vmem:[#allocation202_spill] sm:$0xff] }
 0x138   : > { %v1247_v28 = vadd.f32 %v1167_v56, %v8496_v60  ;;  %v1760_v18 = vadd.f32 %v1696_v20, %v8497_v17  ;;  %3768 = vrsqrt.f32 %v3169_v40  ;;  %v5783_v44 = vrot.slane %v8498_v49, 3  ;;  %v8501_v60 = vld [vmem:[#allocation145_spill] sm:$0xff]  ;;  %v8502_v40 = vld [vmem:[#allocation162_spill] sm:$0xff] }
 0x139   : > { %v2875_v42 = vadd.f32 %v5417_v4, %v5772_v48  ;;  %v2978_v57 = vadd.f32 %v2938_v16, %v2593_v1  ;;  %v2153_v6 = vadd.f32 %v2089_v2, %v8500_v47  ;;  %v525_v62 = vrot.slane %v8201_v52, 5 }
 0x13a   : > { %8499 = vst [vmem:[#allocation123_spill] sm:$0xff] %v5783_v44  ;;  %v1439_v27 = vadd.f32 %v1367_v15, %v1247_v28  ;;  %v3767_v56 = vpop.eup %3766  ;;  %v2546_v17 = vadd.f32 %v2482_v23, %v8501_v60  ;;  %v7652_v20 = vrot.slane %v4653_v0, 6  ;;  %v5793_v26 = vrot.slane %v8502_v40, 7  ;;  %v8507_v23 = vld [vmem:[#allocation147_spill] sm:$0xff] }
 0x13b   : > { %v3426_v4 = vmul.f32 %v3767_v56, %v3362_v41  ;;  %v3106_v1 = vadd.f32 %v3074_v21, %v2978_v57  ;;  %v8504_v16 = vrot.slane %v8201_v52, 6  ;;  %v8506_v15 = vrot.slane %v8349_v39, 4  ;;  %v8509_v21 = vld [vmem:[#allocation203_spill] sm:$0xff] }
 0x13c   : > { %8503 = vst [vmem:[#allocation200_spill] sm:$0xff] %v5793_v26  ;;  %v1824_v28 = vadd.f32 %v1760_v18, %v1439_v27  ;;  %v1304_v60 = vadd.f32 %v8507_v23, %v7652_v20  ;;  %v5805_v61 = vrot.slane %v8212_v5, 1  ;;  %v1697_v48 = vadd.f32 %v5793_v26, %v8502_v40  ;;  %v3299_v18 = vld [vmem:[%s3956_s25 + $0xe8] sm:$0xff]  ;;  %v3300_v27 = vld [vmem:[%s3956_s25 + $0xf0] sm:$0xff]  ;;  %v8510_v56 = vld [vmem:[#allocation171_spill] sm:$0xff] }
 0x13d   : > { %v5797_v2 = vadd.f32 %v8504_v16, %v525_v62  ;;  %v2939_v47 = vadd.f32 %v2875_v42, %v8506_v15  ;;  %3490 = vst [vmem:[%s4225_s28 + $0xd8] sm:$0xff] %v3426_v4  ;;  %v3170_v57 = vadd.f32 1e-06, %v3106_v1  ;;  %v2090_v42 = vadd.f32 %v5439_v58, %v8510_v56  ;;  %v8513_v1 = vld [vmem:[#allocation149_spill] sm:$0xff] }
 0x13e   : > { %8508 = vst [vmem:[#allocation125_spill] sm:$0xff] %v5805_v61  ;;  %v2209_v41 = vadd.f32 %v2153_v6, %v1824_v28  ;;  %v8511_v16 = vrot.slane %v8498_v49, 4  ;;  %v1368_v20 = vadd.f32 %v1304_v60, %v4653_v0  ;;  %v5821_v52 = vrot.slane %v8364_v22, 2  ;;  %v8515_v60 = vld [vmem:[#allocation158_spill] sm:$0xff] }
 0x13f   : > { %8505 = vst [vmem:[#allocation136_spill] sm:$0xff] %v5797_v2  ;;  %v1168_v62 = vadd.f32 %v8509_v21, %v5797_v2  ;;  %v2483_v4 = vadd.f32 %v5455_v43, %v5805_v61  ;;  %3770 = vrsqrt.f32 %v3170_v57  ;;  %v8514_v21 = vld [vmem:[#allocation205_spill] sm:$0xff]  ;;  %v3364_v58 = vadd.f32 %v3926_v10, %v3299_v18 }
 0x140   : > { %v3075_v15 = vadd.f32 %v8511_v16, %v5783_v44  ;;  %8512 = vst [vmem:[#allocation201_spill] sm:$0xff] %v5821_v52  ;;  %v2594_v6 = vadd.f32 %v2546_v17, %v2209_v41  ;;  %v1761_v2 = vadd.f32 %v1697_v48, %v8514_v21  ;;  %v5829_v5 = vadd.f32 %v3926_v10, %v3300_v27 }
 0x141   : > { %v1248_v28 = vadd.f32 %v1168_v62, %v8513_v1  ;;  %v2154_v16 = vadd.f32 %v2090_v42, %v5089_v34  ;;  %v5833_v23 = vrot.slane %v8515_v60, 3  ;;  %v2876_v17 = vadd.f32 %v5467_v63, %v5821_v52 }
 0x142   : > { %v2979_v26 = vadd.f32 %v2939_v47, %v2594_v6  ;;  %v526_v57 = vrot.slane %v3928_v11, 5  ;;  %v3769_v41 = vpop.eup %3768  ;;  %v2547_v48 = vadd.f32 %v2483_v4, %v5101_v54  ;;  %v7664_v18 = vrot.slane %v8515_v60, 4 }
 0x143   : > { %8516 = vst [vmem:[#allocation202_spill] sm:$0xff] %v5833_v23  ;;  %v1440_v56 = vadd.f32 %v1368_v20, %v1248_v28  ;;  %v7659_v27 = vrot.slane %v3930_v12, 6  ;;  %v5842_v34 = vrot.slane %v3992_v36, 7  ;;  %v3427_v62 = vmul.f32 %v3769_v41, %v3363_v3  ;;  %v8521_v28 = vld [vmem:[#allocation169_spill] sm:$0xff] }
 0x144   : > { %v3107_v42 = vadd.f32 %v3075_v15, %v2979_v26  ;;  %v8518_v20 = vrot.slane %v3928_v11, 6  ;;  %v5852_v54 = vrot.slane %v8225_v38, 1  ;;  %v2091_v21 = vadd.f32 %v8521_v28, %v3924_v9  ;;  %v8523_v15 = vld [vmem:[#allocation164_spill] sm:$0xff]  ;;  %v8525_v11 = vld [vmem:[#allocation173_spill] sm:$0xff] }
 0x145   : > { %8517 = vst [vmem:[#allocation145_spill] sm:$0xff] %v5842_v34  ;;  %v1825_v47 = vadd.f32 %v1761_v2, %v1440_v56  ;;  %v1305_v1 = vadd.f32 %v5476_v53, %v7659_v27  ;;  %v1698_v4 = vadd.f32 %v5842_v34, %v3992_v36  ;;  %3491 = vst [vmem:[%s4225_s28 + $0xe0] sm:$0xff] %v3427_v62  ;;  %v8522_v2 = vrot.slane %v8364_v22, 4 }
 0x146   : > { %v5846_v6 = vadd.f32 %v8518_v20, %v526_v57  ;;  %8520 = vst [vmem:[#allocation149_spill] sm:$0xff] %v5852_v54  ;;  %v3171_v26 = vadd.f32 1e-06, %v3107_v42  ;;  %v3076_v41 = vadd.f32 %v7664_v18, %v5833_v23  ;;  %v5868_v27 = vrot.slane %v8376_v29, 2  ;;  %v8526_v42 = vld [vmem:[#allocation204_spill] sm:$0xff]  ;;  %v8531_v18 = vld [vmem:[#allocation26_spill] sm:$0xff] }
 0x147   : > { %v2210_v3 = vadd.f32 %v2154_v16, %v1825_v47  ;;  %v2940_v56 = vadd.f32 %v2876_v17, %v8522_v2  ;;  %v1369_v20 = vadd.f32 %v1305_v1, %v3930_v12  ;;  %v2484_v62 = vadd.f32 %v8525_v11, %v5852_v54  ;;  %v8527_v17 = vld [vmem:[#allocation207_spill] sm:$0xff]  ;;  %v8536_v54 = vld [vmem:[#allocation32_spill] sm:$0xff] }
 0x148   : > { %8519 = vst [vmem:[#allocation203_spill] sm:$0xff] %v5846_v6  ;;  %v1169_v57 = vadd.f32 %v8523_v15, %v5846_v6  ;;  %8524 = vst [vmem:[#allocation205_spill] sm:$0xff] %v5868_v27  ;;  %3772 = vrsqrt.f32 %v3171_v26  ;;  %v1762_v2 = vadd.f32 %v1698_v4, %v8527_v17  ;;  %v8528_v15 = vld [vmem:[#allocation10_spill] sm:$0xff]  ;;  %v8529_v6 = vld [vmem:[#allocation3_spill] sm:$0xff]  ;;  %v2877_v1 = vadd.f32 %v5510_v14, %v5868_v27 }
 0x149   : > { %v2595_v16 = vadd.f32 %v2547_v48, %v2210_v3  ;;  %v2155_v28 = vadd.f32 %v2091_v21, %v8528_v15  ;;  %v5876_v53 = vrot.slane %v8529_v6, 3  ;;  %v527_v38 = vrot.slane %v8531_v18, 5  ;;  %v3771_v34 = vpop.eup %3770  ;;  %v8532_v3 = vld [vmem:[#allocation27_spill] sm:$0xff]  ;;  %v8533_v4 = vld [vmem:[#allocation174_spill] sm:$0xff] }
 0x14a   : > { %v1249_v47 = vadd.f32 %v1169_v57, %v8526_v42  ;;  %v7677_v57 = vrot.slane %v8532_v3, 6  ;;  %v3428_v42 = vmul.f32 %v3771_v34, %v3364_v58  ;;  %v2548_v17 = vadd.f32 %v2484_v62, %v8533_v4  ;;  %v3301_v27 = vld [vmem:[%s3956_s25 + $0xf8] sm:$0xff]  ;;  %v8541_v62 = vld [vmem:[#allocation28_spill] sm:$0xff] }
 0x14b   : > { %8530 = vst [vmem:[#allocation164_spill] sm:$0xff] %v5876_v53  ;;  %v2980_v11 = vadd.f32 %v2940_v56, %v2595_v16  ;;  %v8534_v21 = vrot.slane %v8531_v18, 6  ;;  %v5889_v9 = vrot.slane %v8536_v54, 7  ;;  %v8538_v56 = vrot.slane %v8376_v29, 4  ;;  %v8539_v16 = vld [vmem:[#allocation176_spill] sm:$0xff]  ;;  %v8540_v58 = vld [vmem:[#allocation18_spill] sm:$0xff] }
 0x14c   : > { %v1441_v26 = vadd.f32 %v1369_v20, %v1249_v47  ;;  %v1306_v47 = vadd.f32 %v8539_v16, %v7677_v57  ;;  %3492 = vst [vmem:[%s4225_s28 + $0xe8] sm:$0xff] %v3428_v42  ;;  %v3366_v42 = vadd.f32 %v3926_v10, %v3301_v27  ;;  %v8547_v57 = vld [vmem:[#allocation175_spill] sm:$0xff]  ;;  %v8548_v18 = vld [vmem:[#allocation208_spill] sm:$0xff] }
 0x14d   : > { %v5886_v15 = vadd.f32 %v8534_v21, %v527_v38  ;;  %8537 = vst [vmem:[#allocation207_spill] sm:$0xff] %v5889_v9  ;;  %v3108_v14 = vadd.f32 %v3076_v41, %v2980_v11  ;;  %v2941_v20 = vadd.f32 %v2877_v1, %v8538_v56  ;;  %v5901_v38 = vrot.slane %v8541_v62, 1  ;;  %v8543_v11 = vld [vmem:[#allocation25_spill] sm:$0xff]  ;;  %v8549_v62 = vld [vmem:[#allocation178_spill] sm:$0xff]  ;;  %v8553_v27 = vld [vmem:[#allocation23_spill] sm:$0xff] }
 0x14e   : > { %v1826_v36 = vadd.f32 %v1762_v2, %v1441_v26  ;;  %v1699_v4 = vadd.f32 %v5889_v9, %v8536_v54  ;;  %v8544_v41 = vld [vmem:[#allocation177_spill] sm:$0xff]  ;;  %v1370_v1 = vadd.f32 %v1306_v47, %v8532_v3 }
 0x14f   : > { %8535 = vst [vmem:[#allocation204_spill] sm:$0xff] %v5886_v15  ;;  %v1170_v34 = vadd.f32 %v8540_v58, %v5886_v15  ;;  %8542 = vst [vmem:[#allocation10_spill] sm:$0xff] %v5901_v38  ;;  %v2092_v2 = vadd.f32 %v8544_v41, %v8543_v11  ;;  %v3172_v26 = vadd.f32 1e-06, %v3108_v14  ;;  %v8545_v56 = vld [vmem:[#allocation29_spill] sm:$0xff]  ;;  %v2485_v16 = vadd.f32 %v8549_v62, %v5901_v38  ;;  %v8568_v62 = vld [vmem:[#allocation48_spill] sm:$0xff] }
 0x150   : > { %v2211_v21 = vadd.f32 %v2155_v28, %v1826_v36  ;;  %v5909_v48 = vrot.slane %v8545_v56, 2  ;;  %v1763_v15 = vadd.f32 %v1699_v4, %v8548_v18  ;;  %v8550_v14 = vrot.slane %v8529_v6, 4  ;;  %v8551_v28 = vld [vmem:[#allocation15_spill] sm:$0xff]  ;;  %v8552_v11 = vld [vmem:[#allocation209_spill] sm:$0xff] }
 0x151   : > { %v1250_v58 = vadd.f32 %v1170_v34, %v8547_v57  ;;  %3774 = vrsqrt.f32 %v3172_v26  ;;  %v2156_v54 = vadd.f32 %v2092_v2, %v8552_v11  ;;  %v5923_v57 = vrot.slane %v8553_v27, 3  ;;  %v8555_v18 = vld [vmem:[#allocation47_spill] sm:$0xff] }
 0x152   : > { %8546 = vst [vmem:[#allocation174_spill] sm:$0xff] %v5909_v48  ;;  %v2596_v9 = vadd.f32 %v2548_v17, %v2211_v21  ;;  %v3013_v36 = vadd.f32 %v8550_v14, %v5876_v53  ;;  %v2878_v47 = vadd.f32 %v8551_v28, %v5909_v48  ;;  %v528_v34 = vrot.slane %v8555_v18, 5  ;;  %v3773_v4 = vpop.eup %3772  ;;  %v8556_v17 = vld [vmem:[#allocation179_spill] sm:$0xff]  ;;  %v8557_v14 = vld [vmem:[#allocation52_spill] sm:$0xff] }
 0x153   : > { %v1442_v41 = vadd.f32 %v1370_v1, %v1250_v58  ;;  %8554 = vst [vmem:[#allocation18_spill] sm:$0xff] %v5923_v57  ;;  %v2549_v21 = vadd.f32 %v2485_v16, %v8556_v17  ;;  %v7690_v38 = vrot.slane %v8557_v14, 6  ;;  %v3429_v28 = vmul.f32 %v3773_v4, %v5829_v5  ;;  %v8560_v58 = vld [vmem:[#allocation61_spill] sm:$0xff]  ;;  %v3302_v5 = vld [vmem:[%s3956_s25 + $0x100] sm:$0xff] }
 0x154   : > { %v2981_v26 = vadd.f32 %v2941_v20, %v2596_v9  ;;  %v8558_v11 = vrot.slane %v8555_v18, 6  ;;  %v5935_v48 = vrot.slane %v8560_v58, 7  ;;  %v8562_v53 = vrot.slane %v8545_v56, 4  ;;  %v8563_v20 = vld [vmem:[#allocation181_spill] sm:$0xff]  ;;  %v8570_v18 = vld [vmem:[#allocation184_spill] sm:$0xff] }
 0x155   : > { %v1827_v1 = vadd.f32 %v1763_v15, %v1442_v41  ;;  %v1307_v16 = vadd.f32 %v8563_v20, %v7690_v38  ;;  %v5943_v17 = vrot.slane %v8412_v30, 1  ;;  %3493 = vst [vmem:[%s4225_s28 + $0xf0] sm:$0xff] %v3429_v28  ;;  %v8565_v41 = vld [vmem:[#allocation40_spill] sm:$0xff]  ;;  %v5955_v38 = vrot.slane %v8568_v62, 2  ;;  %v8573_v20 = vld [vmem:[#allocation42_spill] sm:$0xff] }
 0x156   : > { %v5932_v2 = vadd.f32 %v8558_v11, %v528_v34  ;;  %8561 = vst [vmem:[#allocation208_spill] sm:$0xff] %v5935_v48  ;;  %v3109_v3 = vadd.f32 %v3013_v36, %v2981_v26  ;;  %v2942_v9 = vadd.f32 %v2878_v47, %v8562_v53  ;;  %v1700_v4 = vadd.f32 %v5935_v48, %v8560_v58  ;;  %v8566_v36 = vld [vmem:[#allocation45_spill] sm:$0xff]  ;;  %v8567_v26 = vld [vmem:[#allocation182_spill] sm:$0xff] }
 0x157   : > { %8564 = vst [vmem:[#allocation209_spill] sm:$0xff] %v5943_v17  ;;  %v2212_v15 = vadd.f32 %v2156_v54, %v1827_v1  ;;  %v2093_v11 = vadd.f32 %v8567_v26, %v8566_v36  ;;  %v1371_v47 = vadd.f32 %v1307_v16, %v8557_v14  ;;  %8569 = vst [vmem:[#allocation179_spill] sm:$0xff] %v5955_v38  ;;  %v8571_v54 = vrot.slane %v8553_v27, 4  ;;  %v8574_v26 = vld [vmem:[#allocation43_spill] sm:$0xff]  ;;  %v8576_v36 = vld [vmem:[#allocation37_spill] sm:$0xff] }
 0x158   : > { %8559 = vst [vmem:[#allocation175_spill] sm:$0xff] %v5932_v2  ;;  %v1171_v34 = vadd.f32 %v8565_v41, %v5932_v2  ;;  %v3173_v53 = vadd.f32 1e-06, %v3109_v3  ;;  %v2486_v28 = vadd.f32 %v8570_v18, %v5943_v17  ;;  %v8572_v41 = vld [vmem:[#allocation180_spill] sm:$0xff]  ;;  %v1764_v48 = vadd.f32 %v1700_v4, %v8573_v20  ;;  %v8578_v17 = vld [vmem:[#allocation67_spill] sm:$0xff]  ;;  %v8580_v4 = vld [vmem:[#allocation69_spill] sm:$0xff] }
 0x159   : > { %v2597_v30 = vadd.f32 %v2549_v21, %v2212_v15  ;;  %v3014_v1 = vadd.f32 %v8571_v54, %v5923_v57  ;;  %v3367_v3 = vadd.f32 %v3926_v10, %v3302_v5  ;;  %v5966_v16 = vrot.slane %v8574_v26, 3  ;;  %v8577_v21 = vld [vmem:[#allocation49_spill] sm:$0xff]  ;;  %v8581_v57 = vld [vmem:[#allocation70_spill] sm:$0xff] }
 0x15a   : > { %v1251_v2 = vadd.f32 %v1171_v34, %v8572_v41  ;;  %3776 = vrsqrt.f32 %v3173_v53  ;;  %v2879_v58 = vadd.f32 %v8576_v36, %v5955_v38  ;;  %v2157_v15 = vadd.f32 %v2093_v11, %v8577_v21  ;;  %v8579_v41 = vld [vmem:[#allocation183_spill] sm:$0xff] }
 0x15b   : > { %8575 = vst [vmem:[#allocation40_spill] sm:$0xff] %v5966_v16  ;;  %v2982_v14 = vadd.f32 %v2942_v9, %v2597_v30  ;;  %v529_v54 = vrot.slane %v8578_v17, 5  ;;  %v3775_v34 = vpop.eup %3774  ;;  %v2550_v20 = vadd.f32 %v2486_v28, %v8579_v41  ;;  %v7705_v53 = vrot.slane %v8580_v4, 6  ;;  %v8586_v28 = vld [vmem:[#allocation185_spill] sm:$0xff] }
 0x15c   : > { %v1443_v18 = vadd.f32 %v1371_v47, %v1251_v2  ;;  %v5976_v27 = vrot.slane %v8581_v57, 7  ;;  %v3430_v36 = vmul.f32 %v3775_v34, %v3366_v42  ;;  %v8583_v9 = vrot.slane %v8578_v17, 6  ;;  %v8589_v34 = vld [vmem:[#allocation68_spill] sm:$0xff] }
 0x15d   : > { %v3110_v30 = vadd.f32 %v3014_v1, %v2982_v14  ;;  %v8585_v47 = vrot.slane %v8568_v62, 4  ;;  %v1308_v41 = vadd.f32 %v8586_v28, %v7705_v53  ;;  %v5988_v5 = vrot.slane %v8285_v45, 1  ;;  %v3304_v14 = vld [vmem:[%s3956_s25 + $0x110] sm:$0xff] }
 0x15e   : > { %8582 = vst [vmem:[#allocation180_spill] sm:$0xff] %v5976_v27  ;;  %v1828_v2 = vadd.f32 %v1764_v48, %v1443_v18  ;;  %v5980_v11 = vadd.f32 %v8583_v9, %v529_v54  ;;  %v1701_v38 = vadd.f32 %v5976_v27, %v8581_v57  ;;  %3494 = vst [vmem:[%s4225_s28 + $0xf8] sm:$0xff] %v3430_v36  ;;  %v3303_v48 = vld [vmem:[%s3956_s25 + $0x108] sm:$0xff]  ;;  %v8588_v1 = vld [vmem:[#allocation57_spill] sm:$0xff]  ;;  %v6004_v45 = vrot.slane %v8441_v51, 2 }
 0x15f   : > { %v2943_v21 = vadd.f32 %v2879_v58, %v8585_v47  ;;  %8587 = vst [vmem:[#allocation49_spill] sm:$0xff] %v5988_v5  ;;  %v3174_v42 = vadd.f32 1e-06, %v3110_v30  ;;  %v8590_v58 = vld [vmem:[#allocation56_spill] sm:$0xff]  ;;  %v8591_v47 = vrot.slane %v8574_v26, 4  ;;  %v1372_v17 = vadd.f32 %v1308_v41, %v8580_v4  ;;  %v8593_v36 = vld [vmem:[#allocation187_spill] sm:$0xff] }
 0x160   : > { %8584 = vst [vmem:[#allocation42_spill] sm:$0xff] %v5980_v11  ;;  %v2213_v18 = vadd.f32 %v2157_v15, %v1828_v2  ;;  %v1172_v54 = vadd.f32 %v8588_v1, %v5980_v11  ;;  %v2094_v9 = vadd.f32 %v8590_v58, %v8589_v34  ;;  %8592 = vst [vmem:[#allocation183_spill] sm:$0xff] %v6004_v45  ;;  %v8594_v2 = vld [vmem:[#allocation186_spill] sm:$0xff]  ;;  %v8595_v1 = vld [vmem:[#allocation64_spill] sm:$0xff] }
 0x161   : > { %v3015_v53 = vadd.f32 %v8591_v47, %v5966_v16  ;;  %v2487_v30 = vadd.f32 %v8593_v36, %v5988_v5  ;;  %3778 = vrsqrt.f32 %v3174_v42  ;;  %v1765_v11 = vadd.f32 %v1701_v38, %v8595_v1  ;;  %v8596_v47 = vld [vmem:[#allocation73_spill] sm:$0xff]  ;;  %v8599_v38 = vld [vmem:[#allocation188_spill] sm:$0xff] }
 0x162   : > { %v2598_v15 = vadd.f32 %v2550_v20, %v2213_v18  ;;  %v1252_v28 = vadd.f32 %v1172_v54, %v8594_v2  ;;  %v3368_v58 = vadd.f32 %v3926_v10, %v3303_v48  ;;  %v6012_v27 = vadd.f32 %v3926_v10, %v3304_v14  ;;  %v8597_v41 = vld [vmem:[#allocation65_spill] sm:$0xff]  ;;  %v8600_v14 = vld [vmem:[#allocation91_spill] sm:$0xff]  ;;  %v8601_v1 = vld [vmem:[#allocation92_spill] sm:$0xff] }
 0x163   : > { %v2158_v34 = vadd.f32 %v2094_v9, %v8596_v47  ;;  %v6016_v57 = vrot.slane %v8597_v41, 3  ;;  %v2880_v20 = vadd.f32 %v5650_v32, %v6004_v45  ;;  %v530_v42 = vrot.slane %v8445_v46, 5  ;;  %v8607_v48 = vld [vmem:[#allocation90_spill] sm:$0xff] }
 0x164   : > { %v2983_v4 = vadd.f32 %v2943_v21, %v2598_v15  ;;  %v1444_v16 = vadd.f32 %v1372_v17, %v1252_v28  ;;  %v3777_v18 = vpop.eup %3776  ;;  %v2551_v54 = vadd.f32 %v2487_v30, %v8599_v38  ;;  %v7720_v2 = vrot.slane %v8600_v14, 6  ;;  %v8605_v15 = vld [vmem:[#allocation189_spill] sm:$0xff]  ;;  %v8608_v45 = vld [vmem:[#allocation190_spill] sm:$0xff] }
 0x165   : > { %8598 = vst [vmem:[#allocation57_spill] sm:$0xff] %v6016_v57  ;;  %v6025_v9 = vrot.slane %v8601_v1, 7  ;;  %v3431_v47 = vmul.f32 %v3777_v18, %v3367_v3  ;;  %v8603_v17 = vrot.slane %v8445_v46, 6  ;;  %v6035_v30 = vrot.slane %v8307_v35, 1 }
 0x166   : > { %v3111_v36 = vadd.f32 %v3015_v53, %v2983_v4  ;;  %v1829_v21 = vadd.f32 %v1765_v11, %v1444_v16  ;;  %v1309_v32 = vadd.f32 %v8605_v15, %v7720_v2  ;;  %v2095_v5 = vadd.f32 %v8608_v45, %v8607_v48  ;;  %v8610_v11 = vld [vmem:[#allocation81_spill] sm:$0xff]  ;;  %v8613_v45 = vld [vmem:[#allocation191_spill] sm:$0xff] }
 0x167   : > { %8602 = vst [vmem:[#allocation186_spill] sm:$0xff] %v6025_v9  ;;  %v6029_v28 = vadd.f32 %v8603_v17, %v530_v42  ;;  %8606 = vst [vmem:[#allocation73_spill] sm:$0xff] %v6035_v30  ;;  %v1702_v38 = vadd.f32 %v6025_v9, %v8601_v1  ;;  %v8609_v4 = vrot.slane %v8441_v51, 4  ;;  %v8611_v18 = vrot.slane %v8597_v41, 4  ;;  %v8617_v15 = vld [vmem:[#allocation87_spill] sm:$0xff] }
 0x168   : > { %3495 = vst [vmem:[%s4225_s28 + $0x100] sm:$0xff] %v3431_v47  ;;  %v3175_v3 = vadd.f32 1e-06, %v3111_v36  ;;  %v2214_v16 = vadd.f32 %v2158_v34, %v1829_v21  ;;  %v1373_v2 = vadd.f32 %v1309_v32, %v8600_v14  ;;  %v6051_v46 = vrot.slane %v8462_v24, 2  ;;  %v8614_v36 = vld [vmem:[#allocation79_spill] sm:$0xff] }
 0x169   : > { %8604 = vst [vmem:[#allocation64_spill] sm:$0xff] %v6029_v28  ;;  %v2944_v53 = vadd.f32 %v2880_v20, %v8609_v4  ;;  %v1173_v42 = vadd.f32 %v8610_v11, %v6029_v28  ;;  %v3016_v17 = vadd.f32 %v8611_v18, %v6016_v57  ;;  %v2488_v47 = vadd.f32 %v8613_v45, %v6035_v30  ;;  %v8615_v20 = vld [vmem:[#allocation86_spill] sm:$0xff]  ;;  %v8616_v11 = vld [vmem:[#allocation95_spill] sm:$0xff] }
 0x16a   : > { %8612 = vst [vmem:[#allocation188_spill] sm:$0xff] %v6051_v46  ;;  %3780 = vrsqrt.f32 %v3175_v3  ;;  %v2599_v34 = vadd.f32 %v2551_v54, %v2214_v16  ;;  %v1766_v4 = vadd.f32 %v1702_v38, %v8615_v20  ;;  %v2159_v28 = vadd.f32 %v2095_v5, %v8616_v11  ;;  %v8619_v38 = vld [vmem:[#allocation192_spill] sm:$0xff]  ;;  %v8630_v54 = vld [vmem:[#allocation101_spill] sm:$0xff] }
 0x16b   : > { %v1253_v21 = vadd.f32 %v1173_v42, %v8614_v36  ;;  %v6059_v35 = vrot.slane %v8617_v15, 3  ;;  %v2881_v32 = vadd.f32 %v5693_v33, %v6051_v46  ;;  %v531_v18 = vrot.slane %v8464_v59, 5  ;;  %v3779_v9 = vpop.eup %3778  ;;  %v3305_v46 = vld [vmem:[%s3956_s25 + $0x118] sm:$0xff] }
 0x16c   : > { %v2984_v45 = vadd.f32 %v2944_v53, %v2599_v34  ;;  %v7731_v16 = vrot.slane %v8468_v25, 6  ;;  %v3432_v42 = vmul.f32 %v3779_v9, %v3368_v58  ;;  %v2552_v36 = vadd.f32 %v2488_v47, %v8619_v38  ;;  %v8623_v58 = vld [vmem:[#allocation107_spill] sm:$0xff] }
 0x16d   : > { %8618 = vst [vmem:[#allocation92_spill] sm:$0xff] %v6059_v35  ;;  %v1445_v3 = vadd.f32 %v1373_v2, %v1253_v21  ;;  %v8620_v5 = vrot.slane %v8464_v59, 6  ;;  %v6072_v11 = vrot.slane %v8473_v13, 7  ;;  %v8622_v53 = vrot.slane %v8462_v24, 4 }
 0x16e   : > { %v3112_v33 = vadd.f32 %v3016_v17, %v2984_v45  ;;  %v1310_v34 = vadd.f32 %v5706_v7, %v7731_v16  ;;  %3496 = vst [vmem:[%s4225_s28 + $0x108] sm:$0xff] %v3432_v42  ;;  %v6084_v47 = vrot.slane %v8329_v55, 1  ;;  %v8625_v45 = vld [vmem:[#allocation112_spill] sm:$0xff]  ;;  %v8626_v17 = vld [vmem:[#allocation194_spill] sm:$0xff]  ;;  %v6092_v38 = vrot.slane %v8481_v31, 2 }
 0x16f   : > { %v6069_v20 = vadd.f32 %v8620_v5, %v531_v18  ;;  %v1830_v30 = vadd.f32 %v1766_v4, %v1445_v3  ;;  %v2945_v2 = vadd.f32 %v2881_v32, %v8622_v53  ;;  %v1703_v21 = vadd.f32 %v6072_v11, %v8473_v13  ;;  %v8628_v5 = vld [vmem:[#allocation193_spill] sm:$0xff] }
 0x170   : > { %8624 = vst [vmem:[#allocation81_spill] sm:$0xff] %v6084_v47  ;;  %v2096_v4 = vadd.f32 %v8626_v17, %v8625_v45  ;;  %v3176_v18 = vadd.f32 1e-06, %v3112_v33  ;;  %v1374_v32 = vadd.f32 %v1310_v34, %v8468_v25  ;;  %8627 = vst [vmem:[#allocation79_spill] sm:$0xff] %v6092_v38  ;;  %v3370_v42 = vadd.f32 %v3926_v10, %v3305_v46  ;;  %v8632_v17 = vld [vmem:[#allocation117_spill] sm:$0xff] }
 0x171   : > { %8621 = vst [vmem:[#allocation90_spill] sm:$0xff] %v6069_v20  ;;  %v1174_v9 = vadd.f32 %v8623_v58, %v6069_v20  ;;  %v2215_v3 = vadd.f32 %v2159_v28, %v1830_v30  ;;  %v8629_v58 = vld [vmem:[#allocation108_spill] sm:$0xff]  ;;  %v2489_v59 = vadd.f32 %v8630_v54, %v6084_v47  ;;  %v8631_v33 = vrot.slane %v8617_v15, 4  ;;  %v8633_v46 = vld [vmem:[#allocation109_spill] sm:$0xff] }
 0x172   : > { %v1767_v16 = vadd.f32 %v1703_v21, %v8629_v58  ;;  %3782 = vrsqrt.f32 %v3176_v18  ;;  %v2882_v30 = vadd.f32 %v5740_v37, %v6092_v38  ;;  %v2160_v55 = vadd.f32 %v2096_v4, %v8632_v17  ;;  %v8646_v58 = vld [vmem:[#allocation198_spill] sm:$0xff] }
 0x173   : > { %v1254_v53 = vadd.f32 %v1174_v9, %v8628_v5  ;;  %v2600_v20 = vadd.f32 %v2552_v36, %v2215_v3  ;;  %v3017_v28 = vadd.f32 %v8631_v33, %v6059_v35  ;;  %v6106_v9 = vrot.slane %v8633_v46, 3  ;;  %v8635_v36 = vld [vmem:[#allocation195_spill] sm:$0xff] }
 0x174   : > { %v532_v21 = vrot.slane %v8336_v19, 5  ;;  %v3781_v5 = vpop.eup %3780  ;;  %v2553_v3 = vadd.f32 %v2489_v59, %v8635_v36  ;;  %v7738_v33 = vrot.slane %v8486_v50, 6  ;;  %v8636_v17 = vrot.slane %v8336_v19, 6  ;;  %v8640_v59 = vld [vmem:[#allocation103_spill] sm:$0xff] }
 0x175   : > { %v1446_v34 = vadd.f32 %v1374_v32, %v1254_v53  ;;  %8634 = vst [vmem:[#allocation86_spill] sm:$0xff] %v6106_v9  ;;  %v2985_v18 = vadd.f32 %v2945_v2, %v2600_v20  ;;  %v3433_v37 = vmul.f32 %v3781_v5, %v6012_v27  ;;  %v6118_v53 = vrot.slane %v8492_v8, 7  ;;  %v3306_v27 = vld [vmem:[%s3956_s25 + $0x120] sm:$0xff] }
 0x176   : > { %v6115_v4 = vadd.f32 %v8636_v17, %v532_v21  ;;  %v8639_v38 = vrot.slane %v8481_v31, 4  ;;  %v1311_v2 = vadd.f32 %v8640_v59, %v7738_v33  ;;  %v6126_v36 = vrot.slane %v8349_v39, 1  ;;  %v8649_v39 = vld [vmem:[#allocation130_spill] sm:$0xff] }
 0x177   : > { %v1831_v32 = vadd.f32 %v1767_v16, %v1446_v34  ;;  %8638 = vst [vmem:[#allocation192_spill] sm:$0xff] %v6118_v53  ;;  %v3113_v54 = vadd.f32 %v3017_v28, %v2985_v18  ;;  %3497 = vst [vmem:[%s4225_s28 + $0x110] sm:$0xff] %v3433_v37  ;;  %v8642_v34 = vld [vmem:[#allocation129_spill] sm:$0xff]  ;;  %v1704_v5 = vadd.f32 %v6118_v53, %v8492_v8  ;;  %v8643_v28 = vld [vmem:[#allocation134_spill] sm:$0xff]  ;;  %v6138_v33 = vrot.slane %v8498_v49, 2 }
 0x178   : > { %8637 = vst [vmem:[#allocation95_spill] sm:$0xff] %v6115_v4  ;;  %v2946_v20 = vadd.f32 %v2882_v30, %v8639_v38  ;;  %8641 = vst [vmem:[#allocation107_spill] sm:$0xff] %v6126_v36  ;;  %v1175_v21 = vadd.f32 %v8642_v34, %v6115_v4  ;;  %v8644_v18 = vld [vmem:[#allocation197_spill] sm:$0xff]  ;;  %v1375_v30 = vadd.f32 %v1311_v2, %v8486_v50  ;;  %v8648_v34 = vld [vmem:[#allocation114_spill] sm:$0xff] }
 0x179   : > { %v2216_v16 = vadd.f32 %v2160_v55, %v1831_v32  ;;  %v2097_v17 = vadd.f32 %v8644_v18, %v8643_v28  ;;  %v3177_v38 = vadd.f32 1e-06, %v3113_v54  ;;  %8645 = vst [vmem:[#allocation112_spill] sm:$0xff] %v6138_v33  ;;  %v2490_v37 = vadd.f32 %v8646_v58, %v6126_v36  ;;  %v8650_v18 = vld [vmem:[#allocation131_spill] sm:$0xff] }
 0x17a   : > { %v8647_v55 = vrot.slane %v8633_v46, 4  ;;  %v1255_v4 = vadd.f32 %v1175_v21, %v8648_v34  ;;  %v1768_v59 = vadd.f32 %v1704_v5, %v8649_v39  ;;  %v3371_v54 = vadd.f32 %v3926_v10, %v3306_v27  ;;  %v8653_v34 = vld [vmem:[#allocation199_spill] sm:$0xff] }
 0x17b   : > { %v2601_v19 = vadd.f32 %v2553_v3, %v2216_v16  ;;  %3784 = vrsqrt.f32 %v3177_v38  ;;  %v6149_v2 = vrot.slane %v8650_v18, 3  ;;  %v2883_v53 = vadd.f32 %v5783_v44, %v6138_v33  ;;  %v8652_v3 = vld [vmem:[#allocation139_spill] sm:$0xff] }
 0x17c   : > { %v3018_v32 = vadd.f32 %v8647_v55, %v6106_v9  ;;  %v1447_v58 = vadd.f32 %v1375_v30, %v1255_v4  ;;  %v2161_v16 = vadd.f32 %v2097_v17, %v8652_v3  ;;  %v533_v55 = vrot.slane %v4653_v0, 5  ;;  %v3783_v21 = vpop.eup %3782  ;;  %v8654_v38 = vld [vmem:[#allocation171_spill] sm:$0xff] }
 0x17d   : > { %8651 = vst [vmem:[#allocation193_spill] sm:$0xff] %v6149_v2  ;;  %v2986_v28 = vadd.f32 %v2946_v20, %v2601_v19  ;;  %v2554_v39 = vadd.f32 %v2490_v37, %v8653_v34  ;;  %v7749_v5 = vrot.slane %v8502_v40, 6  ;;  %v6159_v36 = vrot.slane %v8654_v38, 7  ;;  %v8659_v37 = vld [vmem:[#allocation200_spill] sm:$0xff] }
 0x17e   : > { %v3434_v44 = vmul.f32 %v3783_v21, %v3370_v42  ;;  %v1832_v4 = vadd.f32 %v1768_v59, %v1447_v58  ;;  %v8656_v20 = vrot.slane %v4653_v0, 6  ;;  %v8658_v30 = vrot.slane %v8498_v49, 4  ;;  %v3307_v58 = vld [vmem:[%s3956_s25 + $0x128] sm:$0xff]  ;;  %v8662_v21 = vld [vmem:[#allocation155_spill] sm:$0xff] }
 0x17f   : > { %8655 = vst [vmem:[#allocation108_spill] sm:$0xff] %v6159_v36  ;;  %v3114_v19 = vadd.f32 %v3018_v32, %v2986_v28  ;;  %v1312_v34 = vadd.f32 %v8659_v37, %v7749_v5  ;;  %v6171_v27 = vrot.slane %v8364_v22, 1  ;;  %v1705_v33 = vadd.f32 %v6159_v36, %v8654_v38  ;;  %v3308_v28 = vld [vmem:[%s3956_s25 + $0x130] sm:$0xff]  ;;  %v8661_v32 = vld [vmem:[#allocation147_spill] sm:$0xff] }
 0x180   : > { %v6163_v17 = vadd.f32 %v8656_v20, %v533_v55  ;;  %v2947_v3 = vadd.f32 %v2883_v53, %v8658_v30  ;;  %3498 = vst [vmem:[%s4225_s28 + $0x118] sm:$0xff] %v3434_v44  ;;  %v2217_v59 = vadd.f32 %v2161_v16, %v1832_v4  ;;  %v2098_v53 = vadd.f32 %v5805_v61, %v8662_v21 }
 0x181   : > { %8660 = vst [vmem:[#allocation195_spill] sm:$0xff] %v6171_v27  ;;  %v3178_v42 = vadd.f32 1e-06, %v3114_v19  ;;  %v8663_v20 = vrot.slane %v8650_v18, 4  ;;  %v1376_v5 = vadd.f32 %v1312_v34, %v8502_v40  ;;  %v6187_v0 = vrot.slane %v8515_v60, 2  ;;  %v8665_v19 = vld [vmem:[#allocation136_spill] sm:$0xff] }
 0x182   : > { %8657 = vst [vmem:[#allocation117_spill] sm:$0xff] %v6163_v17  ;;  %v1176_v55 = vadd.f32 %v8661_v32, %v6163_v17  ;;  %v2491_v44 = vadd.f32 %v5821_v52, %v6171_v27  ;;  %v2602_v16 = vadd.f32 %v2554_v39, %v2217_v59  ;;  %v8666_v32 = vld [vmem:[#allocation152_spill] sm:$0xff]  ;;  %v3372_v61 = vadd.f32 %v3926_v10, %v3307_v58  ;;  %v8667_v34 = vld [vmem:[#allocation153_spill] sm:$0xff] }
 0x183   : > { %v3019_v30 = vadd.f32 %v8663_v20, %v6149_v2  ;;  %8664 = vst [vmem:[#allocation129_spill] sm:$0xff] %v6187_v0  ;;  %3786 = vrsqrt.f32 %v3178_v42  ;;  %v1769_v17 = vadd.f32 %v1705_v33, %v8666_v32  ;;  %v6195_v22 = vadd.f32 %v3926_v10, %v3308_v28  ;;  %v8669_v28 = vld [vmem:[#allocation21_spill] sm:$0xff]  ;;  %v8676_v58 = vld [vmem:[#allocation8_spill] sm:$0xff] }
 0x184   : > { %v1256_v4 = vadd.f32 %v1176_v55, %v8665_v19  ;;  %v2162_v20 = vadd.f32 %v2098_v53, %v5455_v43  ;;  %v6199_v37 = vrot.slane %v8667_v34, 3  ;;  %v2987_v36 = vadd.f32 %v2947_v3, %v2602_v16  ;;  %v8670_v19 = vld [vmem:[#allocation5_spill] sm:$0xff] }
 0x185   : > { %v2884_v39 = vadd.f32 %v5833_v23, %v6187_v0  ;;  %v534_v42 = vrot.slane %v3930_v12, 5  ;;  %v3785_v59 = vpop.eup %3784  ;;  %v2555_v33 = vadd.f32 %v2491_v44, %v5467_v63  ;;  %v7761_v55 = vrot.slane %v8669_v28, 6  ;;  %v8677_v52 = vld [vmem:[#allocation149_spill] sm:$0xff] }
 0x186   : > { %8668 = vst [vmem:[#allocation114_spill] sm:$0xff] %v6199_v37  ;;  %v1448_v21 = vadd.f32 %v1376_v5, %v1256_v4  ;;  %v6208_v43 = vrot.slane %v8670_v19, 7  ;;  %v3435_v53 = vmul.f32 %v3785_v59, %v3371_v54  ;;  %v3115_v32 = vadd.f32 %v3019_v30, %v2987_v36  ;;  %v8674_v4 = vld [vmem:[#allocation145_spill] sm:$0xff]  ;;  %v8679_v30 = vld [vmem:[#allocation159_spill] sm:$0xff] }
 0x187   : > { %v8672_v5 = vrot.slane %v3930_v12, 6  ;;  %v1313_v23 = vadd.f32 %v8674_v4, %v7761_v55  ;;  %v6218_v63 = vrot.slane %v8376_v29, 1  ;;  %v2099_v0 = vadd.f32 %v8677_v52, %v8676_v58  ;;  %v8682_v52 = vld [vmem:[#allocation205_spill] sm:$0xff]  ;;  %v8686_v4 = vld [vmem:[#allocation4_spill] sm:$0xff]  ;;  %v8689_v58 = vld [vmem:[#allocation27_spill] sm:$0xff] }
 0x188   : > { %8671 = vst [vmem:[#allocation130_spill] sm:$0xff] %v6208_v43  ;;  %v1833_v3 = vadd.f32 %v1769_v17, %v1448_v21  ;;  %v1706_v44 = vadd.f32 %v6208_v43, %v8670_v19  ;;  %3499 = vst [vmem:[%s4225_s28 + $0x120] sm:$0xff] %v3435_v53  ;;  %v3179_v36 = vadd.f32 1e-06, %v3115_v32  ;;  %v8678_v17 = vrot.slane %v8515_v60, 4  ;;  %v8683_v32 = vld [vmem:[#allocation203_spill] sm:$0xff] }
 0x189   : > { %v6212_v16 = vadd.f32 %v8672_v5, %v534_v42  ;;  %8675 = vst [vmem:[#allocation199_spill] sm:$0xff] %v6218_v63  ;;  %v8680_v59 = vrot.slane %v8667_v34, 4  ;;  %v1377_v55 = vadd.f32 %v1313_v23, %v8669_v28  ;;  %v6234_v12 = vrot.slane %v8529_v6, 2  ;;  %v8688_v23 = vld [vmem:[#allocation164_spill] sm:$0xff] }
 0x18a   : > { %v2218_v54 = vadd.f32 %v2162_v20, %v1833_v3  ;;  %v2948_v21 = vadd.f32 %v2884_v39, %v8678_v17  ;;  %v2492_v53 = vadd.f32 %v8682_v52, %v6218_v63  ;;  %3788 = vrsqrt.f32 %v3179_v36  ;;  %v8684_v39 = vld [vmem:[#allocation169_spill] sm:$0xff] }
 0x18b   : > { %8673 = vst [vmem:[#allocation139_spill] sm:$0xff] %v6212_v16  ;;  %v1177_v42 = vadd.f32 %v8679_v30, %v6212_v16  ;;  %v3020_v5 = vadd.f32 %v8680_v59, %v6199_v37  ;;  %8681 = vst [vmem:[#allocation147_spill] sm:$0xff] %v6234_v12  ;;  %v1770_v17 = vadd.f32 %v1706_v44, %v8684_v39  ;;  %v8685_v30 = vld [vmem:[#allocation173_spill] sm:$0xff]  ;;  %v6242_v29 = vrot.slane %v8686_v4, 3  ;;  %v8691_v44 = vld [vmem:[#allocation206_spill] sm:$0xff] }
 0x18c   : > { %v2603_v20 = vadd.f32 %v2555_v33, %v2218_v54  ;;  %v2163_v16 = vadd.f32 %v2099_v0, %v8685_v30  ;;  %v2821_v59 = vadd.f32 %v8688_v23, %v6234_v12  ;;  %v535_v43 = vrot.slane %v8689_v58, 5  ;;  %v8690_v54 = vld [vmem:[#allocation32_spill] sm:$0xff]  ;;  %v8694_v63 = vld [vmem:[#allocation25_spill] sm:$0xff]  ;;  %v3309_v12 = vld [vmem:[%s3956_s25 + $0x138] sm:$0xff] }
 0x18d   : > { %v1257_v3 = vadd.f32 %v1177_v42, %v8683_v32  ;;  %8687 = vst [vmem:[#allocation136_spill] sm:$0xff] %v6242_v29  ;;  %v3787_v19 = vpop.eup %3786  ;;  %v7775_v42 = vrot.slane %v8690_v54, 6  ;;  %v2556_v39 = vadd.f32 %v2492_v53, %v8691_v44  ;;  %v8692_v0 = vrot.slane %v8689_v58, 6  ;;  %v8705_v33 = vld [vmem:[#allocation177_spill] sm:$0xff] }
 0x18e   : > { %v2988_v52 = vadd.f32 %v2948_v21, %v2603_v20  ;;  %v3436_v32 = vmul.f32 %v3787_v19, %v3372_v61  ;;  %v6255_v28 = vrot.slane %v8694_v63, 7  ;;  %v8696_v21 = vrot.slane %v8529_v6, 4  ;;  %v8697_v20 = vld [vmem:[#allocation207_spill] sm:$0xff]  ;;  %v8698_v61 = vld [vmem:[#allocation176_spill] sm:$0xff]  ;;  %v8706_v6 = vld [vmem:[#allocation174_spill] sm:$0xff] }
 0x18f   : > { %v1449_v36 = vadd.f32 %v1377_v55, %v1257_v3  ;;  %v6252_v30 = vadd.f32 %v8692_v0, %v535_v43  ;;  %v1314_v3 = vadd.f32 %v8697_v20, %v7775_v42  ;;  %v6267_v43 = vrot.slane %v8545_v56, 1  ;;  %v8702_v0 = vld [vmem:[#allocation23_spill] sm:$0xff]  ;;  %v8704_v42 = vld [vmem:[#allocation204_spill] sm:$0xff]  ;;  %v8709_v56 = vld [vmem:[#allocation178_spill] sm:$0xff] }
 0x190   : > { %8695 = vst [vmem:[#allocation159_spill] sm:$0xff] %v6255_v28  ;;  %v3116_v23 = vadd.f32 %v3020_v5, %v2988_v52  ;;  %v2885_v55 = vadd.f32 %v2821_v59, %v8696_v21  ;;  %3500 = vst [vmem:[%s4225_s28 + $0x128] sm:$0xff] %v3436_v32  ;;  %v1707_v53 = vadd.f32 %v6255_v28, %v8694_v63  ;;  %v8700_v52 = vld [vmem:[#allocation28_spill] sm:$0xff]  ;;  %v8701_v5 = vld [vmem:[#allocation10_spill] sm:$0xff]  ;;  %v6275_v21 = vrot.slane %v8702_v0, 2 }
 0x191   : > { %8693 = vst [vmem:[#allocation152_spill] sm:$0xff] %v6252_v30  ;;  %v1834_v37 = vadd.f32 %v1770_v17, %v1449_v36  ;;  %v1178_v19 = vadd.f32 %v8698_v61, %v6252_v30  ;;  %8699 = vst [vmem:[#allocation203_spill] sm:$0xff] %v6267_v43  ;;  %v2100_v17 = vadd.f32 %v8701_v5, %v8700_v52  ;;  %v8719_v28 = vrot.slane %v8702_v0, 4 }
 0x192   : > { %v3180_v36 = vadd.f32 1e-06, %v3116_v23  ;;  %v1378_v59 = vadd.f32 %v1314_v3, %v8690_v54  ;;  %8703 = vst [vmem:[#allocation169_spill] sm:$0xff] %v6275_v21  ;;  %v3374_v32 = vadd.f32 %v3926_v10, %v3309_v12  ;;  %v1771_v58 = vadd.f32 %v1707_v53, %v8705_v33  ;;  %v8710_v12 = vld [vmem:[#allocation24_spill] sm:$0xff] }
 0x193   : > { %v2219_v44 = vadd.f32 %v2163_v16, %v1834_v37  ;;  %v1258_v61 = vadd.f32 %v1178_v19, %v8704_v42  ;;  %v2493_v30 = vadd.f32 %v8706_v6, %v6267_v43  ;;  %v8707_v23 = vrot.slane %v8686_v4, 4  ;;  %v8708_v16 = vld [vmem:[#allocation18_spill] sm:$0xff]  ;;  %v8712_v33 = vld [vmem:[#allocation52_spill] sm:$0xff]  ;;  %v8726_v6 = vld [vmem:[#allocation179_spill] sm:$0xff] }
 0x194   : > { %3790 = vrsqrt.f32 %v3180_v36  ;;  %v2822_v3 = vadd.f32 %v8708_v16, %v6275_v21  ;;  %v2164_v52 = vadd.f32 %v2100_v17, %v8709_v56  ;;  %v6289_v42 = vrot.slane %v8710_v12, 3  ;;  %v3789_v53 = vpop.eup %3788 }
 0x195   : > { %v2604_v20 = vadd.f32 %v2556_v39, %v2219_v44  ;;  %v3021_v37 = vadd.f32 %v8707_v23, %v6242_v29  ;;  %v1450_v5 = vadd.f32 %v1378_v59, %v1258_v61  ;;  %v536_v19 = vrot.slane %v8712_v33, 5  ;;  %v8713_v39 = vld [vmem:[#allocation15_spill] sm:$0xff]  ;;  %v8714_v23 = vld [vmem:[#allocation61_spill] sm:$0xff] }
 0x196   : > { %8711 = vst [vmem:[#allocation173_spill] sm:$0xff] %v6289_v42  ;;  %v2557_v44 = vadd.f32 %v2493_v30, %v8713_v39  ;;  %v7787_v4 = vrot.slane %v8714_v23, 6  ;;  %v3437_v16 = vmul.f32 %v3789_v53, %v6195_v22  ;;  %v8715_v56 = vrot.slane %v8712_v33, 6  ;;  %v8717_v61 = vld [vmem:[#allocation45_spill] sm:$0xff]  ;;  %v8720_v30 = vld [vmem:[#allocation208_spill] sm:$0xff]  ;;  %v3310_v22 = vld [vmem:[%s3956_s25 + $0x140] sm:$0xff] }
 0x197   : > { %v2989_v36 = vadd.f32 %v2885_v55, %v2604_v20  ;;  %v1835_v59 = vadd.f32 %v1771_v58, %v1450_v5  ;;  %v6301_v21 = vrot.slane %v8717_v61, 7  ;;  %v2886_v55 = vadd.f32 %v2822_v3, %v8719_v28  ;;  %v8722_v5 = vld [vmem:[#allocation181_spill] sm:$0xff] }
 0x198   : > { %v6298_v17 = vadd.f32 %v8715_v56, %v536_v19  ;;  %v1315_v20 = vadd.f32 %v8720_v30, %v7787_v4  ;;  %v6309_v39 = vrot.slane %v8568_v62, 1  ;;  %3501 = vst [vmem:[%s4225_s28 + $0x130] sm:$0xff] %v3437_v16  ;;  %v6321_v4 = vrot.slane %v8574_v26, 2  ;;  %v8732_v62 = vld [vmem:[#allocation40_spill] sm:$0xff] }
 0x199   : > { %8718 = vst [vmem:[#allocation206_spill] sm:$0xff] %v6301_v21  ;;  %v3117_v43 = vadd.f32 %v3021_v37, %v2989_v36  ;;  %v2220_v58 = vadd.f32 %v2164_v52, %v1835_v59  ;;  %v1708_v53 = vadd.f32 %v6301_v21, %v8717_v61  ;;  %v8723_v37 = vld [vmem:[#allocation46_spill] sm:$0xff]  ;;  %v8724_v36 = vld [vmem:[#allocation209_spill] sm:$0xff]  ;;  %v8727_v52 = vrot.slane %v8710_v12, 4  ;;  %v8737_v12 = vld [vmem:[#allocation68_spill] sm:$0xff] }
 0x19a   : > { %8716 = vst [vmem:[#allocation32_spill] sm:$0xff] %v6298_v17  ;;  %8721 = vst [vmem:[#allocation25_spill] sm:$0xff] %v6309_v39  ;;  %v1179_v19 = vadd.f32 %v8722_v5, %v6298_v17  ;;  %v2101_v56 = vadd.f32 %v8724_v36, %v8723_v37  ;;  %v1379_v3 = vadd.f32 %v1315_v20, %v8714_v23  ;;  %v8728_v5 = vld [vmem:[#allocation175_spill] sm:$0xff]  ;;  %v8729_v17 = vld [vmem:[#allocation182_spill] sm:$0xff]  ;;  %v6342_v61 = vrot.slane %v8737_v12, 7 }
 0x19b   : > { %v3181_v28 = vadd.f32 1e-06, %v3117_v43  ;;  %8725 = vst [vmem:[#allocation176_spill] sm:$0xff] %v6321_v4  ;;  %v2494_v16 = vadd.f32 %v8726_v6, %v6309_v39  ;;  %v2605_v33 = vadd.f32 %v2557_v44, %v2220_v58  ;;  %v3022_v59 = vadd.f32 %v8727_v52, %v6289_v42  ;;  %v8730_v36 = vld [vmem:[#allocation44_spill] sm:$0xff]  ;;  %v8734_v39 = vld [vmem:[#allocation69_spill] sm:$0xff] }
 0x19c   : > { %v1259_v0 = vadd.f32 %v1179_v19, %v8728_v5  ;;  %v1772_v30 = vadd.f32 %v1708_v53, %v8729_v17  ;;  %v3375_v43 = vadd.f32 %v3926_v10, %v3310_v22  ;;  %v6332_v20 = vrot.slane %v8730_v36, 3  ;;  %v8733_v44 = vld [vmem:[#allocation184_spill] sm:$0xff]  ;;  %v8735_v5 = vld [vmem:[#allocation37_spill] sm:$0xff]  ;;  %v8736_v53 = vld [vmem:[#allocation70_spill] sm:$0xff]  ;;  %8738 = vst [vmem:[#allocation177_spill] sm:$0xff] %v6342_v61 }
 0x19d   : > { %3792 = vrsqrt.f32 %v3181_v28  ;;  %v2823_v37 = vadd.f32 %v8732_v62, %v6321_v4  ;;  %v2990_v21 = vadd.f32 %v2886_v55, %v2605_v33  ;;  %v2165_v58 = vadd.f32 %v2101_v56, %v8733_v44 }
 0x19e   : > { %8731 = vst [vmem:[#allocation204_spill] sm:$0xff] %v6332_v20  ;;  %v1451_v6 = vadd.f32 %v1379_v3, %v1259_v0  ;;  %v537_v52 = vrot.slane %v8734_v39, 5  ;;  %v3791_v19 = vpop.eup %3790  ;;  %v2558_v17 = vadd.f32 %v2494_v16, %v8735_v5  ;;  %v7800_v28 = vrot.slane %v8736_v53, 6  ;;  %v8742_v16 = vld [vmem:[#allocation180_spill] sm:$0xff] }
 0x19f   : > { %v3438_v62 = vmul.f32 %v3791_v19, %v3374_v32  ;;  %v3118_v33 = vadd.f32 %v3022_v59, %v2990_v21  ;;  %v8739_v55 = vrot.slane %v8734_v39, 6  ;;  %v8741_v3 = vrot.slane %v8574_v26, 4  ;;  %v8744_v59 = vld [vmem:[#allocation185_spill] sm:$0xff]  ;;  %v8745_v19 = vld [vmem:[#allocation71_spill] sm:$0xff] }
 0x1a0   : > { %v1836_v0 = vadd.f32 %v1772_v30, %v1451_v6  ;;  %v1316_v5 = vadd.f32 %v8742_v16, %v7800_v28  ;;  %v6354_v22 = vrot.slane %v8441_v51, 1  ;;  %v1709_v4 = vadd.f32 %v6342_v61, %v8737_v12  ;;  %v3311_v6 = vld [vmem:[%s3956_s25 + $0x148] sm:$0xff]  ;;  %v3312_v30 = vld [vmem:[%s3956_s25 + $0x150] sm:$0xff] }
 0x1a1   : > { %v6346_v56 = vadd.f32 %v8739_v55, %v537_v52  ;;  %v2887_v44 = vadd.f32 %v2823_v37, %v8741_v3  ;;  %3502 = vst [vmem:[%s4225_s28 + $0x138] sm:$0xff] %v3438_v62  ;;  %v3182_v21 = vadd.f32 1e-06, %v3118_v33  ;;  %v8746_v37 = vld [vmem:[#allocation49_spill] sm:$0xff]  ;;  %v8747_v3 = vrot.slane %v8730_v36, 4  ;;  %v8749_v62 = vld [vmem:[#allocation183_spill] sm:$0xff] }
 0x1a2   : > { %8743 = vst [vmem:[#allocation15_spill] sm:$0xff] %v6354_v22  ;;  %v2221_v32 = vadd.f32 %v2165_v58, %v1836_v0  ;;  %v2102_v55 = vadd.f32 %v8746_v37, %v8745_v19  ;;  %v1380_v39 = vadd.f32 %v1316_v5, %v8736_v53  ;;  %v6370_v26 = vrot.slane %v8597_v41, 2  ;;  %v8750_v0 = vld [vmem:[#allocation42_spill] sm:$0xff] }
 0x1a3   : > { %8740 = vst [vmem:[#allocation178_spill] sm:$0xff] %v6346_v56  ;;  %v1180_v52 = vadd.f32 %v8744_v59, %v6346_v56  ;;  %v3023_v28 = vadd.f32 %v8747_v3, %v6332_v20  ;;  %v2495_v33 = vadd.f32 %v8749_v62, %v6354_v22  ;;  %3794 = vrsqrt.f32 %v3182_v21  ;;  %v8751_v59 = vld [vmem:[#allocation56_spill] sm:$0xff]  ;;  %v8752_v3 = vld [vmem:[#allocation187_spill] sm:$0xff]  ;;  %v8753_v5 = vld [vmem:[#allocation66_spill] sm:$0xff] }
 0x1a4   : > { %8748 = vst [vmem:[#allocation61_spill] sm:$0xff] %v6370_v26  ;;  %v2606_v58 = vadd.f32 %v2558_v17, %v2221_v32  ;;  %v1773_v56 = vadd.f32 %v1709_v4, %v8751_v59  ;;  %v3376_v37 = vadd.f32 %v3926_v10, %v3311_v6  ;;  %v6378_v51 = vadd.f32 %v3926_v10, %v3312_v30  ;;  %v8754_v4 = vld [vmem:[#allocation62_spill] sm:$0xff]  ;;  %v8759_v6 = vld [vmem:[#allocation93_spill] sm:$0xff] }
 0x1a5   : > { %v1260_v16 = vadd.f32 %v1180_v52, %v8750_v0  ;;  %v2166_v36 = vadd.f32 %v2102_v55, %v8752_v3  ;;  %v6382_v19 = vrot.slane %v8753_v5, 3  ;;  %v2824_v17 = vadd.f32 %v6016_v57, %v6370_v26  ;;  %v8760_v57 = vld [vmem:[#allocation73_spill] sm:$0xff] }
 0x1a6   : > { %v2991_v61 = vadd.f32 %v2887_v44, %v2606_v58  ;;  %v538_v21 = vrot.slane %v8600_v14, 5  ;;  %v2559_v52 = vadd.f32 %v2495_v33, %v8754_v4  ;;  %v7810_v30 = vrot.slane %v8601_v1, 6  ;;  %v8757_v58 = vld [vmem:[#allocation186_spill] sm:$0xff] }
 0x1a7   : > { %v1452_v12 = vadd.f32 %v1380_v39, %v1260_v16  ;;  %v3793_v32 = vpop.eup %3792  ;;  %v6391_v55 = vrot.slane %v8607_v48, 7  ;;  %v8755_v39 = vrot.slane %v8600_v14, 6  ;;  %v6401_v33 = vrot.slane %v8462_v24, 1 }
 0x1a8   : > { %v3439_v0 = vmul.f32 %v3793_v32, %v3375_v43  ;;  %v3119_v59 = vadd.f32 %v3023_v28, %v2991_v61  ;;  %v1317_v3 = vadd.f32 %v8757_v58, %v7810_v30  ;;  %v2103_v62 = vadd.f32 %v8760_v57, %v8759_v6  ;;  %v8765_v57 = vld [vmem:[#allocation188_spill] sm:$0xff] }
 0x1a9   : > { %v1837_v44 = vadd.f32 %v1773_v56, %v1452_v12  ;;  %v6395_v16 = vadd.f32 %v8755_v39, %v538_v21  ;;  %8758 = vst [vmem:[#allocation175_spill] sm:$0xff] %v6401_v33  ;;  %v1710_v4 = vadd.f32 %v6391_v55, %v8607_v48  ;;  %v8761_v43 = vrot.slane %v8597_v41, 4  ;;  %v8762_v56 = vld [vmem:[#allocation189_spill] sm:$0xff] }
 0x1aa   : > { %3503 = vst [vmem:[%s4225_s28 + $0x140] sm:$0xff] %v3439_v0  ;;  %v3183_v61 = vadd.f32 1e-06, %v3119_v59  ;;  %v8763_v32 = vrot.slane %v8753_v5, 4  ;;  %v1381_v30 = vadd.f32 %v1317_v3, %v8601_v1  ;;  %v6417_v14 = vrot.slane %v8617_v15, 2  ;;  %v8766_v59 = vld [vmem:[#allocation64_spill] sm:$0xff] }
 0x1ab   : > { %8756 = vst [vmem:[#allocation181_spill] sm:$0xff] %v6395_v16  ;;  %v2222_v12 = vadd.f32 %v2166_v36, %v1837_v44  ;;  %v2888_v28 = vadd.f32 %v2824_v17, %v8761_v43  ;;  %v1181_v21 = vadd.f32 %v8762_v56, %v6395_v16  ;;  %v2496_v0 = vadd.f32 %v8765_v57, %v6401_v33  ;;  %v8767_v17 = vld [vmem:[#allocation190_spill] sm:$0xff]  ;;  %v8768_v56 = vld [vmem:[#allocation191_spill] sm:$0xff]  ;;  %v8769_v16 = vld [vmem:[#allocation88_spill] sm:$0xff] }
 0x1ac   : > { %v3024_v39 = vadd.f32 %v8763_v32, %v6382_v19  ;;  %8764 = vst [vmem:[#allocation182_spill] sm:$0xff] %v6417_v14  ;;  %3796 = vrsqrt.f32 %v3183_v61  ;;  %v1774_v43 = vadd.f32 %v1710_v4, %v8767_v17  ;;  %v2167_v41 = vadd.f32 %v2103_v62, %v8768_v56  ;;  %v8770_v4 = vld [vmem:[#allocation85_spill] sm:$0xff] }
 0x1ad   : > { %v2607_v36 = vadd.f32 %v2559_v52, %v2222_v12  ;;  %v1261_v44 = vadd.f32 %v1181_v21, %v8766_v59  ;;  %v6425_v5 = vrot.slane %v8769_v16, 3  ;;  %v2825_v3 = vadd.f32 %v6059_v35, %v6417_v14  ;;  %v3795_v58 = vpop.eup %3794  ;;  %v3313_v14 = vld [vmem:[%s3956_s25 + $0x158] sm:$0xff] }
 0x1ae   : > { %v539_v32 = vrot.slane %v8468_v25, 5  ;;  %v7820_v12 = vrot.slane %v8473_v13, 6  ;;  %v3440_v21 = vmul.f32 %v3795_v58, %v3376_v37  ;;  %v2560_v59 = vadd.f32 %v2496_v0, %v8770_v4  ;;  %v8778_v4 = vld [vmem:[#allocation194_spill] sm:$0xff] }
 0x1af   : > { %v2992_v57 = vadd.f32 %v2888_v28, %v2607_v36  ;;  %v1453_v61 = vadd.f32 %v1381_v30, %v1261_v44  ;;  %v8771_v62 = vrot.slane %v8468_v25, 6  ;;  %v6438_v56 = vrot.slane %v8625_v45, 7  ;;  %v8781_v25 = vld [vmem:[#allocation101_spill] sm:$0xff] }
 0x1b0   : > { %v8773_v28 = vrot.slane %v8617_v15, 4  ;;  %v1318_v36 = vadd.f32 %v6072_v11, %v7820_v12  ;;  %3504 = vst [vmem:[%s4225_s28 + $0x148] sm:$0xff] %v3440_v21  ;;  %v6450_v58 = vrot.slane %v8481_v31, 1  ;;  %v8777_v21 = vld [vmem:[#allocation90_spill] sm:$0xff] }
 0x1b1   : > { %v6435_v17 = vadd.f32 %v8771_v62, %v539_v32  ;;  %v3120_v35 = vadd.f32 %v3024_v39, %v2992_v57  ;;  %v1838_v33 = vadd.f32 %v1774_v43, %v1453_v61  ;;  %v1711_v0 = vadd.f32 %v6438_v56, %v8625_v45  ;;  %v8775_v57 = vld [vmem:[#allocation115_spill] sm:$0xff] }
 0x1b2   : > { %v2889_v30 = vadd.f32 %v2825_v3, %v8773_v28  ;;  %8774 = vst [vmem:[#allocation37_spill] sm:$0xff] %v6450_v58  ;;  %v2104_v39 = vadd.f32 %v6084_v47, %v8775_v57  ;;  %v1382_v3 = vadd.f32 %v1318_v36, %v8473_v13  ;;  %v6458_v32 = vrot.slane %v8633_v46, 2  ;;  %v8779_v28 = vld [vmem:[#allocation79_spill] sm:$0xff] }
 0x1b3   : > { %8772 = vst [vmem:[#allocation184_spill] sm:$0xff] %v6435_v17  ;;  %v1182_v37 = vadd.f32 %v5706_v7, %v6435_v17  ;;  %v3184_v44 = vadd.f32 1e-06, %v3120_v35  ;;  %v2223_v43 = vadd.f32 %v2167_v41, %v1838_v33  ;;  %v3378_v61 = vadd.f32 %v3926_v10, %v3313_v14  ;;  %v8782_v14 = vld [vmem:[#allocation110_spill] sm:$0xff] }
 0x1b4   : > { %8776 = vst [vmem:[#allocation70_spill] sm:$0xff] %v6458_v32  ;;  %v1775_v62 = vadd.f32 %v1711_v0, %v8778_v4  ;;  %v2497_v12 = vadd.f32 %v8779_v28, %v6450_v58  ;;  %v8780_v35 = vrot.slane %v8769_v16, 4  ;;  %v2826_v33 = vadd.f32 %v6106_v9, %v6458_v32  ;;  %v8796_v4 = vld [vmem:[#allocation112_spill] sm:$0xff] }
 0x1b5   : > { %v1262_v7 = vadd.f32 %v1182_v37, %v8777_v21  ;;  %3798 = vrsqrt.f32 %v3184_v44  ;;  %v2608_v52 = vadd.f32 %v2560_v59, %v2223_v43  ;;  %v2168_v15 = vadd.f32 %v2104_v39, %v8781_v25  ;;  %v8784_v59 = vld [vmem:[#allocation196_spill] sm:$0xff] }
 0x1b6   : > { %v3025_v41 = vadd.f32 %v8780_v35, %v6425_v5  ;;  %v6472_v37 = vrot.slane %v8782_v14, 3  ;;  %v540_v0 = vrot.slane %v8486_v50, 5  ;;  %v3797_v21 = vpop.eup %3796  ;;  %v2561_v43 = vadd.f32 %v2497_v12, %v8784_v59  ;;  %v8790_v12 = vld [vmem:[#allocation192_spill] sm:$0xff] }
 0x1b7   : > { %v1454_v36 = vadd.f32 %v1382_v3, %v1262_v7  ;;  %v2993_v44 = vadd.f32 %v2889_v30, %v2608_v52  ;;  %v7826_v35 = vrot.slane %v8492_v8, 6  ;;  %v3441_v9 = vmul.f32 %v3797_v21, %v6378_v51  ;;  %v8787_v7 = vld [vmem:[#allocation134_spill] sm:$0xff]  ;;  %v3314_v51 = vld [vmem:[%s3956_s25 + $0x160] sm:$0xff] }
 0x1b8   : > { %8783 = vst [vmem:[#allocation185_spill] sm:$0xff] %v6472_v37  ;;  %v8785_v25 = vrot.slane %v8486_v50, 6  ;;  %v6484_v28 = vrot.slane %v8787_v7, 7  ;;  %v8789_v17 = vrot.slane %v8633_v46, 4  ;;  %v6492_v59 = vrot.slane %v8498_v49, 1 }
 0x1b9   : > { %v1839_v3 = vadd.f32 %v1775_v62, %v1454_v36  ;;  %v3121_v47 = vadd.f32 %v3025_v41, %v2993_v44  ;;  %v1319_v30 = vadd.f32 %v8790_v12, %v7826_v35  ;;  %3505 = vst [vmem:[%s4225_s28 + $0x150] sm:$0xff] %v3441_v9  ;;  %v8792_v36 = vld [vmem:[#allocation103_spill] sm:$0xff]  ;;  %v8793_v41 = vld [vmem:[#allocation137_spill] sm:$0xff]  ;;  %v6504_v35 = vrot.slane %v8650_v18, 2 }
 0x1ba   : > { %v6481_v39 = vadd.f32 %v8785_v25, %v540_v0  ;;  %8788 = vst [vmem:[#allocation56_spill] sm:$0xff] %v6484_v28  ;;  %v2890_v52 = vadd.f32 %v2826_v33, %v8789_v17  ;;  %8791 = vst [vmem:[#allocation187_spill] sm:$0xff] %v6492_v59  ;;  %v1712_v21 = vadd.f32 %v6484_v28, %v8787_v7  ;;  %v8794_v44 = vld [vmem:[#allocation107_spill] sm:$0xff] }
 0x1bb   : > { %v2224_v62 = vadd.f32 %v2168_v15, %v1839_v3  ;;  %v2105_v25 = vadd.f32 %v8794_v44, %v8793_v41  ;;  %v3185_v17 = vadd.f32 1e-06, %v3121_v47  ;;  %v1383_v33 = vadd.f32 %v1319_v30, %v8492_v8  ;;  %8795 = vst [vmem:[#allocation62_spill] sm:$0xff] %v6504_v35  ;;  %v8800_v44 = vld [vmem:[#allocation132_spill] sm:$0xff] }
 0x1bc   : > { %8786 = vst [vmem:[#allocation42_spill] sm:$0xff] %v6481_v39  ;;  %v1183_v0 = vadd.f32 %v8792_v36, %v6481_v39  ;;  %v2498_v9 = vadd.f32 %v8796_v4, %v6492_v59  ;;  %v8797_v15 = vrot.slane %v8782_v14, 4  ;;  %v8798_v36 = vld [vmem:[#allocation95_spill] sm:$0xff]  ;;  %v8799_v39 = vld [vmem:[#allocation197_spill] sm:$0xff]  ;;  %v3379_v47 = vadd.f32 %v3926_v10, %v3314_v51 }
 0x1bd   : > { %v2609_v50 = vadd.f32 %v2561_v43, %v2224_v62  ;;  %v1776_v12 = vadd.f32 %v1712_v21, %v8799_v39  ;;  %3800 = vrsqrt.f32 %v3185_v17  ;;  %v6515_v30 = vrot.slane %v8800_v44, 3  ;;  %v8802_v43 = vld [vmem:[#allocation198_spill] sm:$0xff]  ;;  %v8804_v17 = vld [vmem:[#allocation155_spill] sm:$0xff] }
 0x1be   : > { %v3026_v3 = vadd.f32 %v8797_v15, %v6472_v37  ;;  %v1263_v46 = vadd.f32 %v1183_v0, %v8798_v36  ;;  %v2827_v49 = vadd.f32 %v6149_v2, %v6504_v35  ;;  %v2169_v62 = vadd.f32 %v2105_v25, %v8802_v43  ;;  %v8803_v36 = vld [vmem:[#allocation123_spill] sm:$0xff] }
 0x1bf   : > { %8801 = vst [vmem:[#allocation93_spill] sm:$0xff] %v6515_v30  ;;  %v2994_v41 = vadd.f32 %v2890_v52, %v2609_v50  ;;  %v541_v15 = vrot.slane %v8502_v40, 5  ;;  %v3799_v0 = vpop.eup %3798  ;;  %v2562_v39 = vadd.f32 %v2498_v9, %v8803_v36  ;;  %v7835_v21 = vrot.slane %v8654_v38, 6  ;;  %v8809_v9 = vld [vmem:[#allocation108_spill] sm:$0xff] }
 0x1c0   : > { %v1455_v4 = vadd.f32 %v1383_v33, %v1263_v46  ;;  %v6525_v14 = vrot.slane %v8804_v17, 7  ;;  %v3442_v2 = vmul.f32 %v3799_v0, %v3378_v61  ;;  %v8806_v52 = vrot.slane %v8502_v40, 6  ;;  %v8812_v0 = vld [vmem:[#allocation157_spill] sm:$0xff] }
 0x1c1   : > { %v3122_v50 = vadd.f32 %v3026_v3, %v2994_v41  ;;  %v8808_v33 = vrot.slane %v8650_v18, 4  ;;  %v1320_v36 = vadd.f32 %v8809_v9, %v7835_v21  ;;  %v6537_v51 = vrot.slane %v8515_v60, 1  ;;  %v3316_v41 = vld [vmem:[%s3956_s25 + $0x170] sm:$0xff]  ;;  %v8811_v3 = vld [vmem:[#allocation200_spill] sm:$0xff] }
 0x1c2   : > { %8805 = vst [vmem:[#allocation189_spill] sm:$0xff] %v6525_v14  ;;  %v1840_v46 = vadd.f32 %v1776_v12, %v1455_v4  ;;  %v6529_v25 = vadd.f32 %v8806_v52, %v541_v15  ;;  %v1713_v35 = vadd.f32 %v6525_v14, %v8804_v17  ;;  %3506 = vst [vmem:[%s4225_s28 + $0x158] sm:$0xff] %v3442_v2  ;;  %v3315_v4 = vld [vmem:[%s3956_s25 + $0x168] sm:$0xff]  ;;  %v8813_v52 = vrot.slane %v8800_v44, 4  ;;  %v8815_v2 = vld [vmem:[#allocation129_spill] sm:$0xff] }
 0x1c3   : > { %v2891_v43 = vadd.f32 %v2827_v49, %v8808_v33  ;;  %8810 = vst [vmem:[#allocation190_spill] sm:$0xff] %v6537_v51  ;;  %v3186_v61 = vadd.f32 1e-06, %v3122_v50  ;;  %v2106_v49 = vadd.f32 %v6171_v27, %v8812_v0  ;;  %v1384_v21 = vadd.f32 %v1320_v36, %v8654_v38  ;;  %v8817_v18 = vld [vmem:[#allocation125_spill] sm:$0xff]  ;;  %v8819_v36 = vld [vmem:[#allocation114_spill] sm:$0xff] }
 0x1c4   : > { %8807 = vst [vmem:[#allocation64_spill] sm:$0xff] %v6529_v25  ;;  %v2225_v12 = vadd.f32 %v2169_v62, %v1840_v46  ;;  %v1184_v15 = vadd.f32 %v8811_v3, %v6529_v25  ;;  %v3027_v33 = vadd.f32 %v8813_v52, %v6515_v30  ;;  %v6553_v40 = vrot.slane %v8667_v34, 2  ;;  %v8816_v46 = vld [vmem:[#allocation117_spill] sm:$0xff]  ;;  %v3317_v17 = vld [vmem:[%s3956_s25 + $0x178] sm:$0xff] }
 0x1c5   : > { %v2499_v62 = vadd.f32 %v8815_v2, %v6537_v51  ;;  %3802 = vrsqrt.f32 %v3186_v61  ;;  %v1777_v25 = vadd.f32 %v1713_v35, %v8817_v18  ;;  %v3380_v27 = vadd.f32 %v3926_v10, %v3315_v4  ;;  %v8818_v52 = vld [vmem:[#allocation201_spill] sm:$0xff]  ;;  %v8824_v4 = vld [vmem:[#allocation154_spill] sm:$0xff] }
 0x1c6   : > { %8814 = vst [vmem:[#allocation191_spill] sm:$0xff] %v6553_v40  ;;  %v2610_v50 = vadd.f32 %v2562_v39, %v2225_v12  ;;  %v1264_v3 = vadd.f32 %v1184_v15, %v8816_v46  ;;  %v6561_v9 = vadd.f32 %v3926_v10, %v3316_v41  ;;  %v2170_v44 = vadd.f32 %v2106_v49, %v8818_v52  ;;  %v8820_v2 = vld [vmem:[#allocation21_spill] sm:$0xff]  ;;  %v8823_v15 = vld [vmem:[#allocation130_spill] sm:$0xff]  ;;  %v8827_v49 = vld [vmem:[#allocation8_spill] sm:$0xff] }
 0x1c7   : > { %v2828_v60 = vadd.f32 %v8819_v36, %v6553_v40  ;;  %v542_v39 = vrot.slane %v8820_v2, 5  ;;  %v8821_v61 = vld [vmem:[#allocation5_spill] sm:$0xff]  ;;  %v3801_v35 = vpop.eup %3800  ;;  %v6572_v46 = vrot.slane %v8824_v4, 3  ;;  %v8826_v41 = vld [vmem:[#allocation202_spill] sm:$0xff]  ;;  %v8831_v30 = vrot.slane %v8820_v2, 6 }
 0x1c8   : > { %v2995_v0 = vadd.f32 %v2891_v43, %v2610_v50  ;;  %v1456_v14 = vadd.f32 %v1384_v21, %v1264_v3  ;;  %v8822_v12 = vrot.slane %v8821_v61, 6  ;;  %v2563_v51 = vadd.f32 %v2499_v62, %v8826_v41  ;;  %v8828_v52 = vld [vmem:[#allocation13_spill] sm:$0xff]  ;;  %v8830_v43 = vld [vmem:[#allocation199_spill] sm:$0xff] }
 0x1c9   : > { %8825 = vst [vmem:[#allocation88_spill] sm:$0xff] %v6572_v46  ;;  %v1714_v38 = vadd.f32 %v8828_v52, %v8827_v49  ;;  %v8829_v36 = vld [vmem:[#allocation9_spill] sm:$0xff]  ;;  %v3443_v50 = vmul.f32 %v3801_v35, %v3379_v47  ;;  %v6581_v59 = vadd.f32 %v8831_v30, %v542_v39  ;;  %v6587_v62 = vadd.f32 %v3926_v10, %v3317_v17  ;;  %v8836_v30 = vld [vmem:[#allocation147_spill] sm:$0xff] }
 0x1ca   : > { %v1321_v18 = vadd.f32 %v8823_v15, %v8822_v12  ;;  %v2107_v21 = vadd.f32 %v8830_v43, %v8829_v36  ;;  %v3123_v3 = vadd.f32 %v3027_v33, %v2995_v0  ;;  %v1841_v40 = vadd.f32 %v1777_v25, %v1456_v14  ;;  %v8834_v14 = vld [vmem:[#allocation145_spill] sm:$0xff]  ;;  %v8835_v0 = vld [vmem:[#allocation11_spill] sm:$0xff]  ;;  %v8852_v36 = vld [vmem:[#allocation34_spill] sm:$0xff] }
 0x1cb   : > { %8832 = vst [vmem:[#allocation85_spill] sm:$0xff] %v6581_v59  ;;  %v7858_v12 = vrot.slane %v8824_v4, 4  ;;  %v8833_v15 = vrot.slane %v8667_v34, 4  ;;  %3507 = vst [vmem:[%s4225_s28 + $0x160] sm:$0xff] %v3443_v50  ;;  %v1185_v25 = vadd.f32 %v8834_v14, %v6581_v59  ;;  %v2436_v33 = vadd.f32 %v8836_v30, %v8835_v0  ;;  %v8838_v17 = vld [vmem:[#allocation205_spill] sm:$0xff]  ;;  %v3318_v34 = vld [vmem:[%s3956_s25 + $0x180] sm:$0xff] }
 0x1cc   : > { %v1385_v41 = vadd.f32 %v1321_v18, %v8821_v61  ;;  %v3187_v43 = vadd.f32 1e-06, %v3123_v3  ;;  %v2226_v47 = vadd.f32 %v2170_v44, %v1841_v40  ;;  %v543_v35 = vrot.slane %v8690_v54, 5  ;;  %v8839_v18 = vld [vmem:[#allocation139_spill] sm:$0xff]  ;;  %v8840_v44 = vld [vmem:[#allocation6_spill] sm:$0xff]  ;;  %v8841_v3 = vld [vmem:[#allocation16_spill] sm:$0xff] }
 0x1cd   : > { %v2892_v28 = vadd.f32 %v2828_v60, %v8833_v15  ;;  %v3028_v2 = vadd.f32 %v7858_v12, %v6572_v46  ;;  %v8837_v60 = vld [vmem:[#allocation149_spill] sm:$0xff]  ;;  %v2171_v15 = vadd.f32 %v2107_v21, %v8838_v17  ;;  %v1265_v40 = vadd.f32 %v1185_v25, %v8839_v18  ;;  %v8846_v17 = vld [vmem:[#allocation28_spill] sm:$0xff] }
 0x1ce   : > { %v1778_v39 = vadd.f32 %v1714_v38, %v8837_v60  ;;  %3804 = vrsqrt.f32 %v3187_v43  ;;  %v2611_v61 = vadd.f32 %v2563_v51, %v2226_v47  ;;  %v2829_v14 = vadd.f32 %v6242_v29, %v8841_v3  ;;  %v8845_v60 = vld [vmem:[#allocation159_spill] sm:$0xff]  ;;  %v8847_v43 = vld [vmem:[#allocation30_spill] sm:$0xff]  ;;  %v8848_v12 = vld [vmem:[#allocation164_spill] sm:$0xff] }
 0x1cf   : > { %v8842_v30 = vrot.slane %v8690_v54, 6  ;;  %v8844_v38 = vrot.slane %v8694_v63, 6  ;;  %v1715_v51 = vadd.f32 %v8847_v43, %v8846_v17  ;;  %v3803_v47 = vpop.eup %3802  ;;  %v1457_v18 = vadd.f32 %v1385_v41, %v1265_v40  ;;  %v8849_v0 = vld [vmem:[#allocation29_spill] sm:$0xff]  ;;  %v8850_v29 = vld [vmem:[#allocation203_spill] sm:$0xff]  ;;  %v8858_v40 = vld [vmem:[#allocation152_spill] sm:$0xff] }
 0x1d0   : > { %v2996_v25 = vadd.f32 %v2892_v28, %v2611_v61  ;;  %v2500_v50 = vadd.f32 %v2436_v33, %v8848_v12  ;;  %v2108_v3 = vadd.f32 %v8850_v29, %v8849_v0  ;;  %v3444_v54 = vmul.f32 %v3803_v47, %v3380_v27  ;;  %v8854_v17 = vld [vmem:[#allocation19_spill] sm:$0xff]  ;;  %v8856_v33 = vld [vmem:[#allocation4_spill] sm:$0xff] }
 0x1d1   : > { %v6608_v4 = vadd.f32 %v8842_v30, %v543_v35  ;;  %v1322_v21 = vadd.f32 %v8845_v60, %v8844_v38  ;;  %v8851_v30 = vld [vmem:[#allocation207_spill] sm:$0xff]  ;;  %v8853_v38 = vld [vmem:[#allocation169_spill] sm:$0xff]  ;;  %v1842_v43 = vadd.f32 %v1778_v39, %v1457_v18  ;;  %v8855_v28 = vrot.slane %v8840_v44, 4  ;;  %v8871_v0 = vld [vmem:[#allocation24_spill] sm:$0xff] }
 0x1d2   : > { %v2437_v60 = vadd.f32 %v8853_v38, %v8852_v36  ;;  %v3124_v52 = vadd.f32 %v3028_v2, %v2996_v25  ;;  %v6627_v12 = vadd.f32 %v3926_v10, %v3318_v34  ;;  %3508 = vst [vmem:[%s4225_s28 + $0x168] sm:$0xff] %v3444_v54  ;;  %v8857_v27 = vrot.slane %v8856_v33, 4  ;;  %v3319_v25 = vld [vmem:[%s3956_s25 + $0x188] sm:$0xff]  ;;  %v8863_v34 = vld [vmem:[#allocation206_spill] sm:$0xff] }
 0x1d3   : > { %8843 = vst [vmem:[#allocation115_spill] sm:$0xff] %v6608_v4  ;;  %v1186_v35 = vadd.f32 %v8851_v30, %v6608_v4  ;;  %v1386_v59 = vadd.f32 %v1322_v21, %v8694_v63  ;;  %v3029_v41 = vadd.f32 %v8855_v28, %v8854_v17  ;;  %v8859_v30 = vld [vmem:[#allocation10_spill] sm:$0xff]  ;;  %v2227_v39 = vadd.f32 %v2171_v15, %v1842_v43  ;;  %v8861_v28 = vld [vmem:[#allocation45_spill] sm:$0xff] }
 0x1d4   : > { %v2893_v61 = vadd.f32 %v2829_v14, %v8857_v27  ;;  %v1779_v63 = vadd.f32 %v1715_v51, %v8859_v30  ;;  %v8860_v21 = vld [vmem:[#allocation38_spill] sm:$0xff]  ;;  %v3188_v2 = vadd.f32 1e-06, %v3124_v52  ;;  %v544_v18 = vrot.slane %v8714_v23, 5 }
 0x1d5   : > { %v1266_v47 = vadd.f32 %v1186_v35, %v8858_v40  ;;  %v2830_v38 = vadd.f32 %v6289_v42, %v8860_v21  ;;  %v8862_v29 = vrot.slane %v8861_v28, 6  ;;  %v8864_v4 = vld [vmem:[#allocation174_spill] sm:$0xff]  ;;  %v2612_v51 = vadd.f32 %v2500_v50, %v2227_v39  ;;  %v8876_v39 = vld [vmem:[#allocation208_spill] sm:$0xff] }
 0x1d6   : > { %v2172_v33 = vadd.f32 %v2108_v3, %v8864_v4  ;;  %v8865_v14 = vld [vmem:[#allocation18_spill] sm:$0xff]  ;;  %3806 = vrsqrt.f32 %v3188_v2  ;;  %v8867_v30 = vrot.slane %v8714_v23, 6  ;;  %v8872_v44 = vrot.slane %v8871_v0, 4  ;;  %v8873_v4 = vld [vmem:[#allocation48_spill] sm:$0xff]  ;;  %v8874_v3 = vld [vmem:[#allocation25_spill] sm:$0xff] }
 0x1d7   : > { %v1323_v36 = vadd.f32 %v8863_v34, %v8862_v29  ;;  %v1458_v54 = vadd.f32 %v1386_v59, %v1266_v47  ;;  %v2501_v27 = vadd.f32 %v2437_v60, %v8865_v14  ;;  %v8866_v35 = vld [vmem:[#allocation26_spill] sm:$0xff]  ;;  %v6653_v59 = vadd.f32 %v3926_v10, %v3319_v25  ;;  %v8875_v23 = vld [vmem:[#allocation41_spill] sm:$0xff] }
 0x1d8   : > { %v7864_v40 = vrot.slane %v8866_v35, 4  ;;  %v6646_v52 = vadd.f32 %v8867_v30, %v544_v18  ;;  %v8869_v15 = vld [vmem:[#allocation46_spill] sm:$0xff]  ;;  %v2894_v29 = vadd.f32 %v2830_v38, %v8872_v44  ;;  %v2109_v60 = vadd.f32 %v8874_v3, %v8873_v4  ;;  %v3805_v47 = vpop.eup %3804  ;;  %v8877_v25 = vld [vmem:[#allocation53_spill] sm:$0xff]  ;;  %v8878_v18 = vld [vmem:[#allocation176_spill] sm:$0xff] }
 0x1d9   : > { %v8870_v43 = vld [vmem:[#allocation50_spill] sm:$0xff]  ;;  %v1843_v21 = vadd.f32 %v1779_v63, %v1458_v54  ;;  %v2997_v50 = vadd.f32 %v2893_v61, %v2612_v51  ;;  %v1387_v0 = vadd.f32 %v1323_v36, %v8861_v28  ;;  %v3445_v44 = vmul.f32 %v3805_v47, %v6561_v9  ;;  %v8880_v61 = vld [vmem:[#allocation32_spill] sm:$0xff]  ;;  %v8881_v4 = vld [vmem:[#allocation209_spill] sm:$0xff] }
 0x1da   : > { %8868 = vst [vmem:[#allocation90_spill] sm:$0xff] %v6646_v52  ;;  %v1716_v42 = vadd.f32 %v8870_v43, %v8869_v15  ;;  %v3030_v2 = vadd.f32 %v7864_v40, %v8875_v23  ;;  %v1187_v63 = vadd.f32 %v8876_v39, %v6646_v52  ;;  %v2438_v54 = vadd.f32 %v8878_v18, %v8877_v25  ;;  %v8879_v14 = vld [vmem:[#allocation58_spill] sm:$0xff]  ;;  %v8882_v40 = vld [vmem:[#allocation47_spill] sm:$0xff]  ;;  %v3320_v28 = vld [vmem:[%s3956_s25 + $0x190] sm:$0xff] }
 0x1db   : > { %v2228_v38 = vadd.f32 %v2172_v33, %v1843_v21  ;;  %v2831_v30 = vadd.f32 %v6332_v20, %v8879_v14  ;;  %v3125_v3 = vadd.f32 %v3029_v41, %v2997_v50  ;;  %3509 = vst [vmem:[%s4225_s28 + $0x170] sm:$0xff] %v3445_v44  ;;  %v8883_v52 = vld [vmem:[#allocation179_spill] sm:$0xff]  ;;  %v545_v9 = vrot.slane %v8736_v53, 5  ;;  %v8884_v21 = vld [vmem:[#allocation68_spill] sm:$0xff]  ;;  %v8886_v47 = vld [vmem:[#allocation177_spill] sm:$0xff] }
 0x1dc   : > { %v1267_v51 = vadd.f32 %v1187_v63, %v8880_v61  ;;  %v1780_v43 = vadd.f32 %v1716_v42, %v8881_v4  ;;  %v2173_v36 = vadd.f32 %v2109_v60, %v8883_v52  ;;  %v8885_v33 = vrot.slane %v8884_v21, 6  ;;  %v8887_v41 = vld [vmem:[#allocation71_spill] sm:$0xff]  ;;  %v8888_v50 = vld [vmem:[#allocation74_spill] sm:$0xff]  ;;  %v8889_v61 = vld [vmem:[#allocation72_spill] sm:$0xff] }
 0x1dd   : > { %v2613_v39 = vadd.f32 %v2501_v27, %v2228_v38  ;;  %v3189_v25 = vadd.f32 1e-06, %v3125_v3  ;;  %v1717_v63 = vadd.f32 %v8888_v50, %v8887_v41  ;;  %v2110_v42 = vadd.f32 %v6354_v22, %v8889_v61  ;;  %v8890_v44 = vld [vmem:[#allocation40_spill] sm:$0xff]  ;;  %v8903_v22 = vld [vmem:[#allocation67_spill] sm:$0xff] }
 0x1de   : > { %v1324_v18 = vadd.f32 %v8886_v47, %v8885_v33  ;;  %v1459_v20 = vadd.f32 %v1387_v0, %v1267_v51  ;;  %v2502_v27 = vadd.f32 %v2438_v54, %v8890_v44  ;;  %v8891_v38 = vld [vmem:[#allocation44_spill] sm:$0xff]  ;;  %v8893_v15 = vrot.slane %v8736_v53, 6  ;;  %v8898_v44 = vld [vmem:[#allocation77_spill] sm:$0xff] }
 0x1df   : > { %v2998_v4 = vadd.f32 %v2894_v29, %v2613_v39  ;;  %v8892_v52 = vrot.slane %v8891_v38, 4  ;;  %3808 = vrsqrt.f32 %v3189_v25  ;;  %v8895_v3 = vld [vmem:[#allocation60_spill] sm:$0xff]  ;;  %v8896_v0 = vrot.slane %v8882_v40, 4 }
 0x1e0   : > { %v6687_v14 = vadd.f32 %v8893_v15, %v545_v9  ;;  %v1844_v33 = vadd.f32 %v1780_v43, %v1459_v20  ;;  %v6693_v50 = vadd.f32 %v3926_v10, %v3320_v28  ;;  %v8897_v54 = vld [vmem:[#allocation180_spill] sm:$0xff]  ;;  %v2439_v53 = vadd.f32 %v6370_v26, %v8898_v44  ;;  %v3807_v15 = vpop.eup %3806  ;;  %v8899_v43 = vld [vmem:[#allocation49_spill] sm:$0xff]  ;;  %v8900_v9 = vld [vmem:[#allocation183_spill] sm:$0xff] }
 0x1e1   : > { %v2895_v60 = vadd.f32 %v2831_v30, %v8892_v52  ;;  %v3031_v51 = vadd.f32 %v8896_v0, %v8895_v3  ;;  %v3126_v29 = vadd.f32 %v3030_v2, %v2998_v4  ;;  %v1388_v30 = vadd.f32 %v1324_v18, %v8884_v21  ;;  %v8901_v4 = vld [vmem:[#allocation178_spill] sm:$0xff] }
 0x1e2   : > { %8894 = vst [vmem:[#allocation194_spill] sm:$0xff] %v6687_v14  ;;  %v1188_v39 = vadd.f32 %v8897_v54, %v6687_v14  ;;  %v2229_v20 = vadd.f32 %v2173_v36, %v1844_v33  ;;  %v1781_v25 = vadd.f32 %v1717_v63, %v8899_v43  ;;  %v2174_v38 = vadd.f32 %v2110_v42, %v8900_v9  ;;  %v8902_v54 = vld [vmem:[#allocation82_spill] sm:$0xff]  ;;  %v8909_v43 = vld [vmem:[#allocation57_spill] sm:$0xff] }
 0x1e3   : > { %v546_v28 = vrot.slane %v8601_v1, 5  ;;  %v3446_v52 = vmul.f32 %v3807_v15, %v6587_v62  ;;  %v3190_v2 = vadd.f32 1e-06, %v3126_v29  ;;  %v2832_v18 = vadd.f32 %v6382_v19, %v8902_v54  ;;  %v3321_v26 = vld [vmem:[%s3956_s25 + $0x198] sm:$0xff]  ;;  %v8907_v29 = vld [vmem:[#allocation96_spill] sm:$0xff]  ;;  %v8908_v15 = vld [vmem:[#allocation175_spill] sm:$0xff] }
 0x1e4   : > { %v1268_v0 = vadd.f32 %v1188_v39, %v8901_v4  ;;  %v2614_v21 = vadd.f32 %v2502_v27, %v2229_v20  ;;  %v8904_v36 = vrot.slane %v8601_v1, 6  ;;  %v8906_v63 = vrot.slane %v8607_v48, 6  ;;  %v8910_v1 = vld [vmem:[#allocation186_spill] sm:$0xff] }
 0x1e5   : > { %3510 = vst [vmem:[%s4225_s28 + $0x178] sm:$0xff] %v3446_v52  ;;  %3810 = vrsqrt.f32 %v3190_v2  ;;  %v1718_v39 = vadd.f32 %v8907_v29, %v8759_v6  ;;  %v2111_v27 = vadd.f32 %v8908_v15, %v8462_v24  ;;  %v2503_v9 = vadd.f32 %v2439_v53, %v8909_v43  ;;  %v8911_v14 = vld [vmem:[#allocation66_spill] sm:$0xff]  ;;  %v8913_v2 = vld [vmem:[#allocation83_spill] sm:$0xff]  ;;  %v8916_v43 = vld [vmem:[#allocation73_spill] sm:$0xff] }
 0x1e6   : > { %v6711_v33 = vadd.f32 %v8904_v36, %v546_v28  ;;  %v1325_v42 = vadd.f32 %v6391_v55, %v8906_v63  ;;  %v1460_v62 = vadd.f32 %v1388_v30, %v1268_v0  ;;  %v2999_v20 = vadd.f32 %v2895_v60, %v2614_v21  ;;  %v8915_v21 = vld [vmem:[#allocation181_spill] sm:$0xff]  ;;  %v8921_v24 = vld [vmem:[#allocation104_spill] sm:$0xff] }
 0x1e7   : > { %v8912_v63 = vrot.slane %v8911_v14, 4  ;;  %v8914_v30 = vrot.slane %v8903_v22, 4  ;;  %v6731_v29 = vadd.f32 %v3926_v10, %v3321_v26  ;;  %v1782_v15 = vadd.f32 %v1718_v39, %v8916_v43  ;;  %v8924_v43 = vld [vmem:[#allocation118_spill] sm:$0xff] }
 0x1e8   : > { %8905 = vst [vmem:[#allocation101_spill] sm:$0xff] %v6711_v33  ;;  %v1189_v28 = vadd.f32 %v8910_v1, %v6711_v33  ;;  %v1389_v4 = vadd.f32 %v1325_v42, %v8607_v48  ;;  %v1845_v36 = vadd.f32 %v1781_v25, %v1460_v62  ;;  %v3127_v60 = vadd.f32 %v3031_v51, %v2999_v20  ;;  %v8917_v1 = vld [vmem:[#allocation99_spill] sm:$0xff]  ;;  %v8918_v33 = vld [vmem:[#allocation182_spill] sm:$0xff]  ;;  %v8919_v42 = vld [vmem:[#allocation188_spill] sm:$0xff] }
 0x1e9   : > { %v2896_v52 = vadd.f32 %v2832_v18, %v8912_v63  ;;  %v3032_v0 = vadd.f32 %v8914_v30, %v8913_v2  ;;  %v2440_v48 = vadd.f32 %v8918_v33, %v8917_v1  ;;  %v2175_v14 = vadd.f32 %v2111_v27, %v8919_v42  ;;  %v8920_v18 = vld [vmem:[#allocation89_spill] sm:$0xff]  ;;  %v3809_v30 = vpop.eup %3808 }
 0x1ea   : > { %v1269_v53 = vadd.f32 %v1189_v28, %v8915_v21  ;;  %v2230_v25 = vadd.f32 %v2174_v38, %v1845_v36  ;;  %v547_v63 = vrot.slane %v8473_v13, 5  ;;  %v3191_v26 = vadd.f32 1e-06, %v3127_v60  ;;  %v3322_v36 = vld [vmem:[%s3956_s25 + $0x1a0] sm:$0xff]  ;;  %v8925_v60 = vld [vmem:[#allocation92_spill] sm:$0xff] }
 0x1eb   : > { %v2833_v51 = vadd.f32 %v6425_v5, %v8921_v24  ;;  %v8922_v20 = vrot.slane %v8625_v45, 6  ;;  %v3447_v28 = vmul.f32 %v3809_v30, %v6627_v12  ;;  %v8923_v27 = vrot.slane %v8473_v13, 6  ;;  %v8926_v12 = vld [vmem:[#allocation105_spill] sm:$0xff] }
 0x1ec   : > { %v1461_v22 = vadd.f32 %v1389_v4, %v1269_v53  ;;  %v2615_v38 = vadd.f32 %v2503_v9, %v2230_v25  ;;  %v1719_v42 = vadd.f32 %v8924_v43, %v8775_v57  ;;  %3812 = vrsqrt.f32 %v3191_v26  ;;  %v8929_v26 = vld [vmem:[#allocation121_spill] sm:$0xff] }
 0x1ed   : > { %v1326_v39 = vadd.f32 %v6438_v56, %v8922_v20  ;;  %v6749_v21 = vadd.f32 %v8923_v27, %v547_v63  ;;  %v2504_v53 = vadd.f32 %v2440_v48, %v8925_v60  ;;  %v2112_v62 = vadd.f32 %v6450_v58, %v8481_v31  ;;  %3511 = vst [vmem:[%s4225_s28 + $0x180] sm:$0xff] %v3447_v28  ;;  %v8930_v27 = vld [vmem:[#allocation184_spill] sm:$0xff] }
 0x1ee   : > { %v1846_v4 = vadd.f32 %v1782_v15, %v1461_v22  ;;  %v3000_v20 = vadd.f32 %v2896_v52, %v2615_v38  ;;  %v8927_v9 = vrot.slane %v8920_v18, 4  ;;  %v8928_v22 = vrot.slane %v8769_v16, 4 }
 0x1ef   : > { %v1190_v13 = vadd.f32 %v6072_v11, %v6749_v21  ;;  %v1390_v63 = vadd.f32 %v1326_v39, %v8625_v45  ;;  %v6766_v48 = vadd.f32 %v3926_v10, %v3322_v36  ;;  %v2441_v52 = vadd.f32 %v6458_v32, %v8929_v26  ;;  %v3811_v28 = vpop.eup %3810  ;;  %v8932_v11 = vld [vmem:[#allocation79_spill] sm:$0xff]  ;;  %v3323_v45 = vld [vmem:[%s3956_s25 + $0x1a8] sm:$0xff]  ;;  %v8934_v36 = vld [vmem:[#allocation126_spill] sm:$0xff] }
 0x1f0   : > { %v3033_v25 = vadd.f32 %v8927_v9, %v8926_v12  ;;  %v2231_v30 = vadd.f32 %v2175_v14, %v1846_v4  ;;  %v2897_v15 = vadd.f32 %v2833_v51, %v8928_v22  ;;  %v3128_v38 = vadd.f32 %v3032_v0, %v3000_v20  ;;  %v8931_v9 = vld [vmem:[#allocation81_spill] sm:$0xff]  ;;  %v8933_v51 = vld [vmem:[#allocation111_spill] sm:$0xff]  ;;  %v8936_v20 = vld [vmem:[#allocation56_spill] sm:$0xff] }
 0x1f1   : > { %v1270_v60 = vadd.f32 %v1190_v13, %v8930_v27  ;;  %v1783_v58 = vadd.f32 %v1719_v42, %v8931_v9  ;;  %v2176_v18 = vadd.f32 %v2112_v62, %v8932_v11  ;;  %v3448_v14 = vmul.f32 %v3811_v28, %v6653_v59  ;;  %v8937_v62 = vld [vmem:[#allocation86_spill] sm:$0xff]  ;;  %v8943_v11 = vld [vmem:[#allocation187_spill] sm:$0xff] }
 0x1f2   : > { %v2616_v16 = vadd.f32 %v2504_v53, %v2231_v30  ;;  %v2834_v4 = vadd.f32 %v6472_v37, %v8934_v36  ;;  %v3192_v22 = vadd.f32 1e-06, %v3128_v38  ;;  %v548_v32 = vrot.slane %v8492_v8, 5  ;;  %v8938_v53 = vld [vmem:[#allocation137_spill] sm:$0xff]  ;;  %v8939_v30 = vld [vmem:[#allocation140_spill] sm:$0xff]  ;;  %v8949_v37 = vld [vmem:[#allocation62_spill] sm:$0xff] }
 0x1f3   : > { %v1462_v31 = vadd.f32 %v1390_v63, %v1270_v60  ;;  %v8935_v0 = vrot.slane %v8787_v7, 6  ;;  %3512 = vst [vmem:[%s4225_s28 + $0x188] sm:$0xff] %v3448_v14  ;;  %v2505_v27 = vadd.f32 %v2441_v52, %v8937_v62  ;;  %v6785_v59 = vadd.f32 %v3926_v10, %v3323_v45  ;;  %v8942_v60 = vld [vmem:[#allocation138_spill] sm:$0xff]  ;;  %v8946_v52 = vld [vmem:[#allocation127_spill] sm:$0xff] }
 0x1f4   : > { %v3001_v42 = vadd.f32 %v2897_v15, %v2616_v16  ;;  %v1720_v28 = vadd.f32 %v8939_v30, %v8938_v53  ;;  %3814 = vrsqrt.f32 %v3192_v22  ;;  %v8940_v63 = vrot.slane %v8492_v8, 6  ;;  %v8944_v14 = vld [vmem:[#allocation110_spill] sm:$0xff]  ;;  %v8957_v53 = vld [vmem:[#allocation189_spill] sm:$0xff] }
 0x1f5   : > { %v1327_v13 = vadd.f32 %v8936_v20, %v8935_v0  ;;  %v1847_v9 = vadd.f32 %v1783_v58, %v1462_v31  ;;  %v2113_v39 = vadd.f32 %v8943_v11, %v8942_v60  ;;  %v8945_v15 = vrot.slane %v8944_v14, 4  ;;  %v8948_v20 = vld [vmem:[#allocation143_spill] sm:$0xff]  ;;  %v8950_v31 = vld [vmem:[#allocation192_spill] sm:$0xff] }
 0x1f6   : > { %v6791_v38 = vadd.f32 %v8940_v63, %v548_v32  ;;  %v3129_v0 = vadd.f32 %v3033_v25, %v3001_v42  ;;  %v8947_v45 = vrot.slane %v8933_v51, 4  ;;  %v2442_v30 = vadd.f32 %v8949_v37, %v8948_v20  ;;  %v8951_v32 = vld [vmem:[#allocation107_spill] sm:$0xff]  ;;  %v3813_v25 = vpop.eup %3812  ;;  %v8952_v14 = vld [vmem:[#allocation148_spill] sm:$0xff] }
 0x1f7   : > { %v2898_v16 = vadd.f32 %v2834_v4, %v8945_v15  ;;  %v2232_v22 = vadd.f32 %v2176_v18, %v1847_v9  ;;  %v1391_v58 = vadd.f32 %v1327_v13, %v8787_v7  ;;  %v1784_v63 = vadd.f32 %v1720_v28, %v8951_v32  ;;  %v8953_v4 = vld [vmem:[#allocation93_spill] sm:$0xff]  ;;  %v8954_v11 = vld [vmem:[#allocation171_spill] sm:$0xff] }
 0x1f8   : > { %8941 = vst [vmem:[#allocation196_spill] sm:$0xff] %v6791_v38  ;;  %v3034_v62 = vadd.f32 %v8947_v45, %v8946_v52  ;;  %v1191_v8 = vadd.f32 %v8950_v31, %v6791_v38  ;;  %v3193_v42 = vadd.f32 1e-06, %v3129_v0  ;;  %v2835_v15 = vadd.f32 %v8953_v4, %v8952_v14  ;;  %v8955_v45 = vld [vmem:[#allocation155_spill] sm:$0xff]  ;;  %v8958_v31 = vld [vmem:[#allocation42_spill] sm:$0xff]  ;;  %v8959_v38 = vld [vmem:[#allocation112_spill] sm:$0xff] }
 0x1f9   : > { %v549_v51 = vrot.slane %v8954_v11, 5  ;;  %v8956_v60 = vrot.slane %v8955_v45, 6  ;;  %v3449_v18 = vmul.f32 %v3813_v25, %v6693_v50  ;;  %v2617_v9 = vadd.f32 %v2505_v27, %v2232_v22  ;;  %v8960_v13 = vld [vmem:[#allocation193_spill] sm:$0xff]  ;;  %v8966_v27 = vld [vmem:[#allocation158_spill] sm:$0xff]  ;;  %v8968_v25 = vld [vmem:[#allocation132_spill] sm:$0xff] }
 0x1fa   : > { %v1271_v20 = vadd.f32 %v1191_v8, %v8958_v31  ;;  %v2177_v7 = vadd.f32 %v2113_v39, %v8959_v38  ;;  %3816 = vrsqrt.f32 %v3193_v42  ;;  %v2506_v28 = vadd.f32 %v2442_v30, %v8960_v13  ;;  %v8961_v0 = vld [vmem:[#allocation133_spill] sm:$0xff]  ;;  %v8967_v22 = vld [vmem:[#allocation190_spill] sm:$0xff]  ;;  %v8970_v30 = vld [vmem:[#allocation108_spill] sm:$0xff] }
 0x1fb   : > { %v1328_v37 = vadd.f32 %v8957_v53, %v8956_v60  ;;  %v7881_v32 = vrot.slane %v8961_v0, 4  ;;  %v8962_v4 = vrot.slane %v8954_v11, 6  ;;  %3513 = vst [vmem:[%s4225_s28 + $0x190] sm:$0xff] %v3449_v18  ;;  %v3002_v52 = vadd.f32 %v2898_v16, %v2617_v9  ;;  %v8964_v60 = vld [vmem:[#allocation157_spill] sm:$0xff]  ;;  %v8974_v9 = vld [vmem:[#allocation156_spill] sm:$0xff] }
 0x1fc   : > { %v1463_v36 = vadd.f32 %v1391_v58, %v1271_v20  ;;  %v8965_v53 = vld [vmem:[#allocation161_spill] sm:$0xff]  ;;  %v2114_v8 = vadd.f32 %v8967_v22, %v8966_v27  ;;  %v8969_v39 = vrot.slane %v8968_v25, 4  ;;  %v8973_v20 = vld [vmem:[#allocation151_spill] sm:$0xff]  ;;  %v8975_v22 = vld [vmem:[#allocation64_spill] sm:$0xff] }
 0x1fd   : > { %v6819_v14 = vadd.f32 %v8962_v4, %v549_v51  ;;  %v1721_v50 = vadd.f32 %v8965_v53, %v8964_v60  ;;  %v1392_v31 = vadd.f32 %v1328_v37, %v8955_v45  ;;  %v8971_v11 = vld [vmem:[#allocation165_spill] sm:$0xff]  ;;  %v8972_v51 = vld [vmem:[#allocation191_spill] sm:$0xff]  ;;  %v3130_v18 = vadd.f32 %v3034_v62, %v3002_v52 }
 0x1fe   : > { %v2899_v38 = vadd.f32 %v2835_v15, %v8969_v39  ;;  %v2443_v4 = vadd.f32 %v8972_v51, %v8971_v11  ;;  %v1848_v16 = vadd.f32 %v1784_v63, %v1463_v36  ;;  %v3035_v58 = vadd.f32 %v7881_v32, %v8973_v20  ;;  %v8976_v25 = vld [vmem:[#allocation195_spill] sm:$0xff]  ;;  %v8977_v39 = vld [vmem:[#allocation129_spill] sm:$0xff]  ;;  %v3815_v45 = vpop.eup %3814  ;;  %v8979_v36 = vld [vmem:[#allocation114_spill] sm:$0xff] }
 0x1ff   : > { %8963 = vst [vmem:[#allocation134_spill] sm:$0xff] %v6819_v14  ;;  %v1192_v42 = vadd.f32 %v8970_v30, %v6819_v14  ;;  %v1785_v15 = vadd.f32 %v1721_v50, %v8976_v25  ;;  %v2178_v30 = vadd.f32 %v2114_v8, %v8977_v39  ;;  %v8978_v14 = vld [vmem:[#allocation167_spill] sm:$0xff]  ;;  %v3194_v51 = vadd.f32 1e-06, %v3130_v18  ;;  %v8980_v63 = vld [vmem:[#allocation22_spill] sm:$0xff]  ;;  %v8983_v50 = vld [vmem:[#allocation13_spill] sm:$0xff] }
 0x200   : > { %v2836_v37 = vadd.f32 %v6572_v46, %v8978_v14  ;;  %v2233_v52 = vadd.f32 %v2177_v7, %v1848_v16  ;;  %v2507_v62 = vadd.f32 %v2443_v4, %v8979_v36  ;;  %v8981_v11 = vld [vmem:[#allocation130_spill] sm:$0xff]  ;;  %v3450_v13 = vmul.f32 %v3815_v45, %v6731_v29  ;;  %v8984_v25 = vld [vmem:[#allocation9_spill] sm:$0xff]  ;;  %v8987_v7 = vld [vmem:[#allocation3_spill] sm:$0xff] }
 0x201   : > { %v1272_v27 = vadd.f32 %v1192_v42, %v8975_v22  ;;  %v1193_v32 = vadd.f32 %v8981_v11, %v8980_v63  ;;  %v8982_v22 = vrot.slane %v8827_v49, 6  ;;  %v8985_v8 = vld [vmem:[#allocation14_spill] sm:$0xff]  ;;  %3818 = vrsqrt.f32 %v3194_v51  ;;  %v8986_v14 = vld [vmem:[#allocation85_spill] sm:$0xff]  ;;  %v8988_v16 = vld [vmem:[#allocation11_spill] sm:$0xff] }
 0x202   : > { %v1722_v39 = vadd.f32 %v8985_v8, %v8984_v25  ;;  %v2618_v46 = vadd.f32 %v2506_v28, %v2233_v52  ;;  %v2051_v4 = vadd.f32 %v8988_v16, %v8987_v7  ;;  %3514 = vst [vmem:[%s4225_s28 + $0x198] sm:$0xff] %v3450_v13  ;;  %v8989_v29 = vld [vmem:[#allocation199_spill] sm:$0xff]  ;;  %v8991_v45 = vld [vmem:[#allocation16_spill] sm:$0xff]  ;;  %v8995_v28 = vrot.slane %v8974_v9, 4  ;;  %v8999_v7 = vld [vmem:[#allocation6_spill] sm:$0xff] }
 0x203   : > { %v1464_v0 = vadd.f32 %v1392_v31, %v1272_v27  ;;  %v1329_v42 = vadd.f32 %v8983_v50, %v8982_v22  ;;  %v1273_v18 = vadd.f32 %v1193_v32, %v8986_v14  ;;  %v8990_v31 = vld [vmem:[#allocation12_spill] sm:$0xff]  ;;  %v8992_v50 = vld [vmem:[#allocation154_spill] sm:$0xff]  ;;  %v8996_v32 = vld [vmem:[#allocation17_spill] sm:$0xff] }
 0x204   : > { %v1786_v27 = vadd.f32 %v1722_v39, %v8989_v29  ;;  %v2444_v63 = vadd.f32 %v8991_v45, %v8990_v31  ;;  %v3003_v22 = vadd.f32 %v2899_v38, %v2618_v46  ;;  %v8993_v53 = vrot.slane %v8992_v50, 4  ;;  %v8994_v51 = vld [vmem:[#allocation172_spill] sm:$0xff]  ;;  %v8997_v52 = vld [vmem:[#allocation147_spill] sm:$0xff] }
 0x205   : > { %v1849_v36 = vadd.f32 %v1785_v15, %v1464_v0  ;;  %v1393_v11 = vadd.f32 %v1329_v42, %v8827_v49  ;;  %v3036_v14 = vadd.f32 %v8995_v28, %v8994_v51  ;;  %v2837_v13 = vadd.f32 %v8854_v17, %v8996_v32  ;;  %v3817_v0 = vpop.eup %3816  ;;  %v8998_v8 = vld [vmem:[#allocation136_spill] sm:$0xff]  ;;  %v9002_v29 = vld [vmem:[#allocation159_spill] sm:$0xff]  ;;  %v9005_v32 = vld [vmem:[#allocation30_spill] sm:$0xff] }
 0x206   : > { %v2900_v25 = vadd.f32 %v2836_v37, %v8993_v53  ;;  %v2115_v42 = vadd.f32 %v2051_v4, %v8997_v52  ;;  %v2508_v39 = vadd.f32 %v2444_v63, %v8998_v8  ;;  %v3451_v46 = vmul.f32 %v3817_v0, %v6766_v48  ;;  %v9001_v16 = vld [vmem:[#allocation36_spill] sm:$0xff]  ;;  %v9008_v63 = vld [vmem:[#allocation115_spill] sm:$0xff]  ;;  %v9012_v52 = vld [vmem:[#allocation38_spill] sm:$0xff] }
 0x207   : > { %v2234_v15 = vadd.f32 %v2178_v30, %v1849_v36  ;;  %v1465_v49 = vadd.f32 %v1393_v11, %v1273_v18  ;;  %v3131_v38 = vadd.f32 %v3035_v58, %v3003_v22  ;;  %v9000_v53 = vrot.slane %v8999_v7, 4  ;;  %v9003_v28 = vld [vmem:[#allocation28_spill] sm:$0xff]  ;;  %v9006_v18 = vld [vmem:[#allocation29_spill] sm:$0xff]  ;;  %v9009_v58 = vld [vmem:[#allocation23_spill] sm:$0xff] }
 0x208   : > { %v1194_v31 = vadd.f32 %v9002_v29, %v9001_v16  ;;  %v9004_v17 = vrot.slane %v9003_v28, 6  ;;  %v9007_v36 = vld [vmem:[#allocation33_spill] sm:$0xff]  ;;  %3515 = vst [vmem:[%s4225_s28 + $0x1a0] sm:$0xff] %v3451_v46  ;;  %v9010_v22 = vld [vmem:[#allocation34_spill] sm:$0xff]  ;;  %v9015_v16 = vld [vmem:[#allocation7_spill] sm:$0xff] }
 0x209   : > { %v2901_v37 = vadd.f32 %v2837_v13, %v9000_v53  ;;  %v2619_v45 = vadd.f32 %v2507_v62, %v2234_v15  ;;  %v1850_v50 = vadd.f32 %v1786_v27, %v1465_v49  ;;  %v1723_v4 = vadd.f32 %v9007_v36, %v9006_v18  ;;  %v9011_v13 = vld [vmem:[#allocation31_spill] sm:$0xff]  ;;  %v9014_v53 = vld [vmem:[#allocation20_spill] sm:$0xff]  ;;  %v9018_v36 = vld [vmem:[#allocation169_spill] sm:$0xff] }
 0x20a   : > { %v1330_v30 = vadd.f32 %v9005_v32, %v9004_v17  ;;  %v3195_v11 = vadd.f32 1e-06, %v3131_v38  ;;  %v1274_v48 = vadd.f32 %v1194_v31, %v9008_v63  ;;  %v2052_v0 = vadd.f32 %v9010_v22, %v9009_v58  ;;  %v9013_v15 = vld [vmem:[#allocation203_spill] sm:$0xff]  ;;  %v9022_v63 = vld [vmem:[#allocation46_spill] sm:$0xff] }
 0x20b   : > { %v2445_v8 = vadd.f32 %v9012_v52, %v9011_v13  ;;  %v3004_v7 = vadd.f32 %v2900_v25, %v2619_v45  ;;  %v2235_v62 = vadd.f32 %v2115_v42, %v1850_v50  ;;  %v1787_v49 = vadd.f32 %v1723_v4, %v9013_v15  ;;  %v9017_v38 = vld [vmem:[#allocation35_spill] sm:$0xff]  ;;  %v3819_v42 = vpop.eup %3818  ;;  %v9019_v45 = vld [vmem:[#allocation173_spill] sm:$0xff]  ;;  %v9024_v22 = vld [vmem:[#allocation50_spill] sm:$0xff] }
 0x20c   : > { %v1394_v27 = vadd.f32 %v1330_v30, %v9003_v28  ;;  %3820 = vrsqrt.f32 %v3195_v11  ;;  %v9016_v29 = vrot.slane %v9015_v16, 4  ;;  %v2838_v31 = vadd.f32 %v8875_v23, %v9017_v38  ;;  %v9021_v4 = vld [vmem:[#allocation55_spill] sm:$0xff]  ;;  %v3324_v52 = vld [vmem:[%s3956_s25 + $0x1b0] sm:$0xff]  ;;  %v9031_v38 = vld [vmem:[#allocation58_spill] sm:$0xff] }
 0x20d   : > { %v3132_v17 = vadd.f32 %v3036_v14, %v3004_v7  ;;  %v2620_v32 = vadd.f32 %v2508_v39, %v2235_v62  ;;  %v2116_v25 = vadd.f32 %v2052_v0, %v9018_v36  ;;  %v2509_v50 = vadd.f32 %v2445_v8, %v9019_v45  ;;  %v9025_v0 = vld [vmem:[#allocation90_spill] sm:$0xff]  ;;  %v9026_v62 = vld [vmem:[#allocation48_spill] sm:$0xff]  ;;  %v9028_v15 = vld [vmem:[#allocation43_spill] sm:$0xff] }
 0x20e   : > { %v3037_v46 = vadd.f32 %v9016_v29, %v9014_v53  ;;  %v1466_v18 = vadd.f32 %v1394_v27, %v1274_v48  ;;  %v9020_v28 = vrot.slane %v8866_v35, 4  ;;  %v1195_v11 = vadd.f32 %v8863_v34, %v9021_v4  ;;  %v9027_v35 = vld [vmem:[#allocation51_spill] sm:$0xff]  ;;  %v9029_v53 = vld [vmem:[#allocation53_spill] sm:$0xff] }
 0x20f   : > { %v9023_v58 = vrot.slane %v9022_v63, 6  ;;  %v3452_v23 = vmul.f32 %v3819_v42, %v6785_v59  ;;  %v3196_v14 = vadd.f32 1e-06, %v3132_v17  ;;  %v3005_v39 = vadd.f32 %v2901_v37, %v2620_v32  ;;  %v9030_v59 = vld [vmem:[#allocation54_spill] sm:$0xff]  ;;  %v9033_v32 = vld [vmem:[#allocation176_spill] sm:$0xff]  ;;  %v9034_v36 = vld [vmem:[#allocation59_spill] sm:$0xff] }
 0x210   : > { %v2902_v30 = vadd.f32 %v2838_v31, %v9020_v28  ;;  %v1851_v48 = vadd.f32 %v1787_v49, %v1466_v18  ;;  %v1275_v7 = vadd.f32 %v1195_v11, %v9025_v0  ;;  %v1724_v27 = vadd.f32 %v9027_v35, %v9026_v62  ;;  %v9032_v31 = vld [vmem:[#allocation25_spill] sm:$0xff]  ;;  %v9035_v11 = vld [vmem:[#allocation39_spill] sm:$0xff]  ;;  %v3325_v0 = vld [vmem:[%s3956_s25 + $0x1b8] sm:$0xff] }
 0x211   : > { %v1331_v13 = vadd.f32 %v9024_v22, %v9023_v58  ;;  %v2053_v34 = vadd.f32 %v9029_v53, %v9028_v15  ;;  %3516 = vst [vmem:[%s4225_s28 + $0x1a8] sm:$0xff] %v3452_v23  ;;  %3822 = vrsqrt.f32 %v3196_v14  ;;  %v3133_v16 = vadd.f32 %v3037_v46, %v3005_v39  ;;  %v9038_v22 = vld [vmem:[#allocation204_spill] sm:$0xff]  ;;  %v9040_v39 = vld [vmem:[#allocation78_spill] sm:$0xff] }
 0x212   : > { %v2236_v29 = vadd.f32 %v2116_v25, %v1851_v48  ;;  %v2446_v37 = vadd.f32 %v9031_v38, %v9030_v59  ;;  %v1788_v17 = vadd.f32 %v1724_v27, %v9032_v31  ;;  %v2839_v42 = vadd.f32 %v8895_v3, %v9034_v36  ;;  %v3326_v3 = vld [vmem:[%s3956_s25 + $0x1c0] sm:$0xff]  ;;  %v9043_v62 = vld [vmem:[#allocation76_spill] sm:$0xff]  ;;  %v9044_v53 = vld [vmem:[#allocation194_spill] sm:$0xff] }
 0x213   : > { %v1395_v8 = vadd.f32 %v1331_v13, %v9022_v63  ;;  %v2117_v18 = vadd.f32 %v2053_v34, %v9033_v32  ;;  %v3389_v45 = vadd.f32 %v3926_v10, %v3324_v52  ;;  %v3197_v28 = vadd.f32 1e-06, %v3133_v16  ;;  %v9036_v63 = vld [vmem:[#allocation27_spill] sm:$0xff]  ;;  %v9045_v34 = vld [vmem:[#allocation65_spill] sm:$0xff] }
 0x214   : > { %v2621_v4 = vadd.f32 %v2509_v50, %v2236_v29  ;;  %v9037_v46 = vrot.slane %v9036_v63, 4  ;;  %v2510_v13 = vadd.f32 %v2446_v37, %v9038_v22  ;;  %v9039_v23 = vrot.slane %v8882_v40, 4  ;;  %v9042_v50 = vld [vmem:[#allocation74_spill] sm:$0xff]  ;;  %v9047_v37 = vld [vmem:[#allocation15_spill] sm:$0xff]  ;;  %v9055_v22 = vld [vmem:[#allocation96_spill] sm:$0xff] }
 0x215   : > { %v1467_v49 = vadd.f32 %v1395_v8, %v1275_v7  ;;  %v1196_v48 = vadd.f32 %v8886_v47, %v9040_v39  ;;  %3824 = vrsqrt.f32 %v3197_v28  ;;  %v9041_v52 = vrot.slane %v8887_v41, 6  ;;  %v9046_v47 = vld [vmem:[#allocation75_spill] sm:$0xff] }
 0x216   : > { %v3038_v25 = vadd.f32 %v9037_v46, %v9035_v11  ;;  %v2903_v14 = vadd.f32 %v2839_v42, %v9039_v23  ;;  %v3006_v7 = vadd.f32 %v2902_v30, %v2621_v4  ;;  %v1725_v35 = vadd.f32 %v9043_v62, %v8889_v61  ;;  %v3821_v27 = vpop.eup %3820  ;;  %v9048_v32 = vld [vmem:[#allocation63_spill] sm:$0xff]  ;;  %v9052_v4 = vld [vmem:[#allocation80_spill] sm:$0xff] }
 0x217   : > { %v1852_v58 = vadd.f32 %v1788_v17, %v1467_v49  ;;  %v1332_v8 = vadd.f32 %v9042_v50, %v9041_v52  ;;  %v1276_v40 = vadd.f32 %v1196_v48, %v9044_v53  ;;  %v2054_v16 = vadd.f32 %v8898_v44, %v9045_v34  ;;  %v9053_v46 = vld [vmem:[#allocation100_spill] sm:$0xff]  ;;  %v9056_v48 = vld [vmem:[#allocation94_spill] sm:$0xff]  ;;  %v9059_v50 = vld [vmem:[#allocation101_spill] sm:$0xff] }
 0x218   : > { %v2447_v29 = vadd.f32 %v8902_v54, %v9046_v47  ;;  %v3453_v59 = vmul.f32 %v3821_v27, %v3389_v45  ;;  %v3134_v30 = vadd.f32 %v3038_v25, %v3006_v7  ;;  %v1789_v49 = vadd.f32 %v1725_v35, %v9047_v37  ;;  %v9051_v54 = vld [vmem:[#allocation61_spill] sm:$0xff]  ;;  %v9058_v7 = vld [vmem:[#allocation87_spill] sm:$0xff]  ;;  %v3327_v52 = vld [vmem:[%s3956_s25 + $0x1c8] sm:$0xff] }
 0x219   : > { %v2237_v15 = vadd.f32 %v2117_v18, %v1852_v58  ;;  %v1396_v38 = vadd.f32 %v1332_v8, %v8887_v41  ;;  %v3390_v31 = vadd.f32 %v3926_v10, %v3325_v0  ;;  %v3391_v61 = vadd.f32 %v3926_v10, %v3326_v3  ;;  %v9049_v18 = vld [vmem:[#allocation52_spill] sm:$0xff]  ;;  %v9057_v0 = vld [vmem:[#allocation98_spill] sm:$0xff]  ;;  %v9060_v35 = vld [vmem:[#allocation67_spill] sm:$0xff] }
 0x21a   : > { %v9050_v36 = vrot.slane %v9049_v18, 4  ;;  %3517 = vst [vmem:[%s4225_s28 + $0x1b0] sm:$0xff] %v3453_v59  ;;  %v3198_v44 = vadd.f32 1e-06, %v3134_v30  ;;  %v2118_v45 = vadd.f32 %v2054_v16, %v9051_v54  ;;  %v2840_v41 = vadd.f32 %v8913_v2, %v9052_v4  ;;  %v9062_v53 = vld [vmem:[#allocation175_spill] sm:$0xff]  ;;  %v9063_v34 = vld [vmem:[#allocation97_spill] sm:$0xff] }
 0x21b   : > { %v2622_v17 = vadd.f32 %v2510_v13, %v2237_v15  ;;  %v1468_v28 = vadd.f32 %v1396_v38, %v1276_v40  ;;  %v2511_v63 = vadd.f32 %v2447_v29, %v6382_v19  ;;  %v1197_v25 = vadd.f32 %v6391_v55, %v9053_v46  ;;  %v3823_v23 = vpop.eup %3822  ;;  %v9064_v59 = vld [vmem:[#allocation102_spill] sm:$0xff]  ;;  %v9070_v4 = vld [vmem:[#allocation116_spill] sm:$0xff]  ;;  %v9072_v46 = vld [vmem:[#allocation89_spill] sm:$0xff] }
 0x21c   : > { %v3039_v42 = vadd.f32 %v9050_v36, %v9048_v32  ;;  %v9054_v58 = vrot.slane %v8759_v6, 6  ;;  %3826 = vrsqrt.f32 %v3198_v44  ;;  %v1726_v3 = vadd.f32 %v9057_v0, %v9056_v48  ;;  %v9068_v18 = vld [vmem:[#allocation122_spill] sm:$0xff] }
 0x21d   : > { %v3007_v11 = vadd.f32 %v2903_v14, %v2622_v17  ;;  %v1853_v39 = vadd.f32 %v1789_v49, %v1468_v28  ;;  %v2055_v2 = vadd.f32 %v8917_v1, %v9058_v7  ;;  %v3454_v14 = vmul.f32 %v3823_v23, %v3390_v31  ;;  %v9065_v49 = vld [vmem:[#allocation84_spill] sm:$0xff]  ;;  %v9066_v31 = vld [vmem:[#allocation69_spill] sm:$0xff]  ;;  %v9079_v7 = vld [vmem:[#allocation91_spill] sm:$0xff] }
 0x21e   : > { %v1333_v13 = vadd.f32 %v9055_v22, %v9054_v58  ;;  %v1277_v8 = vadd.f32 %v1197_v25, %v9059_v50  ;;  %v9061_v27 = vrot.slane %v9060_v35, 4  ;;  %v1790_v40 = vadd.f32 %v1726_v3, %v9062_v53  ;;  %v9074_v25 = vld [vmem:[#allocation109_spill] sm:$0xff]  ;;  %v9075_v22 = vld [vmem:[#allocation119_spill] sm:$0xff]  ;;  %v9078_v3 = vld [vmem:[#allocation106_spill] sm:$0xff] }
 0x21f   : > { %v3135_v19 = vadd.f32 %v3039_v42, %v3007_v11  ;;  %v2238_v62 = vadd.f32 %v2118_v45, %v1853_v39  ;;  %v2448_v16 = vadd.f32 %v8921_v24, %v9063_v34  ;;  %3518 = vst [vmem:[%s4225_s28 + $0x1b8] sm:$0xff] %v3454_v14  ;;  %v2119_v29 = vadd.f32 %v2055_v2, %v8918_v33  ;;  %v3328_v42 = vld [vmem:[%s3956_s25 + $0x1d0] sm:$0xff]  ;;  %v9082_v50 = vld [vmem:[#allocation124_spill] sm:$0xff] }
 0x220   : > { %v1397_v55 = vadd.f32 %v1333_v13, %v8759_v6  ;;  %v2904_v15 = vadd.f32 %v2840_v41, %v9061_v27  ;;  %v2841_v30 = vadd.f32 %v8926_v12, %v9064_v59  ;;  %v3825_v6 = vpop.eup %3824  ;;  %v3392_v38 = vadd.f32 %v3926_v10, %v3327_v52  ;;  %v9071_v41 = vld [vmem:[#allocation120_spill] sm:$0xff]  ;;  %v9077_v39 = vld [vmem:[#allocation37_spill] sm:$0xff]  ;;  %v9081_v52 = vld [vmem:[#allocation70_spill] sm:$0xff] }
 0x221   : > { %v3199_v47 = vadd.f32 1e-06, %v3135_v19  ;;  %v2623_v37 = vadd.f32 %v2511_v63, %v2238_v62  ;;  %v9067_v17 = vrot.slane %v9066_v31, 4  ;;  %v1198_v24 = vadd.f32 %v6438_v56, %v9068_v18  ;;  %v9084_v27 = vld [vmem:[#allocation185_spill] sm:$0xff]  ;;  %v9085_v53 = vld [vmem:[#allocation144_spill] sm:$0xff]  ;;  %v9093_v18 = vld [vmem:[#allocation131_spill] sm:$0xff] }
 0x222   : > { %v1469_v1 = vadd.f32 %v1397_v55, %v1277_v8  ;;  %v3455_v36 = vmul.f32 %v3825_v6, %v3391_v61  ;;  %v2512_v33 = vadd.f32 %v2448_v16, %v6425_v5  ;;  %v9069_v54 = vrot.slane %v8775_v57, 6  ;;  %v9076_v5 = vld [vmem:[#allocation126_spill] sm:$0xff]  ;;  %v9089_v59 = vld [vmem:[#allocation140_spill] sm:$0xff] }
 0x223   : > { %v3040_v32 = vadd.f32 %v9067_v17, %v9065_v49  ;;  %3828 = vrsqrt.f32 %v3199_v47  ;;  %v3008_v28 = vadd.f32 %v2904_v15, %v2623_v37  ;;  %v1278_v12 = vadd.f32 %v1198_v24, %v6749_v21  ;;  %v3329_v16 = vld [vmem:[%s3956_s25 + $0x1d8] sm:$0xff]  ;;  %v9092_v17 = vld [vmem:[#allocation196_spill] sm:$0xff]  ;;  %v9094_v24 = vld [vmem:[#allocation143_spill] sm:$0xff] }
 0x224   : > { %v1854_v44 = vadd.f32 %v1790_v40, %v1469_v1  ;;  %v1334_v45 = vadd.f32 %v8924_v43, %v9069_v54  ;;  %v1727_v11 = vadd.f32 %v9071_v41, %v9070_v4  ;;  %3519 = vst [vmem:[%s4225_s28 + $0x1c0] sm:$0xff] %v3455_v36  ;;  %v9073_v56 = vrot.slane %v9072_v46, 4  ;;  %v9087_v1 = vld [vmem:[#allocation137_spill] sm:$0xff]  ;;  %v9090_v6 = vld [vmem:[#allocation138_spill] sm:$0xff]  ;;  %v9098_v41 = vld [vmem:[#allocation111_spill] sm:$0xff] }
 0x225   : > { %v2056_v58 = vadd.f32 %v8929_v26, %v9074_v25  ;;  %v2449_v13 = vadd.f32 %v9076_v5, %v9075_v22  ;;  %v3393_v21 = vadd.f32 %v3926_v10, %v3328_v42  ;;  %v3136_v23 = vadd.f32 %v3040_v32, %v3008_v28  ;;  %v9083_v26 = vld [vmem:[#allocation127_spill] sm:$0xff]  ;;  %v9091_v37 = vld [vmem:[#allocation142_spill] sm:$0xff]  ;;  %v9096_v28 = vld [vmem:[#allocation141_spill] sm:$0xff] }
 0x226   : > { %v2239_v63 = vadd.f32 %v2119_v29, %v1854_v44  ;;  %v2905_v61 = vadd.f32 %v2841_v30, %v9073_v56  ;;  %v1398_v43 = vadd.f32 %v1334_v45, %v8775_v57  ;;  %v1791_v48 = vadd.f32 %v1727_v11, %v9077_v39  ;;  %v3827_v55 = vpop.eup %3826  ;;  %v9086_v57 = vld [vmem:[#allocation56_spill] sm:$0xff]  ;;  %v9095_v44 = vld [vmem:[#allocation187_spill] sm:$0xff]  ;;  %v9100_v46 = vld [vmem:[#allocation146_spill] sm:$0xff] }
 0x227   : > { %v9080_v2 = vrot.slane %v9079_v7, 4  ;;  %v2120_v19 = vadd.f32 %v2056_v58, %v9081_v52  ;;  %v2842_v8 = vadd.f32 %v9083_v26, %v9082_v50  ;;  %v3200_v62 = vadd.f32 1e-06, %v3136_v23  ;;  %v9101_v58 = vld [vmem:[#allocation128_spill] sm:$0xff]  ;;  %v9102_v22 = vld [vmem:[#allocation113_spill] sm:$0xff] }
 0x228   : > { %v2624_v0 = vadd.f32 %v2512_v33, %v2239_v63  ;;  %v1470_v35 = vadd.f32 %v1398_v43, %v1278_v12  ;;  %v2513_v15 = vadd.f32 %v2449_v13, %v9084_v27  ;;  %v1199_v40 = vadd.f32 %v9086_v57, %v9085_v53  ;;  %v9097_v12 = vld [vmem:[#allocation148_spill] sm:$0xff]  ;;  %v9104_v43 = vld [vmem:[#allocation62_spill] sm:$0xff]  ;;  %v9109_v50 = vld [vmem:[#allocation161_spill] sm:$0xff] }
 0x229   : > { %v3041_v14 = vadd.f32 %v9080_v2, %v9078_v3  ;;  %v3456_v34 = vmul.f32 %v3827_v55, %v3392_v38  ;;  %v9088_v29 = vrot.slane %v9087_v1, 6  ;;  %v1728_v49 = vadd.f32 %v9091_v37, %v9090_v6  ;;  %v9105_v3 = vld [vmem:[#allocation93_spill] sm:$0xff]  ;;  %v9106_v2 = vld [vmem:[#allocation168_spill] sm:$0xff]  ;;  %v9111_v55 = vld [vmem:[#allocation163_spill] sm:$0xff] }
 0x22a   : > { %v3009_v47 = vadd.f32 %v2905_v61, %v2624_v0  ;;  %3830 = vrsqrt.f32 %v3200_v62  ;;  %v1855_v31 = vadd.f32 %v1791_v48, %v1470_v35  ;;  %v1279_v32 = vadd.f32 %v1199_v40, %v9092_v17  ;;  %v9112_v27 = vld [vmem:[#allocation133_spill] sm:$0xff]  ;;  %v9114_v53 = vld [vmem:[#allocation134_spill] sm:$0xff]  ;;  %v9119_v6 = vld [vmem:[#allocation167_spill] sm:$0xff] }
 0x22b   : > { %v1335_v30 = vadd.f32 %v9089_v59, %v9088_v29  ;;  %v2057_v36 = vadd.f32 %v9094_v24, %v9093_v18  ;;  %3520 = vst [vmem:[%s4225_s28 + $0x1c8] sm:$0xff] %v3456_v34  ;;  %v1792_v33 = vadd.f32 %v1728_v49, %v9095_v44  ;;  %v2450_v54 = vadd.f32 %v9097_v12, %v9096_v28  ;;  %v9115_v40 = vld [vmem:[#allocation153_spill] sm:$0xff]  ;;  %v9117_v29 = vld [vmem:[#allocation190_spill] sm:$0xff]  ;;  %v9121_v17 = vld [vmem:[#allocation135_spill] sm:$0xff] }
 0x22c   : > { %v3137_v42 = vadd.f32 %v3041_v14, %v3009_v47  ;;  %v3394_v45 = vadd.f32 %v3926_v10, %v3329_v16  ;;  %v2240_v4 = vadd.f32 %v2120_v19, %v1855_v31  ;;  %v9099_v11 = vrot.slane %v9098_v41, 4  ;;  %v9107_v14 = vld [vmem:[#allocation189_spill] sm:$0xff]  ;;  %v9120_v31 = vld [vmem:[#allocation150_spill] sm:$0xff]  ;;  %v3330_v24 = vld [vmem:[%s3956_s25 + $0x1e0] sm:$0xff] }
 0x22d   : > { %v1399_v38 = vadd.f32 %v1335_v30, %v9087_v1  ;;  %v2843_v56 = vadd.f32 %v8973_v20, %v9100_v46  ;;  %v3829_v61 = vpop.eup %3828  ;;  %v9103_v5 = vrot.slane %v9102_v22, 4  ;;  %v2121_v39 = vadd.f32 %v2057_v36, %v9104_v43  ;;  %v9116_v34 = vld [vmem:[#allocation165_spill] sm:$0xff]  ;;  %v9118_v30 = vld [vmem:[#allocation160_spill] sm:$0xff] }
 0x22e   : > { %v2906_v63 = vadd.f32 %v2842_v8, %v9099_v11  ;;  %v3201_v25 = vadd.f32 1e-06, %v3137_v42  ;;  %v3457_v48 = vmul.f32 %v3829_v61, %v3393_v21  ;;  %v2625_v0 = vadd.f32 %v2513_v15, %v2240_v4  ;;  %v9110_v8 = vld [vmem:[#allocation158_spill] sm:$0xff]  ;;  %v9125_v11 = vld [vmem:[#allocation88_spill] sm:$0xff] }
 0x22f   : > { %v3042_v13 = vadd.f32 %v9103_v5, %v9101_v58  ;;  %v1471_v23 = vadd.f32 %v1399_v38, %v1279_v32  ;;  %v2514_v7 = vadd.f32 %v2450_v54, %v9105_v3  ;;  %v1200_v52 = vadd.f32 %v9107_v14, %v9106_v2  ;;  %v9123_v38 = vld [vmem:[#allocation191_spill] sm:$0xff] }
 0x230   : > { %3832 = vrsqrt.f32 %v3201_v25  ;;  %v9108_v20 = vrot.slane %v8964_v60, 6  ;;  %v1729_v62 = vadd.f32 %v9111_v55, %v9110_v8  ;;  %3521 = vst [vmem:[%s4225_s28 + $0x1d0] sm:$0xff] %v3457_v48  ;;  %v3010_v35 = vadd.f32 %v2906_v63, %v2625_v0  ;;  %v3331_v48 = vld [vmem:[%s3956_s25 + $0x1e8] sm:$0xff] }
 0x231   : > { %v1856_v19 = vadd.f32 %v1792_v33, %v1471_v23  ;;  %v9113_v21 = vrot.slane %v9112_v27, 4  ;;  %v1280_v57 = vadd.f32 %v1200_v52, %v9114_v53  ;;  %v2058_v16 = vadd.f32 %v9116_v34, %v9115_v40  ;;  %v9124_v33 = vld [vmem:[#allocation166_spill] sm:$0xff] }
 0x232   : > { %v1336_v26 = vadd.f32 %v9109_v50, %v9108_v20  ;;  %v1793_v59 = vadd.f32 %v1729_v62, %v9117_v29  ;;  %v2451_v37 = vadd.f32 %v9119_v6, %v9118_v30  ;;  %v3138_v49 = vadd.f32 %v3042_v13, %v3010_v35  ;;  %v9128_v13 = vld [vmem:[#allocation162_spill] sm:$0xff] }
 0x233   : > { %v2907_v15 = vadd.f32 %v2843_v56, %v9113_v21  ;;  %v2241_v47 = vadd.f32 %v2121_v39, %v1856_v19  ;;  %v9122_v32 = vrot.slane %v9121_v17, 4  ;;  %v2122_v44 = vadd.f32 %v2058_v16, %v9123_v38  ;;  %v3333_v50 = vld [vmem:[%s3956_s25 + $0x1f8] sm:$0xff] }
 0x234   : > { %v1400_v1 = vadd.f32 %v1336_v26, %v8964_v60  ;;  %v2844_v28 = vadd.f32 %v8994_v51, %v9124_v33  ;;  %v3831_v60 = vpop.eup %3830  ;;  %v3202_v12 = vadd.f32 1e-06, %v3138_v49  ;;  %v2515_v63 = vadd.f32 %v2451_v37, %v9125_v11 }
 0x235   : > { %v3043_v18 = vadd.f32 %v9122_v32, %v9120_v31  ;;  %v2626_v36 = vadd.f32 %v2514_v7, %v2241_v47  ;;  %v3458_v54 = vmul.f32 %v3831_v60, %v3394_v45  ;;  %v3395_v46 = vadd.f32 %v3926_v10, %v3330_v24  ;;  %v9127_v45 = vld [vmem:[#allocation170_spill] sm:$0xff]  ;;  %v3332_v7 = vld [vmem:[%s3956_s25 + $0x1f0] sm:$0xff] }
 0x236   : > { %v1472_v42 = vadd.f32 %v1400_v1, %v1280_v57  ;;  %3834 = vrsqrt.f32 %v3202_v12  ;;  %v9126_v25 = vrot.slane %v8974_v9, 4  ;;  %v9129_v23 = vrot.slane %v9128_v13, 4 }
 0x237   : > { %v3011_v4 = vadd.f32 %v2907_v15, %v2626_v36  ;;  %3522 = vst [vmem:[%s4225_s28 + $0x1d8] sm:$0xff] %v3458_v54  ;;  %v3396_v3 = vadd.f32 %v3926_v10, %v3331_v48  ;;  %v3397_v19 = vadd.f32 %v3926_v10, %v3332_v7  ;;  %v3398_v8 = vadd.f32 %v3926_v10, %v3333_v50 }
 0x238   : > { %v1857_v41 = vadd.f32 %v1793_v59, %v1472_v42  ;;  %v2908_v58 = vadd.f32 %v2844_v28, %v9126_v25  ;;  %v3044_v43 = vadd.f32 %v9129_v23, %v9127_v45 }
 0x239   : > { %v3139_v56 = vadd.f32 %v3043_v18, %v3011_v4 }
 0x23a   : > { %v2242_v61 = vadd.f32 %v2122_v44, %v1857_v41  ;;  %v3833_v51 = vpop.eup %3832 }
 0x23b   : > { %v3203_v22 = vadd.f32 1e-06, %v3139_v56  ;;  %v3459_v39 = vmul.f32 %v3833_v51, %v3395_v46 }
 0x23c   : > { %v2627_v5 = vadd.f32 %v2515_v63, %v2242_v61 }
 0x23d   : > { %3836 = vrsqrt.f32 %v3203_v22  ;;  %3523 = vst [vmem:[%s4225_s28 + $0x1e0] sm:$0xff] %v3459_v39 }
 0x23e   : > { %v3012_v0 = vadd.f32 %v2908_v58, %v2627_v5 }
 0x240   : > { %v3140_v9 = vadd.f32 %v3044_v43, %v3012_v0  ;;  %v3835_v14 = vpop.eup %3834 }
 0x241   : > { %v3460_v52 = vmul.f32 %v3835_v14, %v3396_v3 }
 0x242   : > { %v3204_v2 = vadd.f32 1e-06, %v3140_v9 }
 0x243   : > { %3524 = vst [vmem:[%s4225_s28 + $0x1e8] sm:$0xff] %v3460_v52 }
 0x244   : > { %3838 = vrsqrt.f32 %v3204_v2 }
 0x247   : > { %v3837_v20 = vpop.eup %3836 }
 0x248   : > { %v3461_v26 = vmul.f32 %v3837_v20, %v3397_v19 }
 0x24a   : > { %3525 = vst [vmem:[%s4225_s28 + $0x1f0] sm:$0xff] %v3461_v26 }
 0x24e   : > { %v3839_v55 = vpop.eup %3838 }
 0x24f   : > { %v3462_v62 = vmul.f32 %v3839_v55, %v3398_v8 }
 0x251   : > { %3526 = vst [vmem:[%s4225_s28 + $0x1f8] sm:$0xff] %v3462_v62 }
 0x252 PF: > { %s14_s16 = sadd.s32 1, %s3862_s16   ;;  %s9130_s14 = smov %s3858_s15 }
 0x253   : > { %p11_p5 = scmp.ge.s32.totalorder %s14_s16, 4   ;;  %s9131_s15 = smov %s9133_s0 }
 0x255   :  { %13 = sbr.rel (!%p11_p5) target bundleno = 2 (0x2), region = 65 }

</bundles_post_ra>
